<compile_context>
chip_gen: v7x
topology: tpu7x:2x2x1
jax: 0.10.0
libtpu: 0.0.40
codegen_flags: <defaults>
</compile_context>

<pallas_src>
import functools
import math

import jax
import jax.numpy as jnp
import numpy as np
from jax.experimental import pallas as pl
from jax.experimental.pallas import tpu as pltpu


def _round_up(x, m):
    return ((x + m - 1) // m) * m


# ---------------------------------------------------------------------------
# Fused generator kernel: chain of (bf16 MXU matmul) -> (+bias, activation)
# ---------------------------------------------------------------------------
def _generator_kernel(*refs, acts, bf16_epilogue):
    n = len(acts)
    x_ref = refs[0]
    w_refs = refs[1:1 + n]
    b_refs = refs[1 + n:1 + 2 * n]
    o_ref = refs[1 + 2 * n]

    h = x_ref[...].astype(jnp.bfloat16)            # MXU-native operand dtype
    for i in range(n):
        acc = jnp.dot(h, w_refs[i][...], preferred_element_type=jnp.float32)
        act = acts[i]
        last = i + 1 == n

        if bf16_epilogue and not last and act == "relu":
            # v6e/v7x have bf16 VALU lanes: bias-add + ReLU + inter-layer
            # requant all in bf16 (halves VPU vreg ops; numerics unchanged
            # because the intermediate is requantized to bf16 anyway).
            y = acc.astype(jnp.bfloat16) + b_refs[i][...].astype(jnp.bfloat16)
            h = jnp.maximum(y, 0.0)
            continue

        # f32 epilogue (v5e-safe path, and always used for the final layer).
        y = acc + b_refs[i][...].astype(jnp.float32)
        if act == "relu":
            y = jnp.maximum(y, 0.0)
        elif act == "sigmoid":
            # exp on the EUP + approx reciprocal on the EUP: keeps the divide
            # off the VALU -- essentially free filler under the MXU work.
            y = pl.reciprocal(1.0 + jnp.exp(-y), approx=True)
        elif act == "tanh":
            y = jnp.tanh(y)

        if last:
            o_ref[...] = y.astype(o_ref.dtype)
        else:
            h = y.astype(jnp.bfloat16)             # stays in VMEM/vregs


def _bf16_epilogue_supported():
    # bf16 VALU lanes exist on v6e/v7x; v5e (and older) lack them -> keep f32.
    try:
        kind = jax.devices()[0].device_kind.lower()
    except Exception:
        return False
    return ("v6" in kind) or ("v7" in kind)


def _pick_batch_tile(B):
    # Multiple of 16 (bf16 sublane packing).  For B > 16 guarantee >= 2 grid
    # steps so v7x's second TensorCore gets work; cap at 512 (multiple of the
    # 256 MXU M dim, amortizes the ~0.35us/step overhead, sized against v7x's
    # 64 MiB physical VMEM).
    if B <= 16:
        return _round_up(B, 16)
    if B <= 512:
        return _round_up(pl.cdiv(B, 2), 16)
    return 512


def generator_forward(params, x):
    latent_dim = params["latent_dim"]
    layers = params["layers"]
    Cout, Ho, Wo = params["out_chw"]

    # PyTorch: self.layers(x.view(-1, latent_dim, 1, 1))
    x2 = x.reshape(-1, latent_dim).astype(jnp.float32)
    B = x2.shape[0]

    tb = _pick_batch_tile(B)
    B_pad = _round_up(B, tb)
    if B_pad != B:
        x2 = jnp.pad(x2, ((0, B_pad - B), (0, 0)))
    grid = (B_pad // tb,)

    acts = tuple(l["act"] for l in layers)
    ws = [l["w"] for l in layers]
    bs = [l["b"] for l in layers]
    n_out = ws[-1].shape[1]

    # --- explicit VMEM budget (conservative: assumes double-buffered consts) --
    w_bytes = sum(w.size * w.dtype.itemsize for w in ws)
    b_bytes = sum(b.size * b.dtype.itemsize for b in bs)
    const_bytes = 2 * (w_bytes + b_bytes)                      # worst case 2 bufs
    io_bytes = 2 * tb * latent_dim * 4 + 2 * tb * n_out * 4    # pipelined in/out
    inter_bytes = sum(tb * w.shape[1] * (4 + 2) for w in ws)   # f32 acc + bf16 copy
    footprint = const_bytes + io_bytes + inter_bytes
    assert footprint <= 48 * 1024 * 1024, (
        f"VMEM footprint {footprint / 2**20:.1f} MiB too large for v7x's 64 MiB "
        "VMEM; reduce the batch tile or switch to a tiled conv-structured kernel")
    vmem_limit = min(int(1.25 * footprint) + (2 << 20), 62 * 1024 * 1024)

    bf16_ep = _bf16_epilogue_supported()
    kernel = functools.partial(_generator_kernel, acts=acts, bf16_epilogue=bf16_ep)

    def call(single_buffer_consts):
        ckw = {}
        if single_buffer_consts and hasattr(pl, "Buffered"):
            # Constant blocks (index_map always (0,0)) never change across the
            # grid: single-buffer them so weights take 1x (not 2x) VMEM.
            ckw = dict(pipeline_mode=pl.Buffered(1))
        in_specs = [pl.BlockSpec((tb, latent_dim), lambda i: (i, 0))]
        in_specs += [pl.BlockSpec(w.shape, lambda i: (0, 0), **ckw) for w in ws]
        in_specs += [pl.BlockSpec(b.shape, lambda i: (0, 0), **ckw) for b in bs]
        return pl.pallas_call(
            kernel,
            # TODO(synk): could emit bf16 output to halve writeback HBM traffic
            # if downstream tolerates bf16 images.
            out_shape=jax.ShapeDtypeStruct((B_pad, n_out), jnp.float32),
            grid_spec=pltpu.PrefetchScalarGridSpec(
                num_scalar_prefetch=0,
                grid=grid,
                in_specs=in_specs,
                out_specs=pl.BlockSpec((tb, n_out), lambda i: (i, 0)),
            ),
            compiler_params=pltpu.CompilerParams(
                dimension_semantics=("parallel",),   # batch axis -> v7x megacore
                vmem_limit_bytes=vmem_limit,
            ),
        )(x2, *ws, *bs)

    try:
        out = call(True)
    except Exception:
        # pl.Buffered(1) not supported by this jax/libtpu build: fall back to
        # the default (double-buffered) pipeline; vmem_limit already covers it.
        out = call(False)

    out = out[:B]                                  # drop batch padding
    # Last layer's dense map was built with NCHW-flat columns, so NCHW output
    # is a pure reshape (no XLA transpose / extra HBM pass).
    return out.reshape(B, Cout, Ho, Wo)


# ---------------------------------------------------------------------------
# Parameter construction: ConvTranspose2d -> exact dense linear map (one-time)
# ---------------------------------------------------------------------------
def _convt_dense_matrix(w_pt, H, W, stride, pad, col_order="nhwc"):
    """Exact dense linear map of ConvTranspose2d.

    Rows index the NHWC-flat input (ih*W + iw)*Cin + ci.
    Columns: "nhwc" -> (oh*Wo + ow)*Cout + co ; "nchw" -> co*Ho*Wo + oh*Wo + ow.
    """
    Cin, Cout, k, _ = w_pt.shape
    Ho = (H - 1) * stride - 2 * pad + k
    Wo = (W - 1) * stride - 2 * pad + k
    M = np.zeros((H * W * Cin, Ho * Wo * Cout), np.float32)
    for ih in range(H):
        for kh in range(k):
            oh = ih * stride - pad + kh
            if oh < 0 or oh >= Ho:
                continue
            for iw in range(W):
                for kw in range(k):
                    ow = iw * stride - pad + kw
                    if ow < 0 or ow >= Wo:
                        continue
                    r = (ih * W + iw) * Cin
                    if col_order == "nhwc":
                        c = (oh * Wo + ow) * Cout
                        M[r:r + Cin, c:c + Cout] += w_pt[:, :, kh, kw]
                    else:  # nchw columns: co*Ho*Wo + (oh*Wo + ow)
                        c = oh * Wo + ow
                        M[r:r + Cin, c::Ho * Wo] += w_pt[:, :, kh, kw]
    return M, Ho, Wo


def make_generator_params(key, input_size, latent_dim, hidden_channel,
                          out_channels=1, last_act="sigmoid"):
    n_up = int(round(math.log2(input_size // 4)))
    assert 4 * (2 ** n_up) == input_size, "input_size must be 4 * 2^n"
    chans = [hidden_channel * (2 ** (n_up - 1 - i)) for i in range(n_up)]

    cfgs = []
    cin = latent_dim
    cfgs.append(dict(cin=cin, cout=chans[0], k=4, s=1, p=0, bn=True, act="relu"))
    cin = chans[0]
    for i in range(1, n_up):
        cfgs.append(dict(cin=cin, cout=chans[i], k=4, s=2, p=1, bn=True, act="relu"))
        cin = chans[i]
    cfgs.append(dict(cin=cin, cout=out_channels, k=4, s=2, p=1, bn=False,
                     act=last_act))

    eps = 1e-5
    layers = []
    H = W = 1
    total_w_bytes = 0
    n_layers = len(cfgs)
    for li, cfg in enumerate(cfgs):
        last = li + 1 == n_layers
        col_order = "nchw" if last else "nhwc"   # NCHW cols on the last layer
        key, kw_, kg, kb, km, kv, kcb = jax.random.split(key, 7)
        w = 0.02 * jax.random.normal(
            kw_, (cfg["cin"], cfg["cout"], cfg["k"], cfg["k"]), jnp.float32)
        M, Ho, Wo = _convt_dense_matrix(np.asarray(w), H, W, cfg["s"], cfg["p"],
                                        col_order=col_order)
        if cfg["bn"]:
            gamma = 1.0 + 0.1 * jax.random.normal(kg, (cfg["cout"],), jnp.float32)
            beta = 0.1 * jax.random.normal(kb, (cfg["cout"],), jnp.float32)
            r_mean = 0.05 * jax.random.normal(km, (cfg["cout"],), jnp.float32)
            r_var = 1.0 + 0.1 * jax.random.uniform(kv, (cfg["cout"],), jnp.float32)
            scale = gamma / jnp.sqrt(r_var + eps)
            bias = beta - r_mean * scale
        else:
            scale = jnp.ones((cfg["cout"],), jnp.float32)
            bias = 0.01 * jax.random.normal(kcb, (cfg["cout"],), jnp.float32)
        # Fold per-channel scale into the weight columns (zero runtime cost);
        # tile per-channel bias to match the column ordering of the dense map.
        if col_order == "nhwc":
            scale_full = jnp.tile(scale, Ho * Wo)
            bias_full = jnp.tile(bias, Ho * Wo).reshape(1, -1)
        else:
            scale_full = jnp.repeat(scale, Ho * Wo)
            bias_full = jnp.repeat(bias, Ho * Wo).reshape(1, -1)
        w_mat = (jnp.asarray(M) * scale_full[None, :]).astype(jnp.bfloat16)
        total_w_bytes += w_mat.size * 2
        layers.append(dict(w=w_mat, b=bias_full, act=cfg["act"]))
        H, W = Ho, Wo

    # Single copy of the dense maps; generator_forward re-derives the exact
    # per-call VMEM footprint (incl. worst-case double buffering of consts)
    # and sets vmem_limit_bytes / asserts against v7x's 64 MiB VMEM from it.
    assert total_w_bytes <= 24 * 1024 * 1024, "dense layer maps too large for VMEM"
    return dict(layers=layers, latent_dim=latent_dim,
                out_chw=(out_channels, H, W))


if __name__ == "__main__":
    input_size = 16        # output image size
    latent_dim = 32
    hidden_channel = 16
    batch = 2

    key = jax.random.PRNGKey(0)
    key, kx = jax.random.split(key)
    x = jax.random.normal(kx, (batch, latent_dim), jnp.float32)

    params = make_generator_params(key, input_size, latent_dim, hidden_channel,
                                   out_channels=1, last_act="sigmoid")

    y = generator_forward(params, x)
    y = jax.block_until_ready(y)

    assert y.shape == (batch, 1, input_size, input_size), y.shape
    assert bool(jnp.all(jnp.isfinite(y)))
    assert bool(jnp.all((y >= 0.0) & (y <= 1.0)))          # sigmoid range

    # Pure-JAX reference with the same bf16-quantized weights; bf16 inter-layer
    # requantization is mirrored (matmul/bias/act in f32) to validate the fused
    # matmul + bias + activation chain.
    h = x.astype(jnp.float32)
    n_layers = len(params["layers"])
    for li, l in enumerate(params["layers"]):
        h = h @ l["w"].astype(jnp.float32) + l["b"].astype(jnp.float32)
        if l["act"] == "relu":
            h = jnp.maximum(h, 0.0)
        elif l["act"] == "sigmoid":
            h = jax.nn.sigmoid(h)
        elif l["act"] == "tanh":
            h = jnp.tanh(h)
        if li + 1 < n_layers:
            h = h.astype(jnp.bfloat16).astype(jnp.float32)
    Cout, Ho, Wo = params["out_chw"]
    y_ref = h.reshape(batch, Cout, Ho, Wo)
    max_err = float(jnp.max(jnp.abs(y - y_ref)))
    # Tolerance covers the bf16 bias/ReLU epilogue (v6e/v7x) and the EUP
    # approx-reciprocal used for the final sigmoid.
    assert max_err < 1e-2, max_err

    print("KERNEL_OK")
</pallas_src>

<mosaic_0001>
module attributes {stable_mosaic.version = 11 : i64} {
  func.func @_generator_kernel(%arg0: i32, %arg1: memref<16x32xf32, #tpu.memory_space<vmem>>, %arg2: memref<32x512xbf16, #tpu.memory_space<vmem>>, %arg3: memref<512x1024xbf16, #tpu.memory_space<vmem>>, %arg4: memref<1024x256xbf16, #tpu.memory_space<vmem>>, %arg5: memref<1x512xf32, #tpu.memory_space<vmem>>, %arg6: memref<1x1024xf32, #tpu.memory_space<vmem>>, %arg7: memref<1x256xf32, #tpu.memory_space<vmem>>, %arg8: memref<16x256xf32, #tpu.memory_space<vmem>>) attributes {dimension_semantics = [#tpu.dimension_semantics<parallel>], iteration_bounds = array<i64: 1>, scalar_prefetch = 0 : i64, scratch_operands = 0 : i64, tpu.core_type = #tpu.core_type<tc>, window_params = [{transform_indices = @transform_0, window_bounds = array<i64: 16, 32>}, {pipeline_mode = #tpu.pipeline_mode<synchronous>, transform_indices = @transform_1, window_bounds = array<i64: 32, 512>}, {pipeline_mode = #tpu.pipeline_mode<synchronous>, transform_indices = @transform_2, window_bounds = array<i64: 512, 1024>}, {pipeline_mode = #tpu.pipeline_mode<synchronous>, transform_indices = @transform_3, window_bounds = array<i64: 1024, 256>}, {pipeline_mode = #tpu.pipeline_mode<synchronous>, transform_indices = @transform_4, window_bounds = array<i64: 1, 512>}, {pipeline_mode = #tpu.pipeline_mode<synchronous>, transform_indices = @transform_5, window_bounds = array<i64: 1, 1024>}, {pipeline_mode = #tpu.pipeline_mode<synchronous>, transform_indices = @transform_6, window_bounds = array<i64: 1, 256>}, {transform_indices = @transform_7, window_bounds = array<i64: 16, 256>}]} {
    %c0 = arith.constant 0 : index
    %c0_0 = arith.constant 0 : index
    %0 = vector.load %arg1[%c0, %c0_0] : memref<16x32xf32, #tpu.memory_space<vmem>>, vector<16x32xf32>
    %1 = arith.truncf %0 : vector<16x32xf32> to vector<16x32xbf16>
    %c0_1 = arith.constant 0 : index
    %c0_2 = arith.constant 0 : index
    %2 = vector.load %arg2[%c0_1, %c0_2] : memref<32x512xbf16, #tpu.memory_space<vmem>>, vector<32x512xbf16>
    %cst = arith.constant dense<0.000000e+00> : vector<16x512xf32>
    %3 = tpu.matmul %1, %2, %cst {dimension_numbers = #tpu.dot_dimension_numbers<[1], [0], [0], [1], [0, 0, 1, 1], [], []>} : vector<16x32xbf16>, vector<32x512xbf16>, vector<16x512xf32> -> vector<16x512xf32>
    %c0_3 = arith.constant 0 : index
    %c0_4 = arith.constant 0 : index
    %4 = vector.load %arg5[%c0_3, %c0_4] : memref<1x512xf32, #tpu.memory_space<vmem>>, vector<1x512xf32>
    %5 = vector.broadcast %4 : vector<1x512xf32> to vector<16x512xf32>
    %6 = arith.addf %3, %5 : vector<16x512xf32>
    %cst_5 = arith.constant 0.000000e+00 : f32
    %7 = vector.broadcast %cst_5 : f32 to vector<16x512xf32>
    %8 = arith.maximumf %6, %7 : vector<16x512xf32>
    %9 = arith.truncf %8 : vector<16x512xf32> to vector<16x512xbf16>
    %c0_6 = arith.constant 0 : index
    %c0_7 = arith.constant 0 : index
    %10 = vector.load %arg3[%c0_6, %c0_7] : memref<512x1024xbf16, #tpu.memory_space<vmem>>, vector<512x1024xbf16>
    %cst_8 = arith.constant dense<0.000000e+00> : vector<16x1024xf32>
    %11 = tpu.matmul %9, %10, %cst_8 {dimension_numbers = #tpu.dot_dimension_numbers<[1], [0], [0], [1], [0, 0, 1, 1], [], []>} : vector<16x512xbf16>, vector<512x1024xbf16>, vector<16x1024xf32> -> vector<16x1024xf32>
    %c0_9 = arith.constant 0 : index
    %c0_10 = arith.constant 0 : index
    %12 = vector.load %arg6[%c0_9, %c0_10] : memref<1x1024xf32, #tpu.memory_space<vmem>>, vector<1x1024xf32>
    %13 = vector.broadcast %12 : vector<1x1024xf32> to vector<16x1024xf32>
    %14 = arith.addf %11, %13 : vector<16x1024xf32>
    %cst_11 = arith.constant 0.000000e+00 : f32
    %15 = vector.broadcast %cst_11 : f32 to vector<16x1024xf32>
    %16 = arith.maximumf %14, %15 : vector<16x1024xf32>
    %17 = arith.truncf %16 : vector<16x1024xf32> to vector<16x1024xbf16>
    %c0_12 = arith.constant 0 : index
    %c0_13 = arith.constant 0 : index
    %18 = vector.load %arg4[%c0_12, %c0_13] : memref<1024x256xbf16, #tpu.memory_space<vmem>>, vector<1024x256xbf16>
    %cst_14 = arith.constant dense<0.000000e+00> : vector<16x256xf32>
    %19 = tpu.matmul %17, %18, %cst_14 {dimension_numbers = #tpu.dot_dimension_numbers<[1], [0], [0], [1], [0, 0, 1, 1], [], []>} : vector<16x1024xbf16>, vector<1024x256xbf16>, vector<16x256xf32> -> vector<16x256xf32>
    %c0_15 = arith.constant 0 : index
    %c0_16 = arith.constant 0 : index
    %20 = vector.load %arg7[%c0_15, %c0_16] : memref<1x256xf32, #tpu.memory_space<vmem>>, vector<1x256xf32>
    %21 = vector.broadcast %20 : vector<1x256xf32> to vector<16x256xf32>
    %22 = arith.addf %19, %21 : vector<16x256xf32>
    %cst_17 = arith.constant 0.000000e+00 : f32
    %23 = vector.broadcast %cst_17 : f32 to vector<16x256xf32>
    %24 = arith.subf %23, %22 : vector<16x256xf32>
    %25 = math.exp %24 : vector<16x256xf32>
    %cst_18 = arith.constant 1.000000e+00 : f32
    %26 = vector.broadcast %cst_18 : f32 to vector<16x256xf32>
    %27 = arith.addf %26, %25 : vector<16x256xf32>
    %28 = tpu.reciprocal %27 {approx = true} : vector<16x256xf32> -> vector<16x256xf32>
    %c0_19 = arith.constant 0 : index
    %c0_20 = arith.constant 0 : index
    %29 = vector.load %arg8[%c0_19, %c0_20] : memref<16x256xf32, #tpu.memory_space<vmem>>, vector<16x256xf32>
    tpu.vector_store %arg8[%c0_19, %c0_20], %28 {strides = array<i32>} : memref<16x256xf32, #tpu.memory_space<vmem>>, vector<16x256xf32>,
    return
  }
  func.func @transform_0(%arg0: i32) -> (i32, i32) {
    %c0_i32 = arith.constant 0 : i32
    %c0_i32_0 = arith.constant 0 : i32
    return %arg0, %c0_i32 : i32, i32
  }
  func.func @transform_1(%arg0: i32) -> (i32, i32) {
    %c0_i32 = arith.constant 0 : i32
    %c0_i32_0 = arith.constant 0 : i32
    %c0_i32_1 = arith.constant 0 : i32
    return %c0_i32, %c0_i32_0 : i32, i32
  }
  func.func @transform_2(%arg0: i32) -> (i32, i32) {
    %c0_i32 = arith.constant 0 : i32
    %c0_i32_0 = arith.constant 0 : i32
    %c0_i32_1 = arith.constant 0 : i32
    return %c0_i32, %c0_i32_0 : i32, i32
  }
  func.func @transform_3(%arg0: i32) -> (i32, i32) {
    %c0_i32 = arith.constant 0 : i32
    %c0_i32_0 = arith.constant 0 : i32
    %c0_i32_1 = arith.constant 0 : i32
    return %c0_i32, %c0_i32_0 : i32, i32
  }
  func.func @transform_4(%arg0: i32) -> (i32, i32) {
    %c0_i32 = arith.constant 0 : i32
    %c0_i32_0 = arith.constant 0 : i32
    %c0_i32_1 = arith.constant 0 : i32
    return %c0_i32, %c0_i32_0 : i32, i32
  }
  func.func @transform_5(%arg0: i32) -> (i32, i32) {
    %c0_i32 = arith.constant 0 : i32
    %c0_i32_0 = arith.constant 0 : i32
    %c0_i32_1 = arith.constant 0 : i32
    return %c0_i32, %c0_i32_0 : i32, i32
  }
  func.func @transform_6(%arg0: i32) -> (i32, i32) {
    %c0_i32 = arith.constant 0 : i32
    %c0_i32_0 = arith.constant 0 : i32
    %c0_i32_1 = arith.constant 0 : i32
    return %c0_i32, %c0_i32_0 : i32, i32
  }
  func.func @transform_7(%arg0: i32) -> (i32, i32) {
    %c0_i32 = arith.constant 0 : i32
    %c0_i32_0 = arith.constant 0 : i32
    return %arg0, %c0_i32 : i32, i32
  }
}

module attributes {stable_mosaic.version = 11 : i64} {
  func.func @_generator_kernel(%arg0: i32, %arg1: memref<16x32xf32, #tpu.memory_space<vmem>>, %arg2: memref<32x512xbf16, #tpu.memory_space<vmem>>, %arg3: memref<512x1024xbf16, #tpu.memory_space<vmem>>, %arg4: memref<1024x256xbf16, #tpu.memory_space<vmem>>, %arg5: memref<1x512xf32, #tpu.memory_space<vmem>>, %arg6: memref<1x1024xf32, #tpu.memory_space<vmem>>, %arg7: memref<1x256xf32, #tpu.memory_space<vmem>>, %arg8: memref<16x256xf32, #tpu.memory_space<vmem>>) attributes {dimension_semantics = [#tpu.dimension_semantics<parallel>], iteration_bounds = array<i64: 1>, scalar_prefetch = 0 : i64, scratch_operands = 0 : i64, tpu.core_type = #tpu.core_type<tc>, window_params = [{transform_indices = @transform_0, window_bounds = array<i64: 16, 32>}, {pipeline_mode = #tpu.pipeline_mode<synchronous>, transform_indices = @transform_1, window_bounds = array<i64: 32, 512>}, {pipeline_mode = #tpu.pipeline_mode<synchronous>, transform_indices = @transform_2, window_bounds = array<i64: 512, 1024>}, {pipeline_mode = #tpu.pipeline_mode<synchronous>, transform_indices = @transform_3, window_bounds = array<i64: 1024, 256>}, {pipeline_mode = #tpu.pipeline_mode<synchronous>, transform_indices = @transform_4, window_bounds = array<i64: 1, 512>}, {pipeline_mode = #tpu.pipeline_mode<synchronous>, transform_indices = @transform_5, window_bounds = array<i64: 1, 1024>}, {pipeline_mode = #tpu.pipeline_mode<synchronous>, transform_indices = @transform_6, window_bounds = array<i64: 1, 256>}, {transform_indices = @transform_7, window_bounds = array<i64: 16, 256>}]} {
    %c0 = arith.constant 0 : index
    %c0_0 = arith.constant 0 : index
    %0 = vector.load %arg1[%c0, %c0_0] : memref<16x32xf32, #tpu.memory_space<vmem>>, vector<16x32xf32>
    %1 = arith.truncf %0 : vector<16x32xf32> to vector<16x32xbf16>
    %c0_1 = arith.constant 0 : index
    %c0_2 = arith.constant 0 : index
    %2 = vector.load %arg2[%c0_1, %c0_2] : memref<32x512xbf16, #tpu.memory_space<vmem>>, vector<32x512xbf16>
    %cst = arith.constant dense<0.000000e+00> : vector<16x512xf32>
    %3 = tpu.matmul %1, %2, %cst {dimension_numbers = #tpu.dot_dimension_numbers<[1], [0], [0], [1], [0, 0, 1, 1], [], []>} : vector<16x32xbf16>, vector<32x512xbf16>, vector<16x512xf32> -> vector<16x512xf32>
    %c0_3 = arith.constant 0 : index
    %c0_4 = arith.constant 0 : index
    %4 = vector.load %arg5[%c0_3, %c0_4] : memref<1x512xf32, #tpu.memory_space<vmem>>, vector<1x512xf32>
    %5 = vector.broadcast %4 : vector<1x512xf32> to vector<16x512xf32>
    %6 = arith.addf %3, %5 : vector<16x512xf32>
    %cst_5 = arith.constant 0.000000e+00 : f32
    %7 = vector.broadcast %cst_5 : f32 to vector<16x512xf32>
    %8 = arith.maximumf %6, %7 : vector<16x512xf32>
    %9 = arith.truncf %8 : vector<16x512xf32> to vector<16x512xbf16>
    %c0_6 = arith.constant 0 : index
    %c0_7 = arith.constant 0 : index
    %10 = vector.load %arg3[%c0_6, %c0_7] : memref<512x1024xbf16, #tpu.memory_space<vmem>>, vector<512x1024xbf16>
    %cst_8 = arith.constant dense<0.000000e+00> : vector<16x1024xf32>
    %11 = tpu.matmul %9, %10, %cst_8 {dimension_numbers = #tpu.dot_dimension_numbers<[1], [0], [0], [1], [0, 0, 1, 1], [], []>} : vector<16x512xbf16>, vector<512x1024xbf16>, vector<16x1024xf32> -> vector<16x1024xf32>
    %c0_9 = arith.constant 0 : index
    %c0_10 = arith.constant 0 : index
    %12 = vector.load %arg6[%c0_9, %c0_10] : memref<1x1024xf32, #tpu.memory_space<vmem>>, vector<1x1024xf32>
    %13 = vector.broadcast %12 : vector<1x1024xf32> to vector<16x1024xf32>
    %14 = arith.addf %11, %13 : vector<16x1024xf32>
    %cst_11 = arith.constant 0.000000e+00 : f32
    %15 = vector.broadcast %cst_11 : f32 to vector<16x1024xf32>
    %16 = arith.maximumf %14, %15 : vector<16x1024xf32>
    %17 = arith.truncf %16 : vector<16x1024xf32> to vector<16x1024xbf16>
    %c0_12 = arith.constant 0 : index
    %c0_13 = arith.constant 0 : index
    %18 = vector.load %arg4[%c0_12, %c0_13] : memref<1024x256xbf16, #tpu.memory_space<vmem>>, vector<1024x256xbf16>
    %cst_14 = arith.constant dense<0.000000e+00> : vector<16x256xf32>
    %19 = tpu.matmul %17, %18, %cst_14 {dimension_numbers = #tpu.dot_dimension_numbers<[1], [0], [0], [1], [0, 0, 1, 1], [], []>} : vector<16x1024xbf16>, vector<1024x256xbf16>, vector<16x256xf32> -> vector<16x256xf32>
    %c0_15 = arith.constant 0 : index
    %c0_16 = arith.constant 0 : index
    %20 = vector.load %arg7[%c0_15, %c0_16] : memref<1x256xf32, #tpu.memory_space<vmem>>, vector<1x256xf32>
    %21 = vector.broadcast %20 : vector<1x256xf32> to vector<16x256xf32>
    %22 = arith.addf %19, %21 : vector<16x256xf32>
    %cst_17 = arith.constant 0.000000e+00 : f32
    %23 = vector.broadcast %cst_17 : f32 to vector<16x256xf32>
    %24 = arith.subf %23, %22 : vector<16x256xf32>
    %25 = math.exp %24 : vector<16x256xf32>
    %cst_18 = arith.constant 1.000000e+00 : f32
    %26 = vector.broadcast %cst_18 : f32 to vector<16x256xf32>
    %27 = arith.addf %26, %25 : vector<16x256xf32>
    %28 = tpu.reciprocal %27 {approx = true} : vector<16x256xf32> -> vector<16x256xf32>
    %c0_19 = arith.constant 0 : index
    %c0_20 = arith.constant 0 : index
    %29 = vector.load %arg8[%c0_19, %c0_20] : memref<16x256xf32, #tpu.memory_space<vmem>>, vector<16x256xf32>
    tpu.vector_store %arg8[%c0_19, %c0_20], %28 {strides = array<i32>} : memref<16x256xf32, #tpu.memory_space<vmem>>, vector<16x256xf32>,
    return
  }
  func.func @transform_0(%arg0: i32) -> (i32, i32) {
    %c0_i32 = arith.constant 0 : i32
    %c0_i32_0 = arith.constant 0 : i32
    return %arg0, %c0_i32 : i32, i32
  }
  func.func @transform_1(%arg0: i32) -> (i32, i32) {
    %c0_i32 = arith.constant 0 : i32
    %c0_i32_0 = arith.constant 0 : i32
    %c0_i32_1 = arith.constant 0 : i32
    return %c0_i32, %c0_i32_0 : i32, i32
  }
  func.func @transform_2(%arg0: i32) -> (i32, i32) {
    %c0_i32 = arith.constant 0 : i32
    %c0_i32_0 = arith.constant 0 : i32
    %c0_i32_1 = arith.constant 0 : i32
    return %c0_i32, %c0_i32_0 : i32, i32
  }
  func.func @transform_3(%arg0: i32) -> (i32, i32) {
    %c0_i32 = arith.constant 0 : i32
    %c0_i32_0 = arith.constant 0 : i32
    %c0_i32_1 = arith.constant 0 : i32
    return %c0_i32, %c0_i32_0 : i32, i32
  }
  func.func @transform_4(%arg0: i32) -> (i32, i32) {
    %c0_i32 = arith.constant 0 : i32
    %c0_i32_0 = arith.constant 0 : i32
    %c0_i32_1 = arith.constant 0 : i32
    return %c0_i32, %c0_i32_0 : i32, i32
  }
  func.func @transform_5(%arg0: i32) -> (i32, i32) {
    %c0_i32 = arith.constant 0 : i32
    %c0_i32_0 = arith.constant 0 : i32
    %c0_i32_1 = arith.constant 0 : i32
    return %c0_i32, %c0_i32_0 : i32, i32
  }
  func.func @transform_6(%arg0: i32) -> (i32, i32) {
    %c0_i32 = arith.constant 0 : i32
    %c0_i32_0 = arith.constant 0 : i32
    %c0_i32_1 = arith.constant 0 : i32
    return %c0_i32, %c0_i32_0 : i32, i32
  }
  func.func @transform_7(%arg0: i32) -> (i32, i32) {
    %c0_i32 = arith.constant 0 : i32
    %c0_i32_0 = arith.constant 0 : i32
    return %arg0, %c0_i32 : i32, i32
  }
}

</mosaic_0001>

<bundles_post_ra>
// kernel: tpu_custom_call.1
= control target key start
LH: loop header
LB: loop body
LE: loop exit
PB: predicated region body
PF: predicated region fallthrough
CT: control target
= control target key end

     0   :  { %12 = vsyncpa [#allocation3], 0  ;;  %s4198_s0 = inlined_call_operand.hbm [shape: f32[16,32], index: 0, kind: input, shape index: {}]   ;;  %s4199_s1 = inlined_call_operand.hbm [shape: bf16[32,512], index: 1, kind: input, shape index: {}]   ;;  %s4200_s2 = inlined_call_operand.hbm [shape: bf16[512,1024], index: 2, kind: input, shape index: {}]   ;;  %s4201_s3 = inlined_call_operand.hbm [shape: bf16[1024,256], index: 3, kind: input, shape index: {}]   ;;  %s4202_s4 = inlined_call_operand.vmem [shape: f32[1,512], index: 4, kind: input, shape index: {}]   ;;  %s4203_s5 = inlined_call_operand.vmem [shape: f32[1,1024], index: 5, kind: input, shape index: {}]   ;;  %s4204_s6 = inlined_call_operand.vmem [shape: f32[1,256], index: 6, kind: input, shape index: {}]   ;;  %s4205_s7 = inlined_call_operand.hbm [shape: f32[16,256], index: 7, kind: output, shape index: {}]  }
   0x1   :  { %13 = vsyncpa [#allocation6], 0 }
   0x2   :  { %14 = vsyncpa [#allocation9], 0 }
   0x3   :  { %15 = vsyncpa [#allocation4], 0  ;;  %s3991_s24 = smov [#allocation5]   ;;  %s3873_s28 = scalar_lea.hbm %s4199_s1, 1024 }
   0x4   :  { %s33_s25 = sshll.u32 %s3991_s24, 4  ;;  %p3874_p0 = scmp.ne.s32.totalorder %s4199_s1, %s3873_s28  ;;  %s34_s25 = int_to_ptr.vmem [resolvable:$true] %s33_s25 }
   0x5   :  { %p3877_p1 = scmp.lt.u32.totalorder %s3873_s28, %s4199_s1 }
   0x7   :  { %p3879_p2 = pnand %p3877_p1, %p3874_p0 }
   0x9   :  { %3882 = shalt.err (!%p3879_p2)
}
   0xa   :  { %s3883_s10 = scalar_lea.vmem %s34_s25, 1024  ;;  %p3888_p4 = scmp.lt.s32.totalorder %s34_s25, %s34_s25 }
   0xb   :  { %p3884_p3 = scmp.ne.s32.totalorder %s34_s25, %s3883_s10  ;;  %p3889_p5 = scmp.lt.s32.totalorder %s3883_s10, %s3883_s10 }
   0xd   :  { %p3890_p6 = por %p3889_p5, %p3888_p4 }
   0xf   :  { %p3891_p7 = pnand %p3890_p6, %p3884_p3 }
  0x11   :  { %3894 = shalt.err (!%p3891_p7)
}
  0x12   :  { %s3992_s11 = smov 256   ;;  %s3993_s12 = smov 16  }
  0x13   :  { %39 = dma.hbm_to_vmem [thread:$0]  %s4199_s1, 1024, %s34_s25, [#allocation6], %s3992_s11, %s3992_s11, %s3993_s12  }
  0x14   :  { %s3994_s15 = smov [#allocation2]   ;;  %s3895_s19 = scalar_lea.hbm %s4198_s0, 256 }
  0x15   :  { %s21_s16 = sshll.u32 %s3994_s15, 4  ;;  %p3896_p8 = scmp.ne.s32.totalorder %s4198_s0, %s3895_s19  ;;  %s22_s16 = int_to_ptr.vmem [resolvable:$true] %s21_s16 }
  0x16   :  { %p3899_p9 = scmp.lt.u32.totalorder %s3895_s19, %s4198_s0 }
  0x18   :  { %p3901_p10 = pnand %p3899_p9, %p3896_p8 }
  0x1a   :  { %3904 = shalt.err (!%p3901_p10)
}
  0x1b   :  { %s3905_s24 = scalar_lea.vmem %s22_s16, 256  ;;  %p3910_p12 = scmp.lt.s32.totalorder %s22_s16, %s22_s16 }
  0x1c   :  { %p3906_p11 = scmp.ne.s32.totalorder %s22_s16, %s3905_s24  ;;  %p3911_p13 = scmp.lt.s32.totalorder %s3905_s24, %s3905_s24 }
  0x1e   :  { %p3912_p0 = por %p3911_p13, %p3910_p12 }
  0x20   :  { %p3913_p1 = pnand %p3912_p0, %p3906_p11 }
  0x22   :  { %3916 = shalt.err (!%p3913_p1)
}
  0x23   :  { %s3995_s1 = smov 128   ;;  %s3996_s25 = smov 8  }
  0x24   :  { %27 = dma.hbm_to_vmem [thread:$0]  %s4198_s0, 256, %s22_s16, [#allocation3], %s3995_s1, %s3995_s1, %s3996_s25  }
  0x25   :  { %s3997_s28 = smov [#allocation7]   ;;  %s3917_s9 = scalar_lea.hbm %s4200_s2, 32768 }
  0x26   :  { %s45_s29 = sshll.u32 %s3997_s28, 4  ;;  %p3918_p2 = scmp.ne.s32.totalorder %s4200_s2, %s3917_s9  ;;  %s46_s29 = int_to_ptr.vmem [resolvable:$true] %s45_s29 }
  0x27   :  { %p3921_p3 = scmp.lt.u32.totalorder %s3917_s9, %s4200_s2 }
  0x29   :  { %p3923_p4 = pnand %p3921_p3, %p3918_p2 }
  0x2b   :  { %3926 = shalt.err (!%p3923_p4)
}
  0x2c   :  { %s3927_s17 = scalar_lea.vmem %s46_s29, 32768  ;;  %p3932_p6 = scmp.lt.s32.totalorder %s46_s29, %s46_s29 }
  0x2d   :  { %p3928_p5 = scmp.ne.s32.totalorder %s46_s29, %s3927_s17  ;;  %p3933_p7 = scmp.lt.s32.totalorder %s3927_s17, %s3927_s17 }
  0x2f   :  { %p3934_p8 = por %p3933_p7, %p3932_p6 }
  0x31   :  { %p3935_p9 = pnand %p3934_p8, %p3928_p5 }
  0x33   :  { %3938 = shalt.err (!%p3935_p9)
}
  0x34   :  { %s3998_s0 = smov 512   ;;  %s3999_s16 = smov 32  }
  0x35   :  { %51 = dma.hbm_to_vmem [thread:$0]  %s4200_s2, 32768, %s46_s29, [#allocation6], %s3998_s0, %s3998_s0, %s3999_s16  }
  0x36   :  { %s4000_s20 = smov [#allocation8]   ;;  %s3939_s24 = scalar_lea.hbm %s4201_s3, 16384 }
  0x37   :  { %s57_s21 = sshll.u32 %s4000_s20, 4  ;;  %p3940_p10 = scmp.ne.s32.totalorder %s4201_s3, %s3939_s24  ;;  %s58_s21 = int_to_ptr.vmem [resolvable:$true] %s57_s21 }
  0x38   :  { %p3943_p11 = scmp.lt.u32.totalorder %s3939_s24, %s4201_s3 }
  0x3a   :  { %p3945_p12 = pnand %p3943_p11, %p3940_p10 }
  0x3c   :  { %3948 = shalt.err (!%p3945_p12)
}
  0x3d   :  { %s3949_s8 = scalar_lea.vmem %s58_s21, 16384  ;;  %p3954_p0 = scmp.lt.s32.totalorder %s58_s21, %s58_s21 }
  0x3e   :  { %p3950_p13 = scmp.ne.s32.totalorder %s58_s21, %s3949_s8  ;;  %p3955_p1 = scmp.lt.s32.totalorder %s3949_s8, %s3949_s8 }
  0x40   :  { %p3956_p2 = por %p3955_p1, %p3954_p0 }
  0x42   :  { %p3957_p3 = pnand %p3956_p2, %p3950_p13 }
  0x44   :  { %3960 = shalt.err (!%p3957_p3)
}
  0x45   :  { %63 = dma.hbm_to_vmem [thread:$0]  %s4201_s3, 16384, %s58_s21, [#allocation9], %s3995_s1, %s3995_s1, %s3996_s25  }
  0x46   :  { %3983 = dma.done.wait [#allocation3], 256  }
  0x47   :  { %3984 = vsyncadd [#allocation3], 4294967040 }
  0x48   :  { %3985 = dma.done.wait [#allocation6], 33792  }
  0x49   :  { %3986 = vsyncadd [#allocation6], 4294933504 }
  0x4a   :  { %3987 = dma.done.wait [#allocation9], 16384  }
  0x4b   :  { %3988 = vsyncadd [#allocation9], 4294950912  ;;  %v4001_v0 = vmov 0   ;;  %v3653_v1 = vld [vmem:[#allocation5 + $0x4] ss:$16 sps:$4 sm:$0xff]   ;;  %v84_v6 = vld [vmem:[#allocation2 + $0x8] sm:$0xff] }
  0x4c   :  { %192 = vmatprep.mubr.bf16.mxu0 %v4001_v0  ;;  %235 = vmatprep.mubr.bf16.mxu1 %v4001_v0  ;;  %v3655_v2 = vld [vmem:[#allocation5] ss:$16 sps:$4 sm:$0xff]   ;;  %v3656_v3 = vld [vmem:[#allocation5 + $0x24] ss:$16 sps:$4 sm:$0xff]   ;;  %v3659_v7 = vld [vmem:[#allocation5 + $0xc] ss:$16 sps:$4 sm:$0xff]  }
  0x4d   :  { %160 = vmatprep.subr.bf16.mxu0 %v3653_v1  ;;  %v3658_v4 = vld [vmem:[#allocation5 + $0x20] ss:$16 sps:$4 sm:$0xff]   ;;  %v3661_v8 = vld [vmem:[#allocation5 + $0x8] ss:$16 sps:$4 sm:$0xff]   ;;  %v3662_v9 = vld [vmem:[#allocation5 + $0x2c] ss:$16 sps:$4 sm:$0xff]   ;;  %203 = vmatprep.subr.bf16.mxu1 %v3659_v7 }
  0x4e   :  { %v83_v5 = vld [vmem:[#allocation2] sm:$0xff]  ;;  %161 = vmatpush1.bf16.msra.mxu0 %v3655_v2  ;;  %v258_v11 = vld [vmem:[#allocation7] sm:$0xff]  ;;  %vm156_vm0 = vcmask 261120   ;;  %204 = vmatpush1.bf16.msra.mxu1 %v3661_v8  ;;  %v3664_v14 = vld [vmem:[#allocation5 + $0x28] ss:$16 sps:$4 sm:$0xff]  }
  0x4f   :  { %162 = vmatprep.subr.bf16.mxu0 %v3656_v3  ;;  %v85_v10 = vpack.c.bf16 %v84_v6, %v83_v5  ;;  %v262_v12 = vld [vmem:[#allocation7 + $0x20] sm:$0xff]  ;;  %v260_v13 = vld [vmem:[#allocation7 + $0x10] sm:$0xff]  ;;  %205 = vmatprep.subr.bf16.mxu1 %v3662_v9 }
  0x50   :  { %v264_v15 = vld [vmem:[#allocation7 + $0x30] sm:$0xff]  ;;  %v3210_v16 = vcombine.high %v258_v11, %v262_v12  ;;  %v266_v19 = vld [vmem:[#allocation7 + $0x40] sm:$0xff]  ;;  %v3209_v26 = vcombine.low %v258_v11, %v262_v12 }
  0x51   :  { %v3213_v17 = vcombine.low %v260_v13, %v264_v15  ;;  %v3214_v18 = vcombine.high %v260_v13, %v264_v15  ;;  %v268_v20 = vld [vmem:[#allocation7 + $0x50] sm:$0xff]  ;;  %v270_v22 = vld [vmem:[#allocation7 + $0x60] sm:$0xff] }
  0x52   :  { %163 = vmatpush1.bf16.msra.mxu0 %v3658_v4  ;;  %v272_v21 = vld [vmem:[#allocation7 + $0x70] sm:$0xff]  ;;  %206 = vmatpush1.bf16.msra.mxu1 %v3664_v14  ;;  %v3218_v28 = vcombine.high %v266_v19, %v270_v22  ;;  %v274_v29 = vld [vmem:[#allocation7 + $0x80] sm:$0xff]  ;;  %v3217_v34 = vcombine.low %v266_v19, %v270_v22 }
  0x53   :  { %v3222_v23 = vcombine.high %v268_v20, %v272_v21  ;;  %v276_v24 = vld [vmem:[#allocation7 + $0x90] sm:$0xff]  ;;  %2008 = vmatprep.subr.bf16.mxu0 %v3214_v18  ;;  %v3221_v27 = vcombine.low %v268_v20, %v272_v21  ;;  %1836 = vmatprep.subr.bf16.mxu1 %v3210_v16  ;;  %v278_v31 = vld [vmem:[#allocation7 + $0xa0] sm:$0xff] }
  0x54   :  { %v280_v25 = vld [vmem:[#allocation7 + $0xb0] sm:$0xff]  ;;  %v3226_v36 = vcombine.high %v274_v29, %v278_v31  ;;  %v282_v37 = vld [vmem:[#allocation7 + $0xc0] sm:$0xff]  ;;  %v3225_v42 = vcombine.low %v274_v29, %v278_v31 }
  0x55   :  { %3207 = vmatmul.mubr.msk.bf16.vlgmr.msra.gmra.mrb[0].mxu0 %vm156_vm0, %v85_v10  ;;  %v3230_v30 = vcombine.high %v276_v24, %v280_v25  ;;  %v284_v32 = vld [vmem:[#allocation7 + $0xd0] sm:$0xff]  ;;  %3208 = vmatmul.mubr.msk.bf16.vlgmr.msra.gmra.mrb[0].mxu1 %vm156_vm0, %v85_v10  ;;  %v3229_v35 = vcombine.low %v276_v24, %v280_v25  ;;  %v286_v39 = vld [vmem:[#allocation7 + $0xe0] sm:$0xff] }
  0x56   :  { %2009 = vmatpush1.bf16.msra.mxu0 %v3213_v17  ;;  %v288_v33 = vld [vmem:[#allocation7 + $0xf0] sm:$0xff]  ;;  %1837 = vmatpush1.bf16.msra.mxu1 %v3209_v26  ;;  %v3234_v44 = vcombine.high %v282_v37, %v286_v39  ;;  %v290_v45 = vld [vmem:[#allocation7 + $0x100] sm:$0xff]  ;;  %v3233_v50 = vcombine.low %v282_v37, %v286_v39 }
  0x57   :  { %2010 = vmatprep.subr.bf16.mxu0 %v3222_v23  ;;  %1838 = vmatprep.subr.bf16.mxu1 %v3218_v28  ;;  %v3238_v38 = vcombine.high %v284_v32, %v288_v33  ;;  %v292_v40 = vld [vmem:[#allocation7 + $0x110] sm:$0xff]  ;;  %v3237_v43 = vcombine.low %v284_v32, %v288_v33  ;;  %v294_v47 = vld [vmem:[#allocation7 + $0x120] sm:$0xff] }
  0x58   :  { %v296_v41 = vld [vmem:[#allocation7 + $0x130] sm:$0xff]  ;;  %v298_v52 = vld [vmem:[#allocation7 + $0x140] sm:$0xff]  ;;  %v3242_v53 = vcombine.high %v290_v45, %v294_v47  ;;  %v3241_v58 = vcombine.low %v290_v45, %v294_v47 }
  0x59   :  { %v3246_v46 = vcombine.high %v292_v40, %v296_v41  ;;  %v300_v48 = vld [vmem:[#allocation7 + $0x150] sm:$0xff]  ;;  %v3245_v51 = vcombine.low %v292_v40, %v296_v41  ;;  %v302_v54 = vld [vmem:[#allocation7 + $0x160] sm:$0xff] }
  0x5a   :  { %2011 = vmatpush1.bf16.msra.mxu0 %v3221_v27  ;;  %1839 = vmatpush1.bf16.msra.mxu1 %v3217_v34  ;;  %v304_v49 = vld [vmem:[#allocation7 + $0x170] sm:$0xff]  ;;  %v306_v60 = vld [vmem:[#allocation7 + $0x180] sm:$0xff]  ;;  %v3250_v0 = vcombine.high %v298_v52, %v302_v54  ;;  %v3249_v2 = vcombine.low %v298_v52, %v302_v54 }
  0x5b   :  { %2012 = vmatprep.subr.bf16.mxu0 %v3230_v30  ;;  %1840 = vmatprep.subr.bf16.mxu1 %v3226_v36  ;;  %v3254_v55 = vcombine.high %v300_v48, %v304_v49  ;;  %v308_v56 = vld [vmem:[#allocation7 + $0x190] sm:$0xff]  ;;  %v3253_v59 = vcombine.low %v300_v48, %v304_v49  ;;  %v310_v61 = vld [vmem:[#allocation7 + $0x1a0] sm:$0xff] }
  0x5c   :  { %v312_v57 = vld [vmem:[#allocation7 + $0x1b0] sm:$0xff]  ;;  %v314_v4 = vld [vmem:[#allocation7 + $0x1c0] sm:$0xff]  ;;  %v3258_v8 = vcombine.high %v306_v60, %v310_v61  ;;  %v3257_v10 = vcombine.low %v306_v60, %v310_v61 }
  0x5d   :  { %v316_v62 = vld [vmem:[#allocation7 + $0x1d0] sm:$0xff]  ;;  %v3262_v1 = vcombine.high %v308_v56, %v312_v57  ;;  %v3261_v3 = vcombine.low %v308_v56, %v312_v57  ;;  %v318_v5 = vld [vmem:[#allocation7 + $0x1e0] sm:$0xff] }
  0x5e   :  { %2013 = vmatpush1.bf16.msra.mxu0 %v3229_v35  ;;  %1841 = vmatpush1.bf16.msra.mxu1 %v3225_v42  ;;  %v320_v63 = vld [vmem:[#allocation7 + $0x1f0] sm:$0xff]  ;;  %v322_v12 = vld [vmem:[#allocation7 + $0x200] sm:$0xff]  ;;  %v3266_v16 = vcombine.high %v314_v4, %v318_v5  ;;  %v3265_v18 = vcombine.low %v314_v4, %v318_v5 }
  0x5f   :  { %2014 = vmatprep.subr.bf16.mxu0 %v3238_v38  ;;  %1842 = vmatprep.subr.bf16.mxu1 %v3234_v44  ;;  %v324_v6 = vld [vmem:[#allocation7 + $0x210] sm:$0xff]  ;;  %v3270_v9 = vcombine.high %v316_v62, %v320_v63  ;;  %v3269_v11 = vcombine.low %v316_v62, %v320_v63  ;;  %v326_v13 = vld [vmem:[#allocation7 + $0x220] sm:$0xff] }
  0x60   :  { %v328_v7 = vld [vmem:[#allocation7 + $0x230] sm:$0xff]  ;;  %v330_v20 = vld [vmem:[#allocation7 + $0x240] sm:$0xff]  ;;  %v3274_v24 = vcombine.high %v322_v12, %v326_v13  ;;  %v3273_v26 = vcombine.low %v322_v12, %v326_v13 }
  0x61   :  { %v332_v14 = vld [vmem:[#allocation7 + $0x250] sm:$0xff]  ;;  %v3278_v17 = vcombine.high %v324_v6, %v328_v7  ;;  %v3277_v19 = vcombine.low %v324_v6, %v328_v7  ;;  %v334_v21 = vld [vmem:[#allocation7 + $0x260] sm:$0xff] }
  0x62   :  { %2015 = vmatpush1.bf16.msra.mxu0 %v3237_v43  ;;  %1843 = vmatpush1.bf16.msra.mxu1 %v3233_v50  ;;  %v336_v15 = vld [vmem:[#allocation7 + $0x270] sm:$0xff]  ;;  %v338_v28 = vld [vmem:[#allocation7 + $0x280] sm:$0xff]  ;;  %v3282_v32 = vcombine.high %v330_v20, %v334_v21  ;;  %v3281_v34 = vcombine.low %v330_v20, %v334_v21  ;;  %v96_v20 = vlaneseq }
  0x63   :  { %2016 = vmatprep.subr.bf16.mxu0 %v3246_v46  ;;  %1844 = vmatprep.subr.bf16.mxu1 %v3242_v53  ;;  %v340_v22 = vld [vmem:[#allocation7 + $0x290] sm:$0xff]  ;;  %v3286_v25 = vcombine.high %v332_v14, %v336_v15  ;;  %v3285_v27 = vcombine.low %v332_v14, %v336_v15  ;;  %v342_v29 = vld [vmem:[#allocation7 + $0x2a0] sm:$0xff] }
  0x64   :  { %v344_v23 = vld [vmem:[#allocation7 + $0x2b0] sm:$0xff]  ;;  %v346_v36 = vld [vmem:[#allocation7 + $0x2c0] sm:$0xff]  ;;  %v3290_v40 = vcombine.high %v338_v28, %v342_v29  ;;  %v3289_v42 = vcombine.low %v338_v28, %v342_v29  ;;  %v4106_v21 = vshrl.u32 %v96_v20, 7 }
  0x65   :  { %v348_v30 = vld [vmem:[#allocation7 + $0x2d0] sm:$0xff]  ;;  %v3294_v33 = vcombine.high %v340_v22, %v344_v23  ;;  %v3293_v35 = vcombine.low %v340_v22, %v344_v23  ;;  %v350_v37 = vld [vmem:[#allocation7 + $0x2e0] sm:$0xff] }
  0x66   :  { %2017 = vmatpush1.bf16.msra.mxu0 %v3245_v51  ;;  %1845 = vmatpush1.bf16.msra.mxu1 %v3241_v58  ;;  %v352_v31 = vld [vmem:[#allocation7 + $0x2f0] sm:$0xff]  ;;  %v354_v44 = vld [vmem:[#allocation7 + $0x300] sm:$0xff]  ;;  %v3298_v48 = vcombine.high %v346_v36, %v350_v37  ;;  %v3297_v50 = vcombine.low %v346_v36, %v350_v37  ;;  %v4109_v22 = vsub.s32 0, %v4106_v21  ;;  %v110_v28 = vsub.s32 3, %v4106_v21 }
  0x67   :  { %2018 = vmatprep.subr.bf16.mxu0 %v3254_v55  ;;  %1846 = vmatprep.subr.bf16.mxu1 %v3250_v0  ;;  %v356_v38 = vld [vmem:[#allocation7 + $0x310] sm:$0xff]  ;;  %v3302_v41 = vcombine.high %v348_v30, %v352_v31  ;;  %v3301_v43 = vcombine.low %v348_v30, %v352_v31  ;;  %v358_v45 = vld [vmem:[#allocation7 + $0x320] sm:$0xff] }
  0x68   :  { %v360_v39 = vld [vmem:[#allocation7 + $0x330] sm:$0xff]  ;;  %v362_v52 = vld [vmem:[#allocation7 + $0x340] sm:$0xff]  ;;  %v3306_v54 = vcombine.high %v354_v44, %v358_v45  ;;  %v3305_v56 = vcombine.low %v354_v44, %v358_v45 }
  0x69   :  { %v364_v46 = vld [vmem:[#allocation7 + $0x350] sm:$0xff]  ;;  %v3310_v49 = vcombine.high %v356_v38, %v360_v39  ;;  %v3309_v51 = vcombine.low %v356_v38, %v360_v39  ;;  %v366_v53 = vld [vmem:[#allocation7 + $0x360] sm:$0xff] }
  0x6a   :  { %2019 = vmatpush1.bf16.msra.mxu0 %v3253_v59  ;;  %1847 = vmatpush1.bf16.msra.mxu1 %v3249_v2  ;;  %v368_v47 = vld [vmem:[#allocation7 + $0x370] sm:$0xff]  ;;  %v3314_v58 = vcombine.high %v362_v52, %v366_v53  ;;  %v3313_v59 = vcombine.low %v362_v52, %v366_v53  ;;  %v370_v60 = vld [vmem:[#allocation7 + $0x380] sm:$0xff] }
  0x6b   :  { %2020 = vmatprep.subr.bf16.mxu0 %v3262_v1  ;;  %1848 = vmatprep.subr.bf16.mxu1 %v3258_v8  ;;  %v3318_v55 = vcombine.high %v364_v46, %v368_v47  ;;  %v3317_v57 = vcombine.low %v364_v46, %v368_v47  ;;  %v374_v61 = vld [vmem:[#allocation7 + $0x3a0] sm:$0xff]  ;;  %v372_v62 = vld [vmem:[#allocation7 + $0x390] sm:$0xff] }
  0x6c   :  { %v3322_v63 = vcombine.high %v370_v60, %v374_v61  ;;  %v376_v0 = vld [vmem:[#allocation7 + $0x3b0] sm:$0xff]  ;;  %v3321_v1 = vcombine.low %v370_v60, %v374_v61  ;;  %v378_v4 = vld [vmem:[#allocation7 + $0x3c0] sm:$0xff] }
  0x6d   :  { %v3325_v2 = vcombine.low %v372_v62, %v376_v0  ;;  %v382_v5 = vld [vmem:[#allocation7 + $0x3e0] sm:$0xff]  ;;  %v380_v6 = vld [vmem:[#allocation7 + $0x3d0] sm:$0xff] }
  0x6e   :  { %2021 = vmatpush1.bf16.msra.mxu0 %v3261_v3  ;;  %1849 = vmatpush1.bf16.msra.mxu1 %v3257_v10  ;;  %v3326_v3 = vcombine.high %v372_v62, %v376_v0  ;;  %v3330_v7 = vcombine.high %v378_v4, %v382_v5  ;;  %v384_v8 = vld [vmem:[#allocation7 + $0x3f0] sm:$0xff]  ;;  %v4102_v12 = vld [vmem:[#allocation7 + $0x400] sm:$0xff] }
  0x6f   :  { %2022 = vmatprep.subr.bf16.mxu0 %v3270_v9  ;;  %1850 = vmatprep.subr.bf16.mxu1 %v3266_v16  ;;  %v3329_v9 = vcombine.low %v378_v4, %v382_v5  ;;  %v3333_v10 = vcombine.low %v380_v6, %v384_v8  ;;  %v390_v13 = vld [vmem:[#allocation7 + $0x420] sm:$0xff]  ;;  %v388_v14 = vld [vmem:[#allocation7 + $0x410] sm:$0xff] }
  0x70   :  { %v3338_v15 = vcombine.high %v4102_v12, %v390_v13  ;;  %v392_v16 = vld [vmem:[#allocation7 + $0x430] sm:$0xff]  ;;  %v398_v47 = vld [vmem:[#allocation7 + $0x460] sm:$0xff] }
  0x71   :  { %v94_v23 = vld [vmem:[%s4202_s4] sm:$0xf]  ;;  %v402_v61 = vld [vmem:[#allocation7 + $0x480] sm:$0xff] }
  0x72   :  { %2023 = vmatpush1.bf16.msra.mxu0 %v3269_v11  ;;  %1851 = vmatpush1.bf16.msra.mxu1 %v3265_v18  ;;  %v3334_v11 = vcombine.high %v380_v6, %v384_v8  ;;  %v3341_v18 = vcombine.low %v388_v14, %v392_v16  ;;  %v404_v0 = vld [vmem:[#allocation7 + $0x490] sm:$0xff] }
  0x73   :  { %2024 = vmatprep.subr.bf16.mxu0 %v3278_v17  ;;  %1852 = vmatprep.subr.bf16.mxu1 %v3274_v24  ;;  %v3337_v17 = vcombine.low %v4102_v12, %v390_v13  ;;  %v4115_v24 = vsub.s32 1, %v4106_v21  ;;  %v416_v12 = vld [vmem:[#allocation7 + $0x4f0] sm:$0xff] }
  0x74   :  { %v424_v20 = vld [vmem:[#allocation7 + $0x530] sm:$0xff] }
  0x76   :  { %2025 = vmatpush1.bf16.msra.mxu0 %v3277_v19  ;;  %1853 = vmatpush1.bf16.msra.mxu1 %v3273_v26  ;;  %v3342_v19 = vcombine.high %v388_v14, %v392_v16  ;;  %v106_v26 = vsub.s32 2, %v4106_v21 }
  0x77   :  { %2026 = vmatprep.subr.bf16.mxu0 %v3286_v25  ;;  %1854 = vmatprep.subr.bf16.mxu1 %v3282_v32  ;;  %v99_v25 = vrot.slane %v94_v23, %v4109_v22 }
  0x78   :  { %v107_v32 = vrot.slane %v94_v23, %v106_v26 }
  0x7a   :  { %2027 = vmatpush1.bf16.msra.mxu0 %v3285_v27  ;;  %1855 = vmatpush1.bf16.msra.mxu1 %v3281_v34  ;;  %v103_v27 = vrot.slane %v94_v23, %v4115_v24 }
  0x7b   :  { %2028 = vmatprep.subr.bf16.mxu0 %v3294_v33  ;;  %1856 = vmatprep.subr.bf16.mxu1 %v3290_v40 }
  0x7e   :  { %2029 = vmatpush1.bf16.msra.mxu0 %v3293_v35  ;;  %1857 = vmatpush1.bf16.msra.mxu1 %v3289_v42  ;;  %v111_v35 = vrot.slane %v94_v23, %v110_v28  ;;  %v394_v42 = vld [vmem:[#allocation7 + $0x440] sm:$0xff] }
  0x7f   :  { %2030 = vmatprep.subr.bf16.mxu0 %v3302_v41  ;;  %1858 = vmatprep.subr.bf16.mxu1 %v3298_v48  ;;  %v396_v48 = vld [vmem:[#allocation7 + $0x450] sm:$0xff]  ;;  %v3345_v4 = vcombine.low %v394_v42, %v398_v47 }
  0x82   :  { %2031 = vmatpush1.bf16.msra.mxu0 %v3301_v43  ;;  %1859 = vmatpush1.bf16.msra.mxu1 %v3297_v50 }
  0x83   :  { %2032 = vmatprep.subr.bf16.mxu0 %v3310_v49  ;;  %1860 = vmatprep.subr.bf16.mxu1 %v3306_v54  ;;  %v400_v49 = vld [vmem:[#allocation7 + $0x470] sm:$0xff] }
  0x84   :  { %v3350_v60 = vcombine.high %v396_v48, %v400_v49  ;;  %v3349_v5 = vcombine.low %v396_v48, %v400_v49  ;;  %v444_v48 = vld [vmem:[#allocation7 + $0x5d0] sm:$0xff] }
  0x85   :  { %v448_v49 = vld [vmem:[#allocation7 + $0x5f0] sm:$0xff] }
  0x86   :  { %2033 = vmatpush1.bf16.msra.mxu0 %v3309_v51  ;;  %1861 = vmatpush1.bf16.msra.mxu1 %v3305_v56 }
  0x87   :  { %2034 = vmatprep.subr.bf16.mxu0 %v3318_v55  ;;  %1862 = vmatprep.subr.bf16.mxu1 %v3314_v58 }
  0x8a   :  { %2035 = vmatpush1.bf16.msra.mxu0 %v3317_v57  ;;  %1863 = vmatpush1.bf16.msra.mxu1 %v3313_v59  ;;  %v3346_v59 = vcombine.high %v394_v42, %v398_v47  ;;  %v446_v47 = vld [vmem:[#allocation7 + $0x5e0] sm:$0xff] }
  0x8b   :  { %1864 = vmatprep.subr.bf16.mxu1 %v3322_v63  ;;  %2036 = vmatprep.subr.bf16.mxu0 %v3326_v3  ;;  %v406_v63 = vld [vmem:[#allocation7 + $0x4a0] sm:$0xff] }
  0x8c   :  { %v3353_v13 = vcombine.low %v402_v61, %v406_v63 }
  0x8e   :  { %1865 = vmatpush1.bf16.msra.mxu1 %v3321_v1  ;;  %2037 = vmatpush1.bf16.msra.mxu0 %v3325_v2  ;;  %v408_v1 = vld [vmem:[#allocation7 + $0x4b0] sm:$0xff] }
  0x8f   :  { %1866 = vmatprep.subr.bf16.mxu1 %v3330_v7  ;;  %2038 = vmatprep.subr.bf16.mxu0 %v3334_v11  ;;  %v3354_v7 = vcombine.high %v402_v61, %v406_v63  ;;  %v3358_v8 = vcombine.high %v404_v0, %v408_v1  ;;  %v412_v11 = vld [vmem:[#allocation7 + $0x4d0] sm:$0xff]  ;;  %v3357_v14 = vcombine.low %v404_v0, %v408_v1  ;;  %v458_v0 = vld [vmem:[#allocation7 + $0x640] sm:$0xff] }
  0x90   :  { %v3366_v16 = vcombine.high %v412_v11, %v416_v12  ;;  %v3397_v61 = vcombine.low %v444_v48, %v448_v49  ;;  %v462_v1 = vld [vmem:[#allocation7 + $0x660] sm:$0xff] }
  0x92   :  { %1867 = vmatpush1.bf16.msra.mxu1 %v3329_v9  ;;  %2039 = vmatpush1.bf16.msra.mxu0 %v3333_v10  ;;  %v410_v9 = vld [vmem:[#allocation7 + $0x4c0] sm:$0xff] }
  0x93   :  { %1879 = vmatprep.subr.bf16.mxu1 %v3338_v15  ;;  %2051 = vmatprep.subr.bf16.mxu0 %v3342_v19  ;;  %v414_v10 = vld [vmem:[#allocation7 + $0x4e0] sm:$0xff]  ;;  %v420_v19 = vld [vmem:[#allocation7 + $0x510] sm:$0xff] }
  0x94   :  { %v3362_v15 = vcombine.high %v410_v9, %v414_v10  ;;  %v3361_v23 = vcombine.low %v410_v9, %v414_v10  ;;  %v466_v10 = vld [vmem:[#allocation7 + $0x680] sm:$0xff] }
 0x128   :  { %v194_v29 = vpop.f32.mrb[0].mxu0  ;;  %v237_v39 = vpop.f32.mrb[0].mxu1 }
 0x129   :  { %v195_v30 = vadd.f32 %v194_v29, %v99_v25  ;;  %v196_v31 = vpop.f32.mrb[1].mxu0  ;;  %v238_v43 = vadd.f32 %v237_v39, %v107_v32  ;;  %v239_v44 = vpop.f32.mrb[1].mxu1  ;;  %v3374_v29 = vcombine.high %v420_v19, %v424_v20  ;;  %v438_v39 = vld [vmem:[#allocation7 + $0x5a0] sm:$0xff] }
 0x12a   :  { %v197_v33 = vadd.f32 %v196_v31, %v103_v27  ;;  %v198_v34 = vpop.f32.mrb[2].mxu0  ;;  %v240_v50 = vadd.f32 %v239_v44, %v111_v35  ;;  %v241_v51 = vpop.f32.mrb[2].mxu1  ;;  %v430_v31 = vld [vmem:[#allocation7 + $0x560] sm:$0xff] }
 0x12b   :  { %v199_v36 = vadd.f32 %v198_v34, %v99_v25  ;;  %v200_v37 = vpop.f32.mrb[3].mxu0  ;;  %v246_v40 = vmax.f32 %v195_v30, 0.0  ;;  %v248_v53 = vmax.f32 %v238_v43, 0.0  ;;  %v242_v54 = vadd.f32 %v241_v51, %v107_v32  ;;  %v243_v55 = vpop.f32.mrb[3].mxu1  ;;  %v426_v30 = vld [vmem:[#allocation7 + $0x540] sm:$0xff]  ;;  %v428_v32 = vld [vmem:[#allocation7 + $0x550] sm:$0xff] }
 0x12c   :  { %v201_v38 = vadd.f32 %v200_v37, %v103_v27  ;;  %v247_v45 = vmax.f32 %v197_v33, 0.0  ;;  %v249_v57 = vmax.f32 %v240_v50, 0.0  ;;  %v244_v58 = vadd.f32 %v243_v55, %v111_v35  ;;  %v432_v33 = vld [vmem:[#allocation7 + $0x570] sm:$0xff]  ;;  %v450_v55 = vld [vmem:[#allocation7 + $0x600] sm:$0xff] }
 0x12d   :  { %v250_v41 = vmax.f32 %v199_v36, 0.0  ;;  %v252_v62 = vmax.f32 %v242_v54, 0.0  ;;  %v3365_v25 = vcombine.low %v412_v11, %v416_v12  ;;  %v3373_v35 = vcombine.low %v420_v19, %v424_v20  ;;  %v470_v11 = vld [vmem:[#allocation7 + $0x6a0] sm:$0xff]  ;;  %v468_v12 = vld [vmem:[#allocation7 + $0x690] sm:$0xff] }
 0x12e   :  { %v251_v46 = vmax.f32 %v201_v38, 0.0  ;;  %v253_v2 = vmax.f32 %v244_v58, 0.0  ;;  %v3378_v36 = vcombine.high %v426_v30, %v430_v31  ;;  %v3382_v37 = vcombine.high %v428_v32, %v432_v33  ;;  %v434_v38 = vld [vmem:[#allocation7 + $0x580] sm:$0xff]  ;;  %v452_v58 = vld [vmem:[#allocation7 + $0x610] sm:$0xff] }
 0x12f   :  { %v4125_v52 = vpack.c.bf16 %v250_v41, %v246_v40  ;;  %v4133_v3 = vpack.c.bf16 %v252_v62, %v248_v53  ;;  %v436_v40 = vld [vmem:[#allocation7 + $0x590] sm:$0xff]  ;;  %v3377_v42 = vcombine.low %v426_v30, %v430_v31  ;;  %v3381_v43 = vcombine.low %v428_v32, %v432_v33  ;;  %v478_v19 = vld [vmem:[#allocation7 + $0x6e0] sm:$0xff] }
 0x130   :  { %v4127_v56 = vpack.c.bf16 %v251_v46, %v247_v45  ;;  %v4135_v6 = vpack.c.bf16 %v253_v2, %v249_v57  ;;  %v440_v41 = vld [vmem:[#allocation7 + $0x5b0] sm:$0xff]  ;;  %v3386_v44 = vcombine.high %v434_v38, %v438_v39  ;;  %v442_v46 = vld [vmem:[#allocation7 + $0x5c0] sm:$0xff]  ;;  %v3385_v50 = vcombine.low %v434_v38, %v438_v39 }
 0x131   :  { %v3390_v45 = vcombine.high %v436_v40, %v440_v41  ;;  %v3389_v51 = vcombine.low %v436_v40, %v440_v41  ;;  %v3394_v53 = vcombine.high %v442_v46, %v446_v47  ;;  %v3398_v54 = vcombine.high %v444_v48, %v448_v49  ;;  %v454_v57 = vld [vmem:[#allocation7 + $0x620] sm:$0xff]  ;;  %v460_v2 = vld [vmem:[#allocation7 + $0x650] sm:$0xff] }
 0x132   :  { %1868 = vmatprep.mubr.bf16.mxu1 %v4127_v56  ;;  %2040 = vmatprep.mubr.bf16.mxu0 %v4127_v56  ;;  %v3402_v62 = vcombine.high %v450_v55, %v454_v57  ;;  %v476_v20 = vld [vmem:[#allocation7 + $0x6d0] sm:$0xff]  ;;  %v482_v31 = vld [vmem:[#allocation7 + $0x700] sm:$0xff] }
 0x133   :  { %1869 = vmatmul.mubr.bf16.vlgmr.msra.gmra.mrb[4].mxu1 %v4125_v52  ;;  %2041 = vmatmul.mubr.bf16.vlgmr.msra.gmra.mrb[4].mxu0 %v4125_v52  ;;  %v486_v32 = vld [vmem:[#allocation7 + $0x720] sm:$0xff]  ;;  %v484_v33 = vld [vmem:[#allocation7 + $0x710] sm:$0xff] }
 0x134   :  { %1880 = vmatpush1.bf16.msra.mxu1 %v3337_v17  ;;  %2052 = vmatpush1.bf16.msra.mxu0 %v3341_v18  ;;  %v418_v17 = vld [vmem:[#allocation7 + $0x500] sm:$0xff]  ;;  %v492_v41 = vld [vmem:[#allocation7 + $0x750] sm:$0xff] }
 0x135   :  { %1881 = vmatprep.subr.bf16.mxu1 %v3346_v59  ;;  %2053 = vmatprep.subr.bf16.mxu0 %v3350_v60  ;;  %v422_v18 = vld [vmem:[#allocation7 + $0x520] sm:$0xff]  ;;  %v456_v59 = vld [vmem:[#allocation7 + $0x630] sm:$0xff]  ;;  %v3393_v60 = vcombine.low %v442_v46, %v446_v47 }
 0x136   :  { %1911 = vmatprep.mubr.bf16.mxu1 %v4135_v6  ;;  %2083 = vmatprep.mubr.bf16.mxu0 %v4135_v6  ;;  %v3370_v27 = vcombine.high %v418_v17, %v422_v18  ;;  %v3369_v34 = vcombine.low %v418_v17, %v422_v18  ;;  %v3406_v63 = vcombine.high %v452_v58, %v456_v59  ;;  %v474_v18 = vld [vmem:[#allocation7 + $0x6c0] sm:$0xff]  ;;  %v500_v49 = vld [vmem:[#allocation7 + $0x790] sm:$0xff] }
 0x137   :  { %v490_v39 = vld [vmem:[#allocation7 + $0x740] sm:$0xff] }
 0x138   :  { %1882 = vmatpush1.bf16.msra.mxu1 %v3345_v4  ;;  %2054 = vmatpush1.bf16.msra.mxu0 %v3349_v5  ;;  %v464_v4 = vld [vmem:[#allocation7 + $0x670] sm:$0xff]  ;;  %v3401_v5 = vcombine.low %v450_v55, %v454_v57  ;;  %v494_v40 = vld [vmem:[#allocation7 + $0x760] sm:$0xff] }
 0x139   :  { %1883 = vmatprep.subr.bf16.mxu1 %v3354_v7  ;;  %2055 = vmatprep.subr.bf16.mxu0 %v3358_v8  ;;  %v3405_v7 = vcombine.low %v452_v58, %v456_v59  ;;  %v3410_v8 = vcombine.high %v458_v0, %v462_v1  ;;  %v3414_v9 = vcombine.high %v460_v2, %v464_v4  ;;  %v498_v47 = vld [vmem:[#allocation7 + $0x780] sm:$0xff]  ;;  %v508_v59 = vld [vmem:[#allocation7 + $0x7d0] sm:$0xff] }
 0x13a   :  { %v502_v48 = vld [vmem:[#allocation7 + $0x7a0] sm:$0xff] }
 0x13b   :  { %v506_v57 = vld [vmem:[#allocation7 + $0x7c0] sm:$0xff] }
 0x13c   :  { %1884 = vmatpush1.bf16.msra.mxu1 %v3353_v13  ;;  %2056 = vmatpush1.bf16.msra.mxu0 %v3357_v14  ;;  %v472_v13 = vld [vmem:[#allocation7 + $0x6b0] sm:$0xff]  ;;  %v3409_v14 = vcombine.low %v458_v0, %v462_v1  ;;  %v510_v58 = vld [vmem:[#allocation7 + $0x7e0] sm:$0xff]  ;;  %v259_v1 = vld [vmem:[#allocation7 + $0x8] sm:$0xff] }
 0x13d   :  { %1885 = vmatprep.subr.bf16.mxu1 %v3362_v15  ;;  %2057 = vmatprep.subr.bf16.mxu0 %v3366_v16  ;;  %v3413_v15 = vcombine.low %v460_v2, %v464_v4  ;;  %v3418_v16 = vcombine.high %v466_v10, %v470_v11  ;;  %v3422_v17 = vcombine.high %v468_v12, %v472_v13  ;;  %v263_v2 = vld [vmem:[#allocation7 + $0x28] sm:$0xff] }
 0x13e   :  { %v3457_v4 = vcombine.low %v506_v57, %v510_v58 }
 0x140   :  { %1886 = vmatpush1.bf16.msra.mxu1 %v3361_v23  ;;  %2058 = vmatpush1.bf16.msra.mxu0 %v3365_v25  ;;  %v480_v23 = vld [vmem:[#allocation7 + $0x6f0] sm:$0xff]  ;;  %v3417_v25 = vcombine.low %v466_v10, %v470_v11  ;;  %v3211_v10 = vcombine.low %v259_v1, %v263_v2 }
 0x141   :  { %1887 = vmatprep.subr.bf16.mxu1 %v3370_v27  ;;  %2059 = vmatprep.subr.bf16.mxu0 %v3374_v29  ;;  %v3421_v27 = vcombine.low %v468_v12, %v472_v13  ;;  %v3426_v29 = vcombine.high %v474_v18, %v478_v19  ;;  %v3430_v30 = vcombine.high %v476_v20, %v480_v23  ;;  %v275_v12 = vld [vmem:[#allocation7 + $0x88] sm:$0xff] }
 0x142   :  { %v279_v13 = vld [vmem:[#allocation7 + $0xa8] sm:$0xff] }
 0x144   :  { %1888 = vmatpush1.bf16.msra.mxu1 %v3369_v34  ;;  %2060 = vmatpush1.bf16.msra.mxu0 %v3373_v35  ;;  %v488_v34 = vld [vmem:[#allocation7 + $0x730] sm:$0xff]  ;;  %v3425_v35 = vcombine.low %v474_v18, %v478_v19  ;;  %v3227_v18 = vcombine.low %v275_v12, %v279_v13 }
 0x145   :  { %1889 = vmatprep.subr.bf16.mxu1 %v3378_v36  ;;  %2061 = vmatprep.subr.bf16.mxu0 %v3382_v37  ;;  %v3429_v36 = vcombine.low %v476_v20, %v480_v23  ;;  %v3434_v37 = vcombine.high %v482_v31, %v486_v32  ;;  %v3438_v38 = vcombine.high %v484_v33, %v488_v34  ;;  %v291_v20 = vld [vmem:[#allocation7 + $0x108] sm:$0xff] }
 0x146   :  { %v295_v23 = vld [vmem:[#allocation7 + $0x128] sm:$0xff] }
 0x148   :  { %1890 = vmatpush1.bf16.msra.mxu1 %v3377_v42  ;;  %2062 = vmatpush1.bf16.msra.mxu0 %v3381_v43  ;;  %v496_v42 = vld [vmem:[#allocation7 + $0x770] sm:$0xff]  ;;  %v3433_v43 = vcombine.low %v482_v31, %v486_v32  ;;  %v3243_v31 = vcombine.low %v291_v20, %v295_v23 }
 0x149   :  { %1891 = vmatprep.subr.bf16.mxu1 %v3386_v44  ;;  %2063 = vmatprep.subr.bf16.mxu0 %v3390_v45  ;;  %v3437_v44 = vcombine.low %v484_v33, %v488_v34  ;;  %v3442_v45 = vcombine.high %v490_v39, %v494_v40  ;;  %v3446_v46 = vcombine.high %v492_v41, %v496_v42  ;;  %v307_v33 = vld [vmem:[#allocation7 + $0x188] sm:$0xff] }
 0x14a   :  { %v311_v34 = vld [vmem:[#allocation7 + $0x1a8] sm:$0xff] }
 0x14c   :  { %1892 = vmatpush1.bf16.msra.mxu1 %v3385_v50  ;;  %2064 = vmatpush1.bf16.msra.mxu0 %v3389_v51  ;;  %v504_v50 = vld [vmem:[#allocation7 + $0x7b0] sm:$0xff]  ;;  %v3441_v51 = vcombine.low %v490_v39, %v494_v40  ;;  %v3259_v39 = vcombine.low %v307_v33, %v311_v34 }
 0x14d   :  { %1893 = vmatprep.subr.bf16.mxu1 %v3394_v53  ;;  %2065 = vmatprep.subr.bf16.mxu0 %v3398_v54  ;;  %v3445_v53 = vcombine.low %v492_v41, %v496_v42  ;;  %v3450_v54 = vcombine.high %v498_v47, %v502_v48  ;;  %v3454_v55 = vcombine.high %v500_v49, %v504_v50  ;;  %v323_v41 = vld [vmem:[#allocation7 + $0x208] sm:$0xff] }
 0x14e   :  { %v327_v42 = vld [vmem:[#allocation7 + $0x228] sm:$0xff] }
 0x150   :  { %1894 = vmatpush1.bf16.msra.mxu1 %v3393_v60  ;;  %2066 = vmatpush1.bf16.msra.mxu0 %v3397_v61  ;;  %v512_v60 = vld [vmem:[#allocation7 + $0x7f0] sm:$0xff]  ;;  %v3449_v61 = vcombine.low %v498_v47, %v502_v48  ;;  %v3667_v47 = vld [vmem:[#allocation8 + $0x4] ss:$8 sps:$4 sm:$0xff]   ;;  %v3275_v48 = vcombine.low %v323_v41, %v327_v42 }
 0x151   :  { %1895 = vmatprep.subr.bf16.mxu1 %v3402_v62  ;;  %2067 = vmatprep.subr.bf16.mxu0 %v3406_v63  ;;  %v3453_v62 = vcombine.low %v500_v49, %v504_v50  ;;  %v3458_v63 = vcombine.high %v506_v57, %v510_v58  ;;  %v3462_v0 = vcombine.high %v508_v59, %v512_v60  ;;  %v3665_v49 = vld [vmem:[#allocation8] ss:$8 sps:$4 sm:$0xff]   ;;  %v3668_v57 = vld [vmem:[#allocation8 + $0x10] ss:$8 sps:$4 sm:$0xff]  }
 0x154   :  { %1896 = vmatpush1.bf16.msra.mxu1 %v3401_v5  ;;  %2068 = vmatpush1.bf16.msra.mxu0 %v3405_v7  ;;  %v3461_v5 = vcombine.low %v508_v59, %v512_v60  ;;  %v3212_v7 = vcombine.high %v259_v1, %v263_v2  ;;  %v347_v59 = vld [vmem:[#allocation7 + $0x2c8] sm:$0xff] }
 0x155   :  { %1897 = vmatprep.subr.bf16.mxu1 %v3410_v8  ;;  %2069 = vmatprep.subr.bf16.mxu0 %v3414_v9  ;;  %v267_v8 = vld [vmem:[#allocation7 + $0x48] sm:$0xff] }
 0x156   :  { %v271_v9 = vld [vmem:[#allocation7 + $0x68] sm:$0xff] }
 0x157   :  { %v3220_v11 = vcombine.high %v267_v8, %v271_v9  ;;  %v351_v60 = vld [vmem:[#allocation7 + $0x2e8] sm:$0xff] }
 0x158   :  { %1898 = vmatpush1.bf16.msra.mxu1 %v3409_v14  ;;  %2070 = vmatpush1.bf16.msra.mxu0 %v3413_v15  ;;  %v3219_v14 = vcombine.low %v267_v8, %v271_v9  ;;  %v3228_v15 = vcombine.high %v275_v12, %v279_v13  ;;  %v355_v1 = vld [vmem:[#allocation7 + $0x308] sm:$0xff] }
 0x159   :  { %1899 = vmatprep.subr.bf16.mxu1 %v3418_v16  ;;  %2071 = vmatprep.subr.bf16.mxu0 %v3422_v17  ;;  %v283_v16 = vld [vmem:[#allocation7 + $0xc8] sm:$0xff] }
 0x15a   :  { %v287_v17 = vld [vmem:[#allocation7 + $0xe8] sm:$0xff] }
 0x15b   :  { %v3236_v19 = vcombine.high %v283_v16, %v287_v17  ;;  %v359_v2 = vld [vmem:[#allocation7 + $0x328] sm:$0xff] }
 0x15c   :  { %1900 = vmatpush1.bf16.msra.mxu1 %v3417_v25  ;;  %2072 = vmatpush1.bf16.msra.mxu0 %v3421_v27  ;;  %v3235_v25 = vcombine.low %v283_v16, %v287_v17  ;;  %v3244_v27 = vcombine.high %v291_v20, %v295_v23  ;;  %v3308_v8 = vcombine.high %v355_v1, %v359_v2  ;;  %v363_v9 = vld [vmem:[#allocation7 + $0x348] sm:$0xff]  ;;  %v3682_v17 = vld [vmem:[#allocation8 + $0x54] ss:$8 sps:$4 sm:$0xff]  }
 0x15d   :  { %1901 = vmatprep.subr.bf16.mxu1 %v3426_v29  ;;  %2073 = vmatprep.subr.bf16.mxu0 %v3430_v30  ;;  %v299_v29 = vld [vmem:[#allocation7 + $0x148] sm:$0xff]  ;;  %v3307_v12 = vcombine.low %v355_v1, %v359_v2 }
 0x15e   :  { %v303_v30 = vld [vmem:[#allocation7 + $0x168] sm:$0xff] }
 0x15f   :  { %v3252_v32 = vcombine.high %v299_v29, %v303_v30  ;;  %v3677_v13 = vld [vmem:[#allocation8 + $0x40] ss:$8 sps:$4 sm:$0xff]   ;;  %v3703_v2 = vld [vmem:[#allocation8 + $0xc4] ss:$8 sps:$4 sm:$0xff]  }
 0x160   :  { %1902 = vmatpush1.bf16.msra.mxu1 %v3425_v35  ;;  %2074 = vmatpush1.bf16.msra.mxu0 %v3429_v36  ;;  %v3251_v35 = vcombine.low %v299_v29, %v303_v30  ;;  %v3260_v36 = vcombine.high %v307_v33, %v311_v34  ;;  %v375_v16 = vld [vmem:[#allocation7 + $0x3a8] sm:$0xff]  ;;  %v3688_v34 = vld [vmem:[#allocation8 + $0x74] ss:$8 sps:$4 sm:$0xff]  }
 0x161   :  { %1903 = vmatprep.subr.bf16.mxu1 %v3434_v37  ;;  %2075 = vmatprep.subr.bf16.mxu0 %v3438_v38  ;;  %v315_v37 = vld [vmem:[#allocation7 + $0x1c8] sm:$0xff] }
 0x162   :  { %v319_v38 = vld [vmem:[#allocation7 + $0x1e8] sm:$0xff] }
 0x163   :  { %v3268_v40 = vcombine.high %v315_v37, %v319_v38  ;;  %v379_v23 = vld [vmem:[#allocation7 + $0x3c8] sm:$0xff] }
 0x164   :  { %1904 = vmatpush1.bf16.msra.mxu1 %v3433_v43  ;;  %2076 = vmatpush1.bf16.msra.mxu0 %v3437_v44  ;;  %v3267_v43 = vcombine.low %v315_v37, %v319_v38  ;;  %v3276_v44 = vcombine.high %v323_v41, %v327_v42  ;;  %v3683_v30 = vld [vmem:[#allocation8 + $0x60] ss:$8 sps:$4 sm:$0xff]  }
 0x165   :  { %1905 = vmatprep.subr.bf16.mxu1 %v3442_v45  ;;  %2077 = vmatprep.subr.bf16.mxu0 %v3446_v46  ;;  %v331_v45 = vld [vmem:[#allocation7 + $0x248] sm:$0xff] }
 0x166   :  { %v335_v46 = vld [vmem:[#allocation7 + $0x268] sm:$0xff] }
 0x167   :  { %v3284_v50 = vcombine.high %v331_v45, %v335_v46  ;;  %v391_v33 = vld [vmem:[#allocation7 + $0x428] sm:$0xff] }
 0x168   :  { %1906 = vmatpush1.bf16.msra.mxu1 %v3441_v51  ;;  %2078 = vmatpush1.bf16.msra.mxu0 %v3445_v53  ;;  %v339_v51 = vld [vmem:[#allocation7 + $0x288] sm:$0xff] }
 0x169   :  { %1907 = vmatprep.subr.bf16.mxu1 %v3450_v54  ;;  %2079 = vmatprep.subr.bf16.mxu0 %v3454_v55  ;;  %v343_v53 = vld [vmem:[#allocation7 + $0x2a8] sm:$0xff]  ;;  %v3670_v54 = vld [vmem:[#allocation8 + $0x14] ss:$8 sps:$4 sm:$0xff]   ;;  %v3283_v55 = vcombine.low %v331_v45, %v335_v46 }
 0x16a   :  { %v3292_v58 = vcombine.high %v339_v51, %v343_v53  ;;  %v395_v38 = vld [vmem:[#allocation7 + $0x448] sm:$0xff]  ;;  %v3694_v46 = vld [vmem:[#allocation8 + $0x94] ss:$8 sps:$4 sm:$0xff]  }
 0x16b   :  { %v3689_v42 = vld [vmem:[#allocation8 + $0x80] ss:$8 sps:$4 sm:$0xff]  }
 0x16c   :  { %1908 = vmatpush1.bf16.msra.mxu1 %v3449_v61  ;;  %2080 = vmatpush1.bf16.msra.mxu0 %v3453_v62  ;;  %v3673_v61 = vld [vmem:[#allocation8 + $0x24] ss:$8 sps:$4 sm:$0xff]   ;;  %v3291_v62 = vcombine.low %v339_v51, %v343_v53 }
 0x16d   :  { %1909 = vmatprep.subr.bf16.mxu1 %v3458_v63  ;;  %2081 = vmatprep.subr.bf16.mxu0 %v3462_v0  ;;  %v3671_v63 = vld [vmem:[#allocation8 + $0x20] ss:$8 sps:$4 sm:$0xff]   ;;  %v3300_v0 = vcombine.high %v347_v59, %v351_v60  ;;  %v3697_v53 = vld [vmem:[#allocation8 + $0xa4] ss:$8 sps:$4 sm:$0xff]  }
 0x16e   :  { %v407_v45 = vld [vmem:[#allocation7 + $0x4a8] sm:$0xff] }
 0x16f   :  { %v415_v51 = vld [vmem:[#allocation7 + $0x4e8] sm:$0xff] }
 0x170   :  { %1910 = vmatpush1.bf16.msra.mxu1 %v3457_v4  ;;  %2082 = vmatpush1.bf16.msra.mxu0 %v3461_v5  ;;  %v3676_v4 = vld [vmem:[#allocation8 + $0x34] ss:$8 sps:$4 sm:$0xff]   ;;  %v3299_v5 = vcombine.low %v347_v59, %v351_v60  ;;  %v423_v59 = vld [vmem:[#allocation7 + $0x528] sm:$0xff] }
 0x171   :  { %1922 = vmatprep.subr.bf16.mxu1 %v3212_v7  ;;  %2984 = vmatprep.subr.bf16.mxu0 %v3667_v47  ;;  %v3674_v7 = vld [vmem:[#allocation8 + $0x30] ss:$8 sps:$4 sm:$0xff]   ;;  %v3700_v60 = vld [vmem:[#allocation8 + $0xb4] ss:$8 sps:$4 sm:$0xff]   ;;  %v431_v1 = vld [vmem:[#allocation7 + $0x568] sm:$0xff] }
 0x173   :  { %1912 = vmatmul.mubr.bf16.vlgmr.msra.gmra.mrb[4].mxu1 %v4133_v3  ;;  %2084 = vmatmul.mubr.bf16.vlgmr.msra.gmra.mrb[4].mxu0 %v4133_v3 }
 0x174   :  { %1923 = vmatpush1.bf16.msra.mxu1 %v3211_v10  ;;  %1954 = vmatprep.mubr.bf16.mxu1 %v4127_v56  ;;  %v367_v10 = vld [vmem:[#allocation7 + $0x368] sm:$0xff] }
 0x175   :  { %1924 = vmatprep.subr.bf16.mxu1 %v3220_v11  ;;  %2985 = vmatpush1.bf16.msra.mxu0 %v3665_v49  ;;  %v3679_v11 = vld [vmem:[#allocation8 + $0x44] ss:$8 sps:$4 sm:$0xff]  }
 0x176   :  { %2986 = vmatprep.subr.bf16.mxu0 %v3670_v54 }
 0x178   :  { %1925 = vmatpush1.bf16.msra.mxu1 %v3219_v14  ;;  %v3316_v14 = vcombine.high %v363_v9, %v367_v10 }
 0x179   :  { %1926 = vmatprep.subr.bf16.mxu1 %v3228_v15  ;;  %2987 = vmatpush1.bf16.msra.mxu0 %v3668_v57  ;;  %v371_v15 = vld [vmem:[#allocation7 + $0x388] sm:$0xff] }
 0x17a   :  { %2988 = vmatprep.subr.bf16.mxu0 %v3673_v61  ;;  %v3324_v20 = vcombine.high %v371_v15, %v375_v16  ;;  %v3323_v29 = vcombine.low %v371_v15, %v375_v16  ;;  %v447_v15 = vld [vmem:[#allocation7 + $0x5e8] sm:$0xff] }
 0x17b   :  { %v3709_v16 = vld [vmem:[#allocation8 + $0xe4] ss:$8 sps:$4 sm:$0xff]  }
 0x17c   :  { %1927 = vmatpush1.bf16.msra.mxu1 %v3227_v18  ;;  %v3315_v18 = vcombine.low %v363_v9, %v367_v10  ;;  %v439_v9 = vld [vmem:[#allocation7 + $0x5a8] sm:$0xff]  ;;  %v3706_v10 = vld [vmem:[#allocation8 + $0xd4] ss:$8 sps:$4 sm:$0xff]  }
 0x17d   :  { %1928 = vmatprep.subr.bf16.mxu1 %v3236_v19  ;;  %2989 = vmatpush1.bf16.msra.mxu0 %v3671_v63  ;;  %v3680_v19 = vld [vmem:[#allocation8 + $0x50] ss:$8 sps:$4 sm:$0xff]  }
 0x17e   :  { %2990 = vmatprep.subr.bf16.mxu0 %v3676_v4 }
 0x180   :  { %1929 = vmatpush1.bf16.msra.mxu1 %v3235_v25  ;;  %v383_v25 = vld [vmem:[#allocation7 + $0x3e8] sm:$0xff] }
 0x181   :  { %1930 = vmatprep.subr.bf16.mxu1 %v3244_v27  ;;  %2991 = vmatpush1.bf16.msra.mxu0 %v3674_v7  ;;  %v3685_v27 = vld [vmem:[#allocation8 + $0x64] ss:$8 sps:$4 sm:$0xff]  }
 0x182   :  { %2992 = vmatprep.subr.bf16.mxu0 %v3679_v11 }
 0x184   :  { %1931 = vmatpush1.bf16.msra.mxu1 %v3243_v31  ;;  %v3332_v31 = vcombine.high %v379_v23, %v383_v25 }
 0x185   :  { %1932 = vmatprep.subr.bf16.mxu1 %v3252_v32  ;;  %2993 = vmatpush1.bf16.msra.mxu0 %v3677_v13  ;;  %v387_v32 = vld [vmem:[#allocation7 + $0x408] sm:$0xff] }
 0x186   :  { %2994 = vmatprep.subr.bf16.mxu0 %v3682_v17  ;;  %v3340_v37 = vcombine.high %v387_v32, %v391_v33  ;;  %v3339_v41 = vcombine.low %v387_v32, %v391_v33  ;;  %v463_v32 = vld [vmem:[#allocation7 + $0x668] sm:$0xff] }
 0x188   :  { %1933 = vmatpush1.bf16.msra.mxu1 %v3251_v35  ;;  %v3331_v35 = vcombine.low %v379_v23, %v383_v25  ;;  %v455_v23 = vld [vmem:[#allocation7 + $0x628] sm:$0xff]  ;;  %v3712_v25 = vld [vmem:[#allocation8 + $0xf4] ss:$8 sps:$4 sm:$0xff]  }
 0x189   :  { %1934 = vmatprep.subr.bf16.mxu1 %v3260_v36  ;;  %2995 = vmatpush1.bf16.msra.mxu0 %v3680_v19  ;;  %v3686_v36 = vld [vmem:[#allocation8 + $0x70] ss:$8 sps:$4 sm:$0xff]  }
 0x18a   :  { %2996 = vmatprep.subr.bf16.mxu0 %v3685_v27 }
 0x18c   :  { %1935 = vmatpush1.bf16.msra.mxu1 %v3259_v39  ;;  %v399_v39 = vld [vmem:[#allocation7 + $0x468] sm:$0xff] }
 0x18d   :  { %1936 = vmatprep.subr.bf16.mxu1 %v3268_v40  ;;  %2997 = vmatpush1.bf16.msra.mxu0 %v3683_v30  ;;  %v3691_v40 = vld [vmem:[#allocation8 + $0x84] ss:$8 sps:$4 sm:$0xff]   ;;  %v3347_v47 = vcombine.low %v395_v38, %v399_v39 }
 0x18e   :  { %2998 = vmatprep.subr.bf16.mxu0 %v3688_v34 }
 0x190   :  { %1937 = vmatpush1.bf16.msra.mxu1 %v3267_v43  ;;  %v3348_v43 = vcombine.high %v395_v38, %v399_v39  ;;  %v475_v39 = vld [vmem:[#allocation7 + $0x6c8] sm:$0xff] }
 0x191   :  { %1938 = vmatprep.subr.bf16.mxu1 %v3276_v44  ;;  %2999 = vmatpush1.bf16.msra.mxu0 %v3686_v36  ;;  %v403_v44 = vld [vmem:[#allocation7 + $0x488] sm:$0xff] }
 0x192   :  { %3000 = vmatprep.subr.bf16.mxu0 %v3691_v40  ;;  %v3356_v49 = vcombine.high %v403_v44, %v407_v45  ;;  %v3355_v54 = vcombine.low %v403_v44, %v407_v45  ;;  %v471_v36 = vld [vmem:[#allocation7 + $0x6a8] sm:$0xff] }
 0x193   :  { %v479_v40 = vld [vmem:[#allocation7 + $0x6e8] sm:$0xff] }
 0x194   :  { %1939 = vmatpush1.bf16.msra.mxu1 %v3275_v48  ;;  %v3692_v48 = vld [vmem:[#allocation8 + $0x90] ss:$8 sps:$4 sm:$0xff]   ;;  %v487_v44 = vld [vmem:[#allocation7 + $0x728] sm:$0xff]  ;;  %v3427_v45 = vcombine.low %v475_v39, %v479_v40 }
 0x195   :  { %1940 = vmatprep.subr.bf16.mxu1 %v3284_v50  ;;  %3001 = vmatpush1.bf16.msra.mxu0 %v3689_v42  ;;  %v411_v50 = vld [vmem:[#allocation7 + $0x4c8] sm:$0xff]  ;;  %v3428_v42 = vcombine.high %v475_v39, %v479_v40  ;;  %v333_v40 = vld [vmem:[#allocation7 + $0x258] sm:$0xff] }
 0x196   :  { %3002 = vmatprep.subr.bf16.mxu0 %v3694_v46  ;;  %v3364_v57 = vcombine.high %v411_v50, %v415_v51  ;;  %v3363_v61 = vcombine.low %v411_v50, %v415_v51  ;;  %v499_v51 = vld [vmem:[#allocation7 + $0x788] sm:$0xff] }
 0x198   :  { %1941 = vmatpush1.bf16.msra.mxu1 %v3283_v55  ;;  %v3695_v55 = vld [vmem:[#allocation8 + $0xa0] ss:$8 sps:$4 sm:$0xff]  }
 0x199   :  { %1942 = vmatprep.subr.bf16.mxu1 %v3292_v58  ;;  %3003 = vmatpush1.bf16.msra.mxu0 %v3692_v48  ;;  %v419_v58 = vld [vmem:[#allocation7 + $0x508] sm:$0xff] }
 0x19a   :  { %3004 = vmatprep.subr.bf16.mxu0 %v3697_v53  ;;  %v3372_v63 = vcombine.high %v419_v58, %v423_v59  ;;  %v3371_v4 = vcombine.low %v419_v58, %v423_v59  ;;  %v495_v48 = vld [vmem:[#allocation7 + $0x768] sm:$0xff] }
 0x19b   :  { %v503_v53 = vld [vmem:[#allocation7 + $0x7a8] sm:$0xff] }
 0x19c   :  { %1943 = vmatpush1.bf16.msra.mxu1 %v3291_v62  ;;  %v3698_v62 = vld [vmem:[#allocation8 + $0xb0] ss:$8 sps:$4 sm:$0xff]   ;;  %v511_v58 = vld [vmem:[#allocation7 + $0x7e8] sm:$0xff]  ;;  %v3451_v59 = vcombine.low %v499_v51, %v503_v53 }
 0x19d   :  { %1944 = vmatprep.subr.bf16.mxu1 %v3300_v0  ;;  %3005 = vmatpush1.bf16.msra.mxu0 %v3695_v55  ;;  %v427_v0 = vld [vmem:[#allocation7 + $0x548] sm:$0xff]  ;;  %v3452_v55 = vcombine.high %v499_v51, %v503_v53  ;;  %v357_v53 = vld [vmem:[#allocation7 + $0x318] sm:$0xff] }
 0x19e   :  { %3006 = vmatprep.subr.bf16.mxu0 %v3700_v60  ;;  %v3380_v7 = vcombine.high %v427_v0, %v431_v1  ;;  %v3379_v11 = vcombine.low %v427_v0, %v431_v1  ;;  %v269_v1 = vld [vmem:[#allocation7 + $0x58] sm:$0xff] }
 0x1a0   :  { %1945 = vmatpush1.bf16.msra.mxu1 %v3299_v5  ;;  %v3701_v5 = vld [vmem:[#allocation8 + $0xc0] ss:$8 sps:$4 sm:$0xff]  }
 0x1a1   :  { %1946 = vmatprep.subr.bf16.mxu1 %v3308_v8  ;;  %3007 = vmatpush1.bf16.msra.mxu0 %v3698_v62  ;;  %v435_v8 = vld [vmem:[#allocation7 + $0x588] sm:$0xff]  ;;  %v265_v62 = vld [vmem:[#allocation7 + $0x38] sm:$0xff] }
 0x1a2   :  { %3008 = vmatprep.subr.bf16.mxu0 %v3703_v2  ;;  %v3388_v13 = vcombine.high %v435_v8, %v439_v9  ;;  %v3387_v17 = vcombine.low %v435_v8, %v439_v9  ;;  %v273_v2 = vld [vmem:[#allocation7 + $0x78] sm:$0xff]  ;;  %v3715_v9 = vld [vmem:[#allocation8 + $0x104] ss:$8 sps:$4 sm:$0xff]  }
 0x1a3   :  { %v281_v8 = vld [vmem:[#allocation7 + $0xb8] sm:$0xff] }
 0x1a4   :  { %1947 = vmatpush1.bf16.msra.mxu1 %v3307_v12  ;;  %v3704_v12 = vld [vmem:[#allocation8 + $0xd0] ss:$8 sps:$4 sm:$0xff]  }
 0x1a5   :  { %1948 = vmatprep.subr.bf16.mxu1 %v3316_v14  ;;  %3009 = vmatpush1.bf16.msra.mxu0 %v3701_v5  ;;  %v443_v14 = vld [vmem:[#allocation7 + $0x5c8] sm:$0xff]  ;;  %v3224_v5 = vcombine.high %v269_v1, %v273_v2 }
 0x1a6   :  { %3010 = vmatprep.subr.bf16.mxu0 %v3706_v10  ;;  %v3396_v19 = vcombine.high %v443_v14, %v447_v15  ;;  %v3395_v27 = vcombine.low %v443_v14, %v447_v15  ;;  %v3223_v10 = vcombine.low %v269_v1, %v273_v2  ;;  %v381_v2 = vld [vmem:[#allocation7 + $0x3d8] sm:$0xff] }
 0x1a8   :  { %1949 = vmatpush1.bf16.msra.mxu1 %v3315_v18  ;;  %v3707_v18 = vld [vmem:[#allocation8 + $0xe0] ss:$8 sps:$4 sm:$0xff]  }
 0x1a9   :  { %1950 = vmatprep.subr.bf16.mxu1 %v3324_v20  ;;  %3011 = vmatpush1.bf16.msra.mxu0 %v3704_v12  ;;  %v451_v20 = vld [vmem:[#allocation7 + $0x608] sm:$0xff]  ;;  %v285_v12 = vld [vmem:[#allocation7 + $0xd8] sm:$0xff] }
 0x1aa   :  { %3012 = vmatprep.subr.bf16.mxu0 %v3709_v16  ;;  %v3404_v30 = vcombine.high %v451_v20, %v455_v23  ;;  %v3403_v33 = vcombine.low %v451_v20, %v455_v23  ;;  %v293_v16 = vld [vmem:[#allocation7 + $0x118] sm:$0xff] }
 0x1ab   :  { %v301_v20 = vld [vmem:[#allocation7 + $0x158] sm:$0xff] }
 0x1ac   :  { %1951 = vmatpush1.bf16.msra.mxu1 %v3323_v29  ;;  %v3710_v29 = vld [vmem:[#allocation8 + $0xf0] ss:$8 sps:$4 sm:$0xff]  }
 0x1ad   :  { %1952 = vmatprep.subr.bf16.mxu1 %v3332_v31  ;;  %3013 = vmatpush1.bf16.msra.mxu0 %v3707_v18  ;;  %v459_v31 = vld [vmem:[#allocation7 + $0x648] sm:$0xff]  ;;  %v305_v23 = vld [vmem:[#allocation7 + $0x178] sm:$0xff] }
 0x1ae   :  { %3014 = vmatprep.subr.bf16.mxu0 %v3712_v25  ;;  %v3412_v34 = vcombine.high %v459_v31, %v463_v32  ;;  %v3256_v25 = vcombine.high %v301_v20, %v305_v23 }
 0x1b0   :  { %1953 = vmatpush1.bf16.msra.mxu1 %v3331_v35  ;;  %v467_v35 = vld [vmem:[#allocation7 + $0x688] sm:$0xff] }
 0x1b1   :  { %1965 = vmatprep.subr.bf16.mxu1 %v3340_v37  ;;  %3015 = vmatpush1.bf16.msra.mxu0 %v3710_v29  ;;  %v3411_v37 = vcombine.low %v459_v31, %v463_v32  ;;  %v3420_v38 = vcombine.high %v467_v35, %v471_v36  ;;  %v313_v29 = vld [vmem:[#allocation7 + $0x1b8] sm:$0xff] }
 0x1b2   :  { %3027 = vmatprep.subr.bf16.mxu0 %v3715_v9  ;;  %v317_v32 = vld [vmem:[#allocation7 + $0x1d8] sm:$0xff] }
 0x1b3   :  { %1955 = vmatmul.mubr.bf16.vlgmr.msra.gmra.mrb[8].mxu1 %v4125_v52  ;;  %v393_v9 = vld [vmem:[#allocation7 + $0x438] sm:$0xff] }
 0x1b4   :  { %1966 = vmatpush1.bf16.msra.mxu1 %v3339_v41  ;;  %1997 = vmatprep.mubr.bf16.mxu1 %v4135_v6  ;;  %v3419_v41 = vcombine.low %v467_v35, %v471_v36  ;;  %v325_v36 = vld [vmem:[#allocation7 + $0x218] sm:$0xff] }
 0x1b5   :  { %1967 = vmatprep.subr.bf16.mxu1 %v3348_v43  ;;  %v483_v43 = vld [vmem:[#allocation7 + $0x708] sm:$0xff] }
 0x1b6   :  { %v3436_v46 = vcombine.high %v483_v43, %v487_v44 }
 0x1b8   :  { %1968 = vmatpush1.bf16.msra.mxu1 %v3347_v47  ;;  %v491_v47 = vld [vmem:[#allocation7 + $0x748] sm:$0xff] }
 0x1b9   :  { %1969 = vmatprep.subr.bf16.mxu1 %v3356_v49  ;;  %v3435_v49 = vcombine.low %v483_v43, %v487_v44  ;;  %v3444_v50 = vcombine.high %v491_v47, %v495_v48  ;;  %v341_v44 = vld [vmem:[#allocation7 + $0x298] sm:$0xff] }
 0x1bc   :  { %1970 = vmatpush1.bf16.msra.mxu1 %v3355_v54  ;;  %v3443_v54 = vcombine.low %v491_v47, %v495_v48  ;;  %v349_v48 = vld [vmem:[#allocation7 + $0x2d8] sm:$0xff] }
 0x1bd   :  { %1971 = vmatprep.subr.bf16.mxu1 %v3364_v57  ;;  %v507_v57 = vld [vmem:[#allocation7 + $0x7c8] sm:$0xff] }
 0x1be   :  { %v3460_v60 = vcombine.high %v507_v57, %v511_v58 }
 0x1c0   :  { %1972 = vmatpush1.bf16.msra.mxu1 %v3363_v61  ;;  %v261_v61 = vld [vmem:[#allocation7 + $0x18] sm:$0xff] }
 0x1c1   :  { %1973 = vmatprep.subr.bf16.mxu1 %v3372_v63  ;;  %v3459_v63 = vcombine.low %v507_v57, %v511_v58  ;;  %v3216_v0 = vcombine.high %v261_v61, %v265_v62  ;;  %v365_v58 = vld [vmem:[#allocation7 + $0x358] sm:$0xff] }
 0x1c4   :  { %1974 = vmatpush1.bf16.msra.mxu1 %v3371_v4  ;;  %v3215_v4 = vcombine.low %v261_v61, %v265_v62  ;;  %v373_v62 = vld [vmem:[#allocation7 + $0x398] sm:$0xff] }
 0x1c5   :  { %1975 = vmatprep.subr.bf16.mxu1 %v3380_v7  ;;  %v277_v7 = vld [vmem:[#allocation7 + $0x98] sm:$0xff] }
 0x1c6   :  { %v3231_v14 = vcombine.low %v277_v7, %v281_v8 }
 0x1c8   :  { %1976 = vmatpush1.bf16.msra.mxu1 %v3379_v11  ;;  %v3232_v11 = vcombine.high %v277_v7, %v281_v8  ;;  %v389_v8 = vld [vmem:[#allocation7 + $0x418] sm:$0xff] }
 0x1c9   :  { %1977 = vmatprep.subr.bf16.mxu1 %v3388_v13  ;;  %v289_v13 = vld [vmem:[#allocation7 + $0xf8] sm:$0xff] }
 0x1ca   :  { %v3240_v15 = vcombine.high %v285_v12, %v289_v13  ;;  %v3239_v18 = vcombine.low %v285_v12, %v289_v13  ;;  %v397_v12 = vld [vmem:[#allocation7 + $0x458] sm:$0xff] }
 0x1cb   :  { %v401_v13 = vld [vmem:[#allocation7 + $0x478] sm:$0xff] }
 0x1cc   :  { %1978 = vmatpush1.bf16.msra.mxu1 %v3387_v17  ;;  %v297_v17 = vld [vmem:[#allocation7 + $0x138] sm:$0xff] }
 0x1cd   :  { %1979 = vmatprep.subr.bf16.mxu1 %v3396_v19  ;;  %v3248_v19 = vcombine.high %v293_v16, %v297_v17 }
 0x1d0   :  { %1980 = vmatpush1.bf16.msra.mxu1 %v3395_v27  ;;  %v309_v27 = vld [vmem:[#allocation7 + $0x198] sm:$0xff] }
 0x1d1   :  { %1981 = vmatprep.subr.bf16.mxu1 %v3404_v30  ;;  %v3255_v30 = vcombine.low %v301_v20, %v305_v23  ;;  %v3264_v31 = vcombine.high %v309_v27, %v313_v29  ;;  %v413_v20 = vld [vmem:[#allocation7 + $0x4d8] sm:$0xff] }
 0x1d2   :  { %v417_v23 = vld [vmem:[#allocation7 + $0x4f8] sm:$0xff] }
 0x1d4   :  { %1982 = vmatpush1.bf16.msra.mxu1 %v3403_v33  ;;  %v321_v33 = vld [vmem:[#allocation7 + $0x1f8] sm:$0xff] }
 0x1d5   :  { %1983 = vmatprep.subr.bf16.mxu1 %v3412_v34  ;;  %v3263_v34 = vcombine.low %v309_v27, %v313_v29  ;;  %v3272_v35 = vcombine.high %v317_v32, %v321_v33  ;;  %v421_v27 = vld [vmem:[#allocation7 + $0x518] sm:$0xff] }
 0x1d6   :  { %v425_v29 = vld [vmem:[#allocation7 + $0x538] sm:$0xff] }
 0x1d8   :  { %1984 = vmatpush1.bf16.msra.mxu1 %v3411_v37  ;;  %v329_v37 = vld [vmem:[#allocation7 + $0x238] sm:$0xff] }
 0x1d9   :  { %1985 = vmatprep.subr.bf16.mxu1 %v3420_v38  ;;  %v3271_v38 = vcombine.low %v317_v32, %v321_v33  ;;  %v3280_v39 = vcombine.high %v325_v36, %v329_v37  ;;  %v429_v32 = vld [vmem:[#allocation7 + $0x558] sm:$0xff]  ;;  %v534_v33 = vsub.s32 4, %v4106_v21 }
 0x1dc   :  { %1986 = vmatpush1.bf16.msra.mxu1 %v3419_v41  ;;  %v337_v41 = vld [vmem:[#allocation7 + $0x278] sm:$0xff] }
 0x1dd   :  { %1987 = vmatprep.subr.bf16.mxu1 %v3428_v42  ;;  %v3279_v42 = vcombine.low %v325_v36, %v329_v37  ;;  %v3288_v43 = vcombine.high %v333_v40, %v337_v41  ;;  %v437_v37 = vld [vmem:[#allocation7 + $0x598] sm:$0xff] }
 0x1e0   :  { %1988 = vmatpush1.bf16.msra.mxu1 %v3427_v45  ;;  %v345_v45 = vld [vmem:[#allocation7 + $0x2b8] sm:$0xff] }
 0x1e1   :  { %1989 = vmatprep.subr.bf16.mxu1 %v3436_v46  ;;  %v3287_v46 = vcombine.low %v333_v40, %v337_v41  ;;  %v3296_v47 = vcombine.high %v341_v44, %v345_v45 }
 0x1e4   :  { %1990 = vmatpush1.bf16.msra.mxu1 %v3435_v49  ;;  %v353_v49 = vld [vmem:[#allocation7 + $0x2f8] sm:$0xff] }
 0x1e5   :  { %1991 = vmatprep.subr.bf16.mxu1 %v3444_v50  ;;  %v3295_v50 = vcombine.low %v341_v44, %v345_v45  ;;  %v3304_v51 = vcombine.high %v349_v48, %v353_v49 }
 0x1e8   :  { %1992 = vmatpush1.bf16.msra.mxu1 %v3443_v54  ;;  %v361_v54 = vld [vmem:[#allocation7 + $0x338] sm:$0xff] }
 0x1e9   :  { %1993 = vmatprep.subr.bf16.mxu1 %v3452_v55  ;;  %v3303_v55 = vcombine.low %v349_v48, %v353_v49  ;;  %v3312_v57 = vcombine.high %v357_v53, %v361_v54  ;;  %v449_v48 = vld [vmem:[#allocation7 + $0x5f8] sm:$0xff] }
 0x1ec   :  { %1994 = vmatpush1.bf16.msra.mxu1 %v3451_v59  ;;  %v369_v59 = vld [vmem:[#allocation7 + $0x378] sm:$0xff] }
 0x1ed   :  { %1995 = vmatprep.subr.bf16.mxu1 %v3460_v60  ;;  %v3311_v60 = vcombine.low %v357_v53, %v361_v54  ;;  %v3320_v61 = vcombine.high %v365_v58, %v369_v59 }
 0x1f0   :  { %1996 = vmatpush1.bf16.msra.mxu1 %v3459_v63  ;;  %v377_v63 = vld [vmem:[#allocation7 + $0x3b8] sm:$0xff] }
 0x1f1   :  { %2094 = vmatprep.subr.bf16.mxu1 %v3216_v0  ;;  %v3319_v0 = vcombine.low %v365_v58, %v369_v59  ;;  %v3328_v1 = vcombine.high %v373_v62, %v377_v63 }
 0x1f3   :  { %1998 = vmatmul.mubr.bf16.vlgmr.msra.gmra.mrb[8].mxu1 %v4133_v3 }
 0x1f4   :  { %2095 = vmatpush1.bf16.msra.mxu1 %v3215_v4  ;;  %2126 = vmatprep.mubr.bf16.mxu1 %v4127_v56  ;;  %v3247_v56 = vcombine.low %v293_v16, %v297_v17  ;;  %v385_v4 = vld [vmem:[#allocation7 + $0x3f8] sm:$0xff] }
 0x1f5   :  { %2096 = vmatprep.subr.bf16.mxu1 %v3224_v5  ;;  %v3327_v5 = vcombine.low %v373_v62, %v377_v63  ;;  %v3336_v7 = vcombine.high %v381_v2, %v385_v4  ;;  %v405_v16 = vld [vmem:[#allocation7 + $0x498] sm:$0xff] }
 0x1f6   :  { %v409_v17 = vld [vmem:[#allocation7 + $0x4b8] sm:$0xff] }
 0x1f8   :  { %2097 = vmatpush1.bf16.msra.mxu1 %v3223_v10  ;;  %v3335_v10 = vcombine.low %v381_v2, %v385_v4 }
 0x1f9   :  { %2098 = vmatprep.subr.bf16.mxu1 %v3232_v11  ;;  %v3344_v11 = vcombine.high %v389_v8, %v393_v9 }
 0x1fc   :  { %2099 = vmatpush1.bf16.msra.mxu1 %v3231_v14  ;;  %v3343_v14 = vcombine.low %v389_v8, %v393_v9 }
 0x1fd   :  { %2100 = vmatprep.subr.bf16.mxu1 %v3240_v15  ;;  %v3352_v15 = vcombine.high %v397_v12, %v401_v13 }
 0x200   :  { %2101 = vmatpush1.bf16.msra.mxu1 %v3239_v18  ;;  %v3351_v18 = vcombine.low %v397_v12, %v401_v13 }
 0x201   :  { %2102 = vmatprep.subr.bf16.mxu1 %v3248_v19  ;;  %v3360_v19 = vcombine.high %v405_v16, %v409_v17 }
 0x204   :  { %2103 = vmatpush1.bf16.msra.mxu1 %v3247_v56  ;;  %v3359_v56 = vcombine.low %v405_v16, %v409_v17 }
 0x205   :  { %2104 = vmatprep.subr.bf16.mxu1 %v3256_v25  ;;  %v3368_v25 = vcombine.high %v413_v20, %v417_v23 }
 0x208   :  { %2105 = vmatpush1.bf16.msra.mxu1 %v3255_v30  ;;  %v3367_v30 = vcombine.low %v413_v20, %v417_v23  ;;  %v461_v23 = vld [vmem:[#allocation7 + $0x658] sm:$0xff] }
 0x209   :  { %2106 = vmatprep.subr.bf16.mxu1 %v3264_v31  ;;  %v3376_v31 = vcombine.high %v421_v27, %v425_v29 }
 0x20c   :  { %2107 = vmatpush1.bf16.msra.mxu1 %v3263_v34  ;;  %v4152_v34 = vld [vmem:[%s4203_s5] sm:$0xff] }
 0x20d   :  { %2108 = vmatprep.subr.bf16.mxu1 %v3272_v35  ;;  %v538_v35 = vsub.s32 5, %v4106_v21  ;;  %v535_v40 = vrot.slane %v4152_v34, %v534_v33  ;;  %v523_v41 = vrot.slane %v4152_v34, %v4115_v24  ;;  %v3721_v33 = vld [vmem:[#allocation8 + $0x124] ss:$8 sps:$4 sm:$0xff]  }
 0x210   :  { %2109 = vmatpush1.bf16.msra.mxu1 %v3271_v38  ;;  %v441_v38 = vld [vmem:[#allocation7 + $0x5b8] sm:$0xff] }
 0x211   :  { %2110 = vmatprep.subr.bf16.mxu1 %v3280_v39  ;;  %v519_v39 = vrot.slane %v4152_v34, %v4109_v22  ;;  %v3392_v44 = vcombine.high %v437_v37, %v441_v38  ;;  %v3391_v59 = vcombine.low %v437_v37, %v441_v38  ;;  %v481_v37 = vld [vmem:[#allocation7 + $0x6f8] sm:$0xff]  ;;  %v3719_v38 = vld [vmem:[#allocation8 + $0x120] ss:$8 sps:$4 sm:$0xff]  }
 0x214   :  { %2111 = vmatpush1.bf16.msra.mxu1 %v3279_v42  ;;  %v539_v42 = vrot.slane %v4152_v34, %v538_v35 }
 0x215   :  { %2112 = vmatprep.subr.bf16.mxu1 %v3288_v43 }
 0x218   :  { %2113 = vmatpush1.bf16.msra.mxu1 %v3287_v46 }
 0x219   :  { %2114 = vmatprep.subr.bf16.mxu1 %v3296_v47  ;;  %v445_v47 = vld [vmem:[#allocation7 + $0x5d8] sm:$0xff] }
 0x21a   :  { %v3399_v4 = vcombine.low %v445_v47, %v449_v48 }
 0x21c   :  { %2115 = vmatpush1.bf16.msra.mxu1 %v3295_v50 }
 0x21d   :  { %2116 = vmatprep.subr.bf16.mxu1 %v3304_v51 }
 0x220   :  { %2117 = vmatpush1.bf16.msra.mxu1 %v3303_v55 }
 0x221   :  { %2118 = vmatprep.subr.bf16.mxu1 %v3312_v57 }
 0x224   :  { %2119 = vmatpush1.bf16.msra.mxu1 %v3311_v60 }
 0x225   :  { %2120 = vmatprep.subr.bf16.mxu1 %v3320_v61 }
 0x228   :  { %2121 = vmatpush1.bf16.msra.mxu1 %v3319_v0  ;;  %v3400_v0 = vcombine.high %v445_v47, %v449_v48  ;;  %v493_v48 = vld [vmem:[#allocation7 + $0x758] sm:$0xff] }
 0x229   :  { %2122 = vmatprep.subr.bf16.mxu1 %v3328_v1 }
 0x22c   :  { %2123 = vmatpush1.bf16.msra.mxu1 %v3327_v5  ;;  %v453_v5 = vld [vmem:[#allocation7 + $0x618] sm:$0xff] }
 0x22d   :  { %2124 = vmatprep.subr.bf16.mxu1 %v3336_v7  ;;  %v457_v7 = vld [vmem:[#allocation7 + $0x638] sm:$0xff] }
 0x230   :  { %2125 = vmatpush1.bf16.msra.mxu1 %v3335_v10 }
 0x231   :  { %2137 = vmatprep.subr.bf16.mxu1 %v3344_v11 }
 0x233   :  { %2127 = vmatmul.mubr.bf16.vlgmr.msra.gmra.mrb[12].mxu1 %v4125_v52  ;;  %v433_v52 = vld [vmem:[#allocation7 + $0x578] sm:$0xff] }
 0x234   :  { %2138 = vmatpush1.bf16.msra.mxu1 %v3343_v14  ;;  %2169 = vmatprep.mubr.bf16.mxu1 %v4135_v6  ;;  %v3375_v6 = vcombine.low %v421_v27, %v425_v29  ;;  %v3384_v36 = vcombine.high %v429_v32, %v433_v52  ;;  %v3383_v43 = vcombine.low %v429_v32, %v433_v52  ;;  %v3718_v27 = vld [vmem:[#allocation8 + $0x114] ss:$8 sps:$4 sm:$0xff]   ;;  %v3716_v52 = vld [vmem:[#allocation8 + $0x110] ss:$8 sps:$4 sm:$0xff]  }
 0x235   :  { %2139 = vmatprep.subr.bf16.mxu1 %v3352_v15  ;;  %v3407_v29 = vcombine.low %v453_v5, %v457_v7  ;;  %v473_v32 = vld [vmem:[#allocation7 + $0x6b8] sm:$0xff] }
 0x238   :  { %2140 = vmatpush1.bf16.msra.mxu1 %v3351_v18  ;;  %v3408_v18 = vcombine.high %v453_v5, %v457_v7  ;;  %v3734_v5 = vld [vmem:[#allocation8 + $0x170] ss:$8 sps:$4 sm:$0xff]   ;;  %v3739_v7 = vld [vmem:[#allocation8 + $0x184] ss:$8 sps:$4 sm:$0xff]  }
 0x239   :  { %2141 = vmatprep.subr.bf16.mxu1 %v3360_v19 }
 0x23c   :  { %2142 = vmatpush1.bf16.msra.mxu1 %v3359_v56  ;;  %v465_v56 = vld [vmem:[#allocation7 + $0x678] sm:$0xff] }
 0x23d   :  { %2143 = vmatprep.subr.bf16.mxu1 %v3368_v25  ;;  %v3713_v25 = vld [vmem:[#allocation8 + $0x100] ss:$8 sps:$4 sm:$0xff]  }
 0x240   :  { %2144 = vmatpush1.bf16.msra.mxu1 %v3367_v30  ;;  %v3416_v30 = vcombine.high %v461_v23, %v465_v56 }
 0x241   :  { %2145 = vmatprep.subr.bf16.mxu1 %v3376_v31  ;;  %v469_v31 = vld [vmem:[#allocation7 + $0x698] sm:$0xff] }
 0x242   :  { %v3424_v35 = vcombine.high %v469_v31, %v473_v32 }
 0x244   :  { %2146 = vmatpush1.bf16.msra.mxu1 %v3375_v6  ;;  %v3415_v6 = vcombine.low %v461_v23, %v465_v56  ;;  %v3752_v23 = vld [vmem:[#allocation8 + $0x1d0] ss:$8 sps:$4 sm:$0xff]   ;;  %v3757_v56 = vld [vmem:[#allocation8 + $0x1e4] ss:$8 sps:$4 sm:$0xff]  }
 0x245   :  { %2147 = vmatprep.subr.bf16.mxu1 %v3384_v36  ;;  %v477_v36 = vld [vmem:[#allocation7 + $0x6d8] sm:$0xff] }
 0x246   :  { %v1913_v45 = vpop.f32.mrb[4].mxu1  ;;  %v2085_v46 = vpop.f32.mrb[4].mxu0 }
 0x247   :  { %v3593_v49 = vadd.f32 %v1913_v45, %v519_v39  ;;  %v3601_v50 = vadd.f32 %v2085_v46, %v535_v40  ;;  %v1915_v51 = vpop.f32.mrb[5].mxu1  ;;  %v2087_v53 = vpop.f32.mrb[5].mxu0  ;;  %v3727_v45 = vld [vmem:[#allocation8 + $0x144] ss:$8 sps:$4 sm:$0xff]   ;;  %v3431_v46 = vcombine.low %v477_v36, %v481_v37 }
 0x248   :  { %v3594_v54 = vadd.f32 %v1915_v51, %v523_v41  ;;  %v3602_v55 = vadd.f32 %v2087_v53, %v539_v42  ;;  %v1917_v57 = vpop.f32.mrb[6].mxu1  ;;  %v2089_v58 = vpop.f32.mrb[6].mxu0  ;;  %2148 = vmatpush1.bf16.msra.mxu1 %v3383_v43  ;;  %v489_v43 = vld [vmem:[#allocation7 + $0x738] sm:$0xff] }
 0x249   :  { %v3595_v60 = vadd.f32 %v1917_v57, %v519_v39  ;;  %v3603_v61 = vadd.f32 %v2089_v58, %v535_v40  ;;  %v1919_v62 = vpop.f32.mrb[7].mxu1  ;;  %v2091_v63 = vpop.f32.mrb[7].mxu0  ;;  %2149 = vmatprep.subr.bf16.mxu1 %v3392_v44  ;;  %v2180_v8 = vmax.f32 %v3593_v49, 0.0  ;;  %v2184_v9 = vmax.f32 %v3601_v50, 0.0  ;;  %v3724_v39 = vld [vmem:[#allocation8 + $0x134] ss:$8 sps:$4 sm:$0xff]  }
 0x24a   :  { %v3596_v1 = vadd.f32 %v1919_v62, %v523_v41  ;;  %v3604_v2 = vadd.f32 %v2091_v63, %v539_v42  ;;  %v2181_v12 = vmax.f32 %v3594_v54, 0.0  ;;  %v2185_v13 = vmax.f32 %v3602_v55, 0.0  ;;  %v485_v42 = vld [vmem:[#allocation7 + $0x718] sm:$0xff]  ;;  %v3725_v50 = vld [vmem:[#allocation8 + $0x140] ss:$8 sps:$4 sm:$0xff]  }
 0x24b   :  { %v2188_v10 = vmax.f32 %v3595_v60, 0.0  ;;  %v2192_v11 = vmax.f32 %v3603_v61, 0.0  ;;  %v3423_v40 = vcombine.low %v469_v31, %v473_v32  ;;  %v3432_v41 = vcombine.high %v477_v36, %v481_v37  ;;  %v3722_v44 = vld [vmem:[#allocation8 + $0x130] ss:$8 sps:$4 sm:$0xff]   ;;  %v3730_v51 = vld [vmem:[#allocation8 + $0x154] ss:$8 sps:$4 sm:$0xff]  }
 0x24c   :  { %v2189_v14 = vmax.f32 %v3596_v1, 0.0  ;;  %v2193_v15 = vmax.f32 %v3604_v2, 0.0  ;;  %2150 = vmatpush1.bf16.msra.mxu1 %v3391_v59  ;;  %v3440_v47 = vcombine.high %v485_v42, %v489_v43  ;;  %v497_v49 = vld [vmem:[#allocation7 + $0x778] sm:$0xff]  ;;  %v3439_v53 = vcombine.low %v485_v42, %v489_v43  ;;  %v3733_v59 = vld [vmem:[#allocation8 + $0x164] ss:$8 sps:$4 sm:$0xff]  }
 0x24d   :  { %v2196_v16 = vpack.c.bf16 %v2188_v10, %v2180_v8  ;;  %v4161_v17 = vpack.c.bf16 %v2192_v11, %v2184_v9  ;;  %2151 = vmatprep.subr.bf16.mxu1 %v3400_v0  ;;  %v3448_v54 = vcombine.high %v493_v48, %v497_v49  ;;  %v501_v55 = vld [vmem:[#allocation7 + $0x798] sm:$0xff]  ;;  %v3447_v60 = vcombine.low %v493_v48, %v497_v49  ;;  %v3731_v0 = vld [vmem:[#allocation8 + $0x160] ss:$8 sps:$4 sm:$0xff]  }
 0x24e   :  { %v2197_v19 = vpack.c.bf16 %v2189_v14, %v2181_v12  ;;  %v4163_v20 = vpack.c.bf16 %v2193_v15, %v2185_v13  ;;  %v505_v57 = vld [vmem:[#allocation7 + $0x7b8] sm:$0xff]  ;;  %v3737_v9 = vld [vmem:[#allocation8 + $0x180] ss:$8 sps:$4 sm:$0xff]   ;;  %v3745_v12 = vld [vmem:[#allocation8 + $0x1a4] ss:$8 sps:$4 sm:$0xff]   ;;  %v531_v31 = vrot.slane %v4152_v34, %v110_v28 }
 0x24f   :  { %v3728_v58 = vld [vmem:[#allocation8 + $0x150] ss:$8 sps:$4 sm:$0xff]   ;;  %v3456_v61 = vcombine.high %v501_v55, %v505_v57  ;;  %v3736_v1 = vld [vmem:[#allocation8 + $0x174] ss:$8 sps:$4 sm:$0xff]   ;;  %v3455_v2 = vcombine.low %v501_v55, %v505_v57  ;;  %v3743_v13 = vld [vmem:[#allocation8 + $0x1a0] ss:$8 sps:$4 sm:$0xff]  }
 0x250   :  { %2152 = vmatpush1.bf16.msra.mxu1 %v3399_v4  ;;  %3016 = vmatprep.mubr.bf16.mxu0 %v2197_v19  ;;  %v509_v62 = vld [vmem:[#allocation7 + $0x7d8] sm:$0xff]  ;;  %v3781_v55 = vld [vmem:[#allocation8 + $0x264] ss:$8 sps:$4 sm:$0xff]  }
 0x251   :  { %3017 = vmatmul.mubr.bf16.vlgmr.msra.gmra.mrb[8].mxu0 %v2196_v16  ;;  %2153 = vmatprep.subr.bf16.mxu1 %v3408_v18  ;;  %v513_v63 = vld [vmem:[#allocation7 + $0x7f8] sm:$0xff]  ;;  %v3751_v16 = vld [vmem:[#allocation8 + $0x1c4] ss:$8 sps:$4 sm:$0xff]   ;;  %v3749_v18 = vld [vmem:[#allocation8 + $0x1c0] ss:$8 sps:$4 sm:$0xff]  }
 0x252   :  { %3028 = vmatpush1.bf16.msra.mxu0 %v3713_v25  ;;  %v3464_v4 = vcombine.high %v509_v62, %v513_v63  ;;  %v3463_v8 = vcombine.low %v509_v62, %v513_v63  ;;  %v3742_v10 = vld [vmem:[#allocation8 + $0x194] ss:$8 sps:$4 sm:$0xff]   ;;  %v3740_v11 = vld [vmem:[#allocation8 + $0x190] ss:$8 sps:$4 sm:$0xff]   ;;  %v3793_v63 = vld [vmem:[#allocation8 + $0x2a4] ss:$8 sps:$4 sm:$0xff]  }
 0x253   :  { %3029 = vmatprep.subr.bf16.mxu0 %v3718_v27  ;;  %v3748_v14 = vld [vmem:[#allocation8 + $0x1b4] ss:$8 sps:$4 sm:$0xff]   ;;  %v3746_v15 = vld [vmem:[#allocation8 + $0x1b0] ss:$8 sps:$4 sm:$0xff]  }
 0x254   :  { %2154 = vmatpush1.bf16.msra.mxu1 %v3407_v29  ;;  %v3754_v19 = vld [vmem:[#allocation8 + $0x1d4] ss:$8 sps:$4 sm:$0xff]   ;;  %v3758_v27 = vld [vmem:[#allocation8 + $0x1f0] ss:$8 sps:$4 sm:$0xff]   ;;  %v3763_v29 = vld [vmem:[#allocation8 + $0x204] ss:$8 sps:$4 sm:$0xff]  }
 0x255   :  { %2155 = vmatprep.subr.bf16.mxu1 %v3416_v30  ;;  %v3760_v25 = vld [vmem:[#allocation8 + $0x1f4] ss:$8 sps:$4 sm:$0xff]   ;;  %v527_v30 = vrot.slane %v4152_v34, %v106_v26  ;;  %v3764_v28 = vld [vmem:[#allocation8 + $0x210] ss:$8 sps:$4 sm:$0xff]  }
 0x256   :  { %3030 = vmatpush1.bf16.msra.mxu0 %v3716_v52  ;;  %v3766_v26 = vld [vmem:[#allocation8 + $0x214] ss:$8 sps:$4 sm:$0xff]   ;;  %v3770_v49 = vld [vmem:[#allocation8 + $0x230] ss:$8 sps:$4 sm:$0xff]  }
 0x257   :  { %3031 = vmatprep.subr.bf16.mxu0 %v3721_v33  ;;  %v3772_v48 = vld [vmem:[#allocation8 + $0x234] ss:$8 sps:$4 sm:$0xff]   ;;  %v3788_v62 = vld [vmem:[#allocation8 + $0x290] ss:$8 sps:$4 sm:$0xff]  }
 0x258   :  { %2156 = vmatpush1.bf16.msra.mxu1 %v3415_v6  ;;  %v3784_v57 = vld [vmem:[#allocation8 + $0x274] ss:$8 sps:$4 sm:$0xff]  }
 0x259   :  { %2157 = vmatprep.subr.bf16.mxu1 %v3424_v35 }
 0x25a   :  { %3032 = vmatpush1.bf16.msra.mxu0 %v3719_v38 }
 0x25b   :  { %3033 = vmatprep.subr.bf16.mxu0 %v3724_v39 }
 0x25c   :  { %2158 = vmatpush1.bf16.msra.mxu1 %v3423_v40 }
 0x25d   :  { %2159 = vmatprep.subr.bf16.mxu1 %v3432_v41 }
 0x25e   :  { %3034 = vmatpush1.bf16.msra.mxu0 %v3722_v44 }
 0x25f   :  { %3035 = vmatprep.subr.bf16.mxu0 %v3727_v45  ;;  %v3761_v45 = vld [vmem:[#allocation8 + $0x200] ss:$8 sps:$4 sm:$0xff]  }
 0x260   :  { %2160 = vmatpush1.bf16.msra.mxu1 %v3431_v46  ;;  %v3769_v46 = vld [vmem:[#allocation8 + $0x224] ss:$8 sps:$4 sm:$0xff]  }
 0x261   :  { %2161 = vmatprep.subr.bf16.mxu1 %v3440_v47  ;;  %v3767_v47 = vld [vmem:[#allocation8 + $0x220] ss:$8 sps:$4 sm:$0xff]  }
 0x262   :  { %3036 = vmatpush1.bf16.msra.mxu0 %v3725_v50  ;;  %v3775_v50 = vld [vmem:[#allocation8 + $0x244] ss:$8 sps:$4 sm:$0xff]  }
 0x263   :  { %3037 = vmatprep.subr.bf16.mxu0 %v3730_v51  ;;  %v3773_v51 = vld [vmem:[#allocation8 + $0x240] ss:$8 sps:$4 sm:$0xff]  }
 0x264   :  { %2162 = vmatpush1.bf16.msra.mxu1 %v3439_v53  ;;  %v3778_v53 = vld [vmem:[#allocation8 + $0x254] ss:$8 sps:$4 sm:$0xff]  }
 0x265   :  { %2163 = vmatprep.subr.bf16.mxu1 %v3448_v54  ;;  %v3776_v54 = vld [vmem:[#allocation8 + $0x250] ss:$8 sps:$4 sm:$0xff]  }
 0x266   :  { %3038 = vmatpush1.bf16.msra.mxu0 %v3728_v58  ;;  %v3782_v58 = vld [vmem:[#allocation8 + $0x270] ss:$8 sps:$4 sm:$0xff]  }
 0x267   :  { %3039 = vmatprep.subr.bf16.mxu0 %v3733_v59  ;;  %v3787_v59 = vld [vmem:[#allocation8 + $0x284] ss:$8 sps:$4 sm:$0xff]  }
 0x268   :  { %2164 = vmatpush1.bf16.msra.mxu1 %v3447_v60  ;;  %v3785_v60 = vld [vmem:[#allocation8 + $0x280] ss:$8 sps:$4 sm:$0xff]  }
 0x269   :  { %2165 = vmatprep.subr.bf16.mxu1 %v3456_v61  ;;  %v3790_v61 = vld [vmem:[#allocation8 + $0x294] ss:$8 sps:$4 sm:$0xff]  }
 0x26a   :  { %3040 = vmatpush1.bf16.msra.mxu0 %v3731_v0  ;;  %v3791_v0 = vld [vmem:[#allocation8 + $0x2a0] ss:$8 sps:$4 sm:$0xff]  }
 0x26b   :  { %3041 = vmatprep.subr.bf16.mxu0 %v3736_v1  ;;  %v3796_v1 = vld [vmem:[#allocation8 + $0x2b4] ss:$8 sps:$4 sm:$0xff]  }
 0x26c   :  { %2166 = vmatpush1.bf16.msra.mxu1 %v3455_v2  ;;  %v3794_v2 = vld [vmem:[#allocation8 + $0x2b0] ss:$8 sps:$4 sm:$0xff]  }
 0x26d   :  { %2167 = vmatprep.subr.bf16.mxu1 %v3464_v4  ;;  %v3799_v4 = vld [vmem:[#allocation8 + $0x2c4] ss:$8 sps:$4 sm:$0xff]  }
 0x26e   :  { %3042 = vmatpush1.bf16.msra.mxu0 %v3734_v5  ;;  %v3797_v5 = vld [vmem:[#allocation8 + $0x2c0] ss:$8 sps:$4 sm:$0xff]  }
 0x26f   :  { %3043 = vmatprep.subr.bf16.mxu0 %v3739_v7  ;;  %v3802_v7 = vld [vmem:[#allocation8 + $0x2d4] ss:$8 sps:$4 sm:$0xff]  }
 0x270   :  { %2168 = vmatpush1.bf16.msra.mxu1 %v3463_v8  ;;  %v3800_v8 = vld [vmem:[#allocation8 + $0x2d0] ss:$8 sps:$4 sm:$0xff]  }
 0x272   :  { %3044 = vmatpush1.bf16.msra.mxu0 %v3737_v9  ;;  %v3805_v9 = vld [vmem:[#allocation8 + $0x2e4] ss:$8 sps:$4 sm:$0xff]  }
 0x273   :  { %2170 = vmatmul.mubr.bf16.vlgmr.msra.gmra.mrb[12].mxu1 %v4133_v3  ;;  %3045 = vmatprep.subr.bf16.mxu0 %v3742_v10  ;;  %v3755_v3 = vld [vmem:[#allocation8 + $0x1e0] ss:$8 sps:$4 sm:$0xff]  }
 0x274   :  { %v3803_v10 = vld [vmem:[#allocation8 + $0x2e0] ss:$8 sps:$4 sm:$0xff]  }
 0x276   :  { %3046 = vmatpush1.bf16.msra.mxu0 %v3740_v11  ;;  %v3808_v11 = vld [vmem:[#allocation8 + $0x2f4] ss:$8 sps:$4 sm:$0xff]  }
 0x277   :  { %3047 = vmatprep.subr.bf16.mxu0 %v3745_v12  ;;  %v3806_v12 = vld [vmem:[#allocation8 + $0x2f0] ss:$8 sps:$4 sm:$0xff]  }
 0x27a   :  { %3048 = vmatpush1.bf16.msra.mxu0 %v3743_v13  ;;  %v3811_v13 = vld [vmem:[#allocation8 + $0x304] ss:$8 sps:$4 sm:$0xff]  }
 0x27b   :  { %3049 = vmatprep.subr.bf16.mxu0 %v3748_v14  ;;  %v3809_v14 = vld [vmem:[#allocation8 + $0x300] ss:$8 sps:$4 sm:$0xff]  }
 0x27e   :  { %3050 = vmatpush1.bf16.msra.mxu0 %v3746_v15  ;;  %v3814_v15 = vld [vmem:[#allocation8 + $0x314] ss:$8 sps:$4 sm:$0xff]  }
 0x27f   :  { %3051 = vmatprep.subr.bf16.mxu0 %v3751_v16  ;;  %v3812_v16 = vld [vmem:[#allocation8 + $0x310] ss:$8 sps:$4 sm:$0xff]  }
 0x282   :  { %3052 = vmatpush1.bf16.msra.mxu0 %v3749_v18  ;;  %v3817_v18 = vld [vmem:[#allocation8 + $0x324] ss:$8 sps:$4 sm:$0xff]  }
 0x283   :  { %3053 = vmatprep.subr.bf16.mxu0 %v3754_v19  ;;  %v3815_v19 = vld [vmem:[#allocation8 + $0x320] ss:$8 sps:$4 sm:$0xff]  }
 0x286   :  { %3054 = vmatpush1.bf16.msra.mxu0 %v3752_v23  ;;  %v3820_v23 = vld [vmem:[#allocation8 + $0x334] ss:$8 sps:$4 sm:$0xff]  }
 0x287   :  { %3055 = vmatprep.subr.bf16.mxu0 %v3757_v56  ;;  %v3818_v56 = vld [vmem:[#allocation8 + $0x330] ss:$8 sps:$4 sm:$0xff]  }
 0x28a   :  { %3056 = vmatpush1.bf16.msra.mxu0 %v3755_v3  ;;  %v3823_v3 = vld [vmem:[#allocation8 + $0x344] ss:$8 sps:$4 sm:$0xff]  }
 0x28b   :  { %3057 = vmatprep.subr.bf16.mxu0 %v3760_v25  ;;  %v3821_v25 = vld [vmem:[#allocation8 + $0x340] ss:$8 sps:$4 sm:$0xff]  }
 0x28e   :  { %3058 = vmatpush1.bf16.msra.mxu0 %v3758_v27  ;;  %v3826_v27 = vld [vmem:[#allocation8 + $0x354] ss:$8 sps:$4 sm:$0xff]  }
 0x28f   :  { %3070 = vmatprep.subr.bf16.mxu0 %v3763_v29  ;;  %v3824_v29 = vld [vmem:[#allocation8 + $0x350] ss:$8 sps:$4 sm:$0xff]  }
 0x2c6   :  { %v1999_v32 = vpop.f32.mrb[8].mxu1 }
 0x2c7   :  { %v3597_v52 = vadd.f32 %v1999_v32, %v527_v30  ;;  %v2001_v33 = vpop.f32.mrb[9].mxu1  ;;  %v3830_v32 = vld [vmem:[#allocation8 + $0x370] ss:$8 sps:$4 sm:$0xff]  }
 0x2c8   :  { %v3598_v6 = vadd.f32 %v2001_v33, %v531_v31  ;;  %v2003_v35 = vpop.f32.mrb[10].mxu1  ;;  %v3833_v33 = vld [vmem:[#allocation8 + $0x380] ss:$8 sps:$4 sm:$0xff]  }
 0x2c9   :  { %v3599_v36 = vadd.f32 %v2003_v35, %v527_v30  ;;  %v2005_v37 = vpop.f32.mrb[11].mxu1  ;;  %v2182_v39 = vmax.f32 %v3597_v52, 0.0  ;;  %v3827_v30 = vld [vmem:[#allocation8 + $0x360] ss:$8 sps:$4 sm:$0xff]   ;;  %v3835_v52 = vld [vmem:[#allocation8 + $0x384] ss:$8 sps:$4 sm:$0xff]  }
 0x2ca   :  { %v3600_v38 = vadd.f32 %v2005_v37, %v531_v31  ;;  %v2183_v41 = vmax.f32 %v3598_v6, 0.0  ;;  %v3832_v31 = vld [vmem:[#allocation8 + $0x374] ss:$8 sps:$4 sm:$0xff]   ;;  %v3836_v35 = vld [vmem:[#allocation8 + $0x390] ss:$8 sps:$4 sm:$0xff]  }
 0x2cb   :  { %v2190_v40 = vmax.f32 %v3599_v36, 0.0  ;;  %v3838_v6 = vld [vmem:[#allocation8 + $0x394] ss:$8 sps:$4 sm:$0xff]   ;;  %v3841_v36 = vld [vmem:[#allocation8 + $0x3a4] ss:$8 sps:$4 sm:$0xff]  }
 0x2cc   :  { %v2191_v42 = vmax.f32 %v3600_v38, 0.0  ;;  %v3839_v37 = vld [vmem:[#allocation8 + $0x3a0] ss:$8 sps:$4 sm:$0xff]   ;;  %v3844_v38 = vld [vmem:[#allocation8 + $0x3b4] ss:$8 sps:$4 sm:$0xff]  }
 0x2cd   :  { %v2198_v43 = vpack.c.bf16 %v2190_v40, %v2182_v39  ;;  %v3842_v39 = vld [vmem:[#allocation8 + $0x3b0] ss:$8 sps:$4 sm:$0xff]   ;;  %v3847_v40 = vld [vmem:[#allocation8 + $0x3c4] ss:$8 sps:$4 sm:$0xff]  }
 0x2ce   :  { %v2199_v44 = vpack.c.bf16 %v2191_v42, %v2183_v41  ;;  %v3845_v41 = vld [vmem:[#allocation8 + $0x3c0] ss:$8 sps:$4 sm:$0xff]   ;;  %v3850_v42 = vld [vmem:[#allocation8 + $0x3d4] ss:$8 sps:$4 sm:$0xff]  }
 0x2d0   :  { %3059 = vmatprep.mubr.bf16.mxu0 %v2199_v44  ;;  %v546_v44 = vsub.s32 7, %v4106_v21 }
 0x2d1   :  { %3060 = vmatmul.mubr.bf16.vlgmr.msra.gmra.mrb[8].mxu0 %v2198_v43  ;;  %v542_v43 = vsub.s32 6, %v4106_v21 }
 0x2d2   :  { %3071 = vmatpush1.bf16.msra.mxu0 %v3761_v45  ;;  %3102 = vmatprep.mubr.bf16.mxu0 %v4163_v20  ;;  %v3779_v20 = vld [vmem:[#allocation8 + $0x260] ss:$8 sps:$4 sm:$0xff]   ;;  %v3848_v45 = vld [vmem:[#allocation8 + $0x3d0] ss:$8 sps:$4 sm:$0xff]  }
 0x2d3   :  { %3072 = vmatprep.subr.bf16.mxu0 %v3766_v26  ;;  %v543_v26 = vrot.slane %v4152_v34, %v542_v43 }
 0x2d6   :  { %3073 = vmatpush1.bf16.msra.mxu0 %v3764_v28  ;;  %v3853_v28 = vld [vmem:[#allocation8 + $0x3e4] ss:$8 sps:$4 sm:$0xff]  }
 0x2d7   :  { %3074 = vmatprep.subr.bf16.mxu0 %v3769_v46  ;;  %v547_v46 = vrot.slane %v4152_v34, %v546_v44 }
 0x2da   :  { %3075 = vmatpush1.bf16.msra.mxu0 %v3767_v47 }
 0x2db   :  { %3076 = vmatprep.subr.bf16.mxu0 %v3772_v48  ;;  %v3851_v48 = vld [vmem:[#allocation8 + $0x3e0] ss:$8 sps:$4 sm:$0xff]  }
 0x2de   :  { %3077 = vmatpush1.bf16.msra.mxu0 %v3770_v49 }
 0x2df   :  { %3078 = vmatprep.subr.bf16.mxu0 %v3775_v50 }
 0x2e2   :  { %3079 = vmatpush1.bf16.msra.mxu0 %v3773_v51  ;;  %v3856_v51 = vld [vmem:[#allocation8 + $0x3f4] ss:$8 sps:$4 sm:$0xff]  }
 0x2e3   :  { %3080 = vmatprep.subr.bf16.mxu0 %v3778_v53 }
 0x2e6   :  { %3081 = vmatpush1.bf16.msra.mxu0 %v3776_v54 }
 0x2e7   :  { %3082 = vmatprep.subr.bf16.mxu0 %v3781_v55 }
 0x2ea   :  { %3083 = vmatpush1.bf16.msra.mxu0 %v3779_v20 }
 0x2eb   :  { %3084 = vmatprep.subr.bf16.mxu0 %v3784_v57  ;;  %v3854_v57 = vld [vmem:[#allocation8 + $0x3f0] ss:$8 sps:$4 sm:$0xff]  }
 0x2ee   :  { %3085 = vmatpush1.bf16.msra.mxu0 %v3782_v58 }
 0x2ef   :  { %3086 = vmatprep.subr.bf16.mxu0 %v3787_v59 }
 0x2f2   :  { %3087 = vmatpush1.bf16.msra.mxu0 %v3785_v60 }
 0x2f3   :  { %3088 = vmatprep.subr.bf16.mxu0 %v3790_v61 }
 0x2f6   :  { %3089 = vmatpush1.bf16.msra.mxu0 %v3788_v62 }
 0x2f7   :  { %3090 = vmatprep.subr.bf16.mxu0 %v3793_v63  ;;  %v2332_v63 = vld [vmem:[%s4204_s6] sm:$0x3]  ;;  %s4002_s6 = smov [#allocation10]  }
 0x2f8   :  { %s3185_s10 = sshll.u32 %s4002_s6, 4  ;;  %s3186_s10 = int_to_ptr.vmem [resolvable:$true] %s3185_s10 }
 0x2f9   :  { %s3961_s13 = scalar_lea.vmem %s3186_s10, 512  ;;  %p3966_p5 = scmp.lt.s32.totalorder %s3186_s10, %s3186_s10 }
 0x2fa   :  { %3091 = vmatpush1.bf16.msra.mxu0 %v3791_v0  ;;  %v2337_v0 = vrot.slane %v2332_v63, %v4109_v22  ;;  %p3962_p4 = scmp.ne.s32.totalorder %s3186_s10, %s3961_s13  ;;  %p3967_p6 = scmp.lt.s32.totalorder %s3961_s13, %s3961_s13 }
 0x2fb   :  { %3092 = vmatprep.subr.bf16.mxu0 %v3796_v1  ;;  %v2341_v1 = vrot.slane %v2332_v63, %v4115_v24 }
 0x2fc   :  { %p3968_p7 = por %p3967_p6, %p3966_p5 }
 0x2fe   :  { %3093 = vmatpush1.bf16.msra.mxu0 %v3794_v2  ;;  %p3969_p8 = pnand %p3968_p7, %p3962_p4 }
 0x2ff   :  { %3094 = vmatprep.subr.bf16.mxu0 %v3799_v4 }
 0x302   :  { %3095 = vmatpush1.bf16.msra.mxu0 %v3797_v5 }
 0x303   :  { %3096 = vmatprep.subr.bf16.mxu0 %v3802_v7 }
 0x306   :  { %3097 = vmatpush1.bf16.msra.mxu0 %v3800_v8 }
 0x307   :  { %3098 = vmatprep.subr.bf16.mxu0 %v3805_v9 }
 0x30a   :  { %3099 = vmatpush1.bf16.msra.mxu0 %v3803_v10 }
 0x30b   :  { %3100 = vmatprep.subr.bf16.mxu0 %v3808_v11 }
 0x30e   :  { %3101 = vmatpush1.bf16.msra.mxu0 %v3806_v12 }
 0x30f   :  { %3113 = vmatprep.subr.bf16.mxu0 %v3811_v13 }
 0x311   :  { %3103 = vmatmul.mubr.bf16.vlgmr.msra.gmra.mrb[8].mxu0 %v4161_v17  ;;  %v3829_v17 = vld [vmem:[#allocation8 + $0x364] ss:$8 sps:$4 sm:$0xff]  }
 0x312   :  { %3114 = vmatpush1.bf16.msra.mxu0 %v3809_v14 }
 0x313   :  { %3115 = vmatprep.subr.bf16.mxu0 %v3814_v15 }
 0x316   :  { %3116 = vmatpush1.bf16.msra.mxu0 %v3812_v16 }
 0x317   :  { %3117 = vmatprep.subr.bf16.mxu0 %v3817_v18 }
 0x31a   :  { %3118 = vmatpush1.bf16.msra.mxu0 %v3815_v19 }
 0x31b   :  { %3119 = vmatprep.subr.bf16.mxu0 %v3820_v23 }
 0x31e   :  { %3120 = vmatpush1.bf16.msra.mxu0 %v3818_v56 }
 0x31f   :  { %3121 = vmatprep.subr.bf16.mxu0 %v3823_v3 }
 0x322   :  { %3122 = vmatpush1.bf16.msra.mxu0 %v3821_v25 }
 0x323   :  { %3123 = vmatprep.subr.bf16.mxu0 %v3826_v27 }
 0x326   :  { %3124 = vmatpush1.bf16.msra.mxu0 %v3824_v29 }
 0x327   :  { %3125 = vmatprep.subr.bf16.mxu0 %v3829_v17 }
 0x32a   :  { %3126 = vmatpush1.bf16.msra.mxu0 %v3827_v30 }
 0x32b   :  { %3127 = vmatprep.subr.bf16.mxu0 %v3832_v31 }
 0x32e   :  { %3128 = vmatpush1.bf16.msra.mxu0 %v3830_v32 }
 0x32f   :  { %3129 = vmatprep.subr.bf16.mxu0 %v3835_v52 }
 0x332   :  { %3130 = vmatpush1.bf16.msra.mxu0 %v3833_v33 }
 0x333   :  { %3131 = vmatprep.subr.bf16.mxu0 %v3838_v6 }
 0x336   :  { %3132 = vmatpush1.bf16.msra.mxu0 %v3836_v35 }
 0x337   :  { %3133 = vmatprep.subr.bf16.mxu0 %v3841_v36 }
 0x33a   :  { %3134 = vmatpush1.bf16.msra.mxu0 %v3839_v37 }
 0x33b   :  { %3135 = vmatprep.subr.bf16.mxu0 %v3844_v38 }
 0x33e   :  { %3136 = vmatpush1.bf16.msra.mxu0 %v3842_v39 }
 0x33f   :  { %3137 = vmatprep.subr.bf16.mxu0 %v3847_v40 }
 0x342   :  { %3138 = vmatpush1.bf16.msra.mxu0 %v3845_v41 }
 0x343   :  { %3139 = vmatprep.subr.bf16.mxu0 %v3850_v42 }
 0x346   :  { %v2171_v47 = vpop.f32.mrb[12].mxu1  ;;  %3140 = vmatpush1.bf16.msra.mxu0 %v3848_v45 }
 0x347   :  { %v3605_v49 = vadd.f32 %v2171_v47, %v543_v26  ;;  %v2173_v50 = vpop.f32.mrb[13].mxu1  ;;  %3141 = vmatprep.subr.bf16.mxu0 %v3853_v28 }
 0x348   :  { %v3606_v53 = vadd.f32 %v2173_v50, %v547_v46  ;;  %v2175_v54 = vpop.f32.mrb[14].mxu1 }
 0x349   :  { %v3607_v55 = vadd.f32 %v2175_v54, %v543_v26  ;;  %v2177_v20 = vpop.f32.mrb[15].mxu1  ;;  %v2186_v58 = vmax.f32 %v3605_v49, 0.0 }
 0x34a   :  { %v3608_v21 = vadd.f32 %v2177_v20, %v547_v46  ;;  %3142 = vmatpush1.bf16.msra.mxu0 %v3851_v48  ;;  %v2187_v60 = vmax.f32 %v3606_v53, 0.0 }
 0x34b   :  { %v2194_v59 = vmax.f32 %v3607_v55, 0.0  ;;  %3143 = vmatprep.subr.bf16.mxu0 %v3856_v51 }
 0x34c   :  { %v2195_v61 = vmax.f32 %v3608_v21, 0.0 }
 0x34d   :  { %v2202_v34 = vpack.c.bf16 %v2194_v59, %v2186_v58 }
 0x34e   :  { %v2203_v62 = vpack.c.bf16 %v2195_v61, %v2187_v60  ;;  %3144 = vmatpush1.bf16.msra.mxu0 %v3854_v57 }
 0x350   :  { %3145 = vmatprep.mubr.bf16.mxu0 %v2203_v62 }
 0x351   :  { %3146 = vmatmul.mubr.bf16.vlgmr.msra.gmra.mrb[8].mxu0 %v2202_v34 }
 0x424   :  { %v3147_v2 = vpop.f32.mrb[8].mxu0 }
 0x425   :  { %v3609_v4 = vadd.f32 %v3147_v2, %v2337_v0  ;;  %v3149_v5 = vpop.f32.mrb[9].mxu0 }
 0x426   :  { %v3610_v7 = vadd.f32 %v3149_v5, %v2341_v1  ;;  %v3151_v8 = vpop.f32.mrb[10].mxu0 }
 0x427   :  { %v3156_v9 = vsub.f32 0.0, %v3609_v4  ;;  %v3611_v10 = vadd.f32 %v3151_v8, %v2337_v0  ;;  %v3153_v11 = vpop.f32.mrb[11].mxu0 }
 0x428   :  { %v3157_v12 = vsub.f32 0.0, %v3610_v7  ;;  %v3612_v13 = vadd.f32 %v3153_v11, %v2341_v1 }
 0x429   :  { %v3160_v14 = vmul.f32 1.442695, %v3156_v9  ;;  %v3158_v15 = vsub.f32 0.0, %v3611_v10 }
 0x42a   :  { %v3162_v16 = vmul.f32 1.442695, %v3157_v12  ;;  %v3159_v18 = vsub.f32 0.0, %v3612_v13 }
 0x42b   :  { %3857 = vpow2.f32 %v3160_v14  ;;  %v3164_v19 = vmul.f32 1.442695, %v3158_v15 }
 0x42c   :  { %3859 = vpow2.f32 %v3162_v16  ;;  %v3166_v22 = vmul.f32 1.442695, %v3159_v18 }
 0x42d   :  { %3861 = vpow2.f32 %v3164_v19 }
 0x42e   :  { %3863 = vpow2.f32 %v3166_v22 }
 0x435   :  { %v3858_v24 = vpop.eup %3857 }
 0x436   :  { %v3860_v23 = vpop.eup %3859  ;;  %v3168_v56 = vadd.f32 1.0, %v3858_v24 }
 0x437   :  { %v3862_v3 = vpop.eup %3861  ;;  %v3169_v25 = vadd.f32 1.0, %v3860_v23 }
 0x438   :  { %v3864_v27 = vpop.eup %3863  ;;  %3865 = vrcp.f32 %v3168_v56  ;;  %v3170_v29 = vadd.f32 1.0, %v3862_v3 }
 0x439   :  { %3867 = vrcp.f32 %v3169_v25  ;;  %v3171_v17 = vadd.f32 1.0, %v3864_v27 }
 0x43a   :  { %3869 = vrcp.f32 %v3170_v29 }
 0x43b   :  { %3871 = vrcp.f32 %v3171_v17 }
 0x442   :  { %v3866_v30 = vpop.eup %3865 }
 0x443   :  { %v3868_v31 = vpop.eup %3867  ;;  %3176 = vst [vmem:[#allocation10] sm:$0xff] %v3866_v30 }
 0x444   :  { %v3870_v32 = vpop.eup %3869  ;;  %3177 = vst [vmem:[#allocation10 + $0x8] sm:$0xff] %v3868_v31 }
 0x445   :  { %v3872_v52 = vpop.eup %3871  ;;  %3178 = vst [vmem:[#allocation10 + $0x10] sm:$0xff] %v3870_v32 }
 0x446   :  { %3179 = vst [vmem:[#allocation10 + $0x18] sm:$0xff] %v3872_v52 }
 0x447   :  { %3972 = shalt.err (!%p3969_p8)
}
 0x448   :  { %s3973_s17 = scalar_lea.hbm %s4205_s7, 512 }
 0x449   :  { %p3974_p9 = scmp.ne.s32.totalorder %s4205_s7, %s3973_s17  ;;  %p3977_p10 = scmp.lt.u32.totalorder %s3973_s17, %s4205_s7 }
 0x44b   :  { %p3979_p11 = pnand %p3977_p10, %p3974_p9 }
 0x44d   :  { %3982 = shalt.err (!%p3979_p11)
}
 0x44e   :  { %3191 = dma.vmem_to_hbm [thread:$0]  %s3186_s10, 512, %s4205_s7, [#allocation4], %s3992_s11, %s3992_s11, %s3993_s12  }
 0x44f   :  { %3989 = dma.done.wait [#allocation4], 512  }
 0x450   :  { %3990 = vsyncadd [#allocation4], 4294966784 }
 0x451   :  { %3195 = vsyncpa [#allocation3], 1 }
 0x452   :  { %3196 = vsyncpa [#allocation6], 1 }
 0x453   :  { %3197 = vsyncpa [#allocation9], 1 }
 0x454   :  { %3198 = vsyncpa [#allocation4], 1 }

// kernel: tpu_custom_call.1
= control target key start
LH: loop header
LB: loop body
LE: loop exit
PB: predicated region body
PF: predicated region fallthrough
CT: control target
= control target key end

     0   :  { %12 = vsyncpa [#allocation3], 0  ;;  %s4198_s0 = inlined_call_operand.hbm [shape: f32[16,32], index: 0, kind: input, shape index: {}]   ;;  %s4199_s1 = inlined_call_operand.hbm [shape: bf16[32,512], index: 1, kind: input, shape index: {}]   ;;  %s4200_s2 = inlined_call_operand.hbm [shape: bf16[512,1024], index: 2, kind: input, shape index: {}]   ;;  %s4201_s3 = inlined_call_operand.hbm [shape: bf16[1024,256], index: 3, kind: input, shape index: {}]   ;;  %s4202_s4 = inlined_call_operand.vmem [shape: f32[1,512], index: 4, kind: input, shape index: {}]   ;;  %s4203_s5 = inlined_call_operand.vmem [shape: f32[1,1024], index: 5, kind: input, shape index: {}]   ;;  %s4204_s6 = inlined_call_operand.vmem [shape: f32[1,256], index: 6, kind: input, shape index: {}]   ;;  %s4205_s7 = inlined_call_operand.hbm [shape: f32[16,256], index: 7, kind: output, shape index: {}]  }
   0x1   :  { %13 = vsyncpa [#allocation6], 0 }
   0x2   :  { %14 = vsyncpa [#allocation9], 0 }
   0x3   :  { %15 = vsyncpa [#allocation4], 0  ;;  %s3991_s24 = smov [#allocation5]   ;;  %s3873_s28 = scalar_lea.hbm %s4199_s1, 1024 }
   0x4   :  { %s33_s25 = sshll.u32 %s3991_s24, 4  ;;  %p3874_p0 = scmp.ne.s32.totalorder %s4199_s1, %s3873_s28  ;;  %s34_s25 = int_to_ptr.vmem [resolvable:$true] %s33_s25 }
   0x5   :  { %p3877_p1 = scmp.lt.u32.totalorder %s3873_s28, %s4199_s1 }
   0x7   :  { %p3879_p2 = pnand %p3877_p1, %p3874_p0 }
   0x9   :  { %3882 = shalt.err (!%p3879_p2)
}
   0xa   :  { %s3883_s10 = scalar_lea.vmem %s34_s25, 1024  ;;  %p3888_p4 = scmp.lt.s32.totalorder %s34_s25, %s34_s25 }
   0xb   :  { %p3884_p3 = scmp.ne.s32.totalorder %s34_s25, %s3883_s10  ;;  %p3889_p5 = scmp.lt.s32.totalorder %s3883_s10, %s3883_s10 }
   0xd   :  { %p3890_p6 = por %p3889_p5, %p3888_p4 }
   0xf   :  { %p3891_p7 = pnand %p3890_p6, %p3884_p3 }
  0x11   :  { %3894 = shalt.err (!%p3891_p7)
}
  0x12   :  { %s3992_s11 = smov 256   ;;  %s3993_s12 = smov 16  }
  0x13   :  { %39 = dma.hbm_to_vmem [thread:$0]  %s4199_s1, 1024, %s34_s25, [#allocation6], %s3992_s11, %s3992_s11, %s3993_s12  }
  0x14   :  { %s3994_s15 = smov [#allocation2]   ;;  %s3895_s19 = scalar_lea.hbm %s4198_s0, 256 }
  0x15   :  { %s21_s16 = sshll.u32 %s3994_s15, 4  ;;  %p3896_p8 = scmp.ne.s32.totalorder %s4198_s0, %s3895_s19  ;;  %s22_s16 = int_to_ptr.vmem [resolvable:$true] %s21_s16 }
  0x16   :  { %p3899_p9 = scmp.lt.u32.totalorder %s3895_s19, %s4198_s0 }
  0x18   :  { %p3901_p10 = pnand %p3899_p9, %p3896_p8 }
  0x1a   :  { %3904 = shalt.err (!%p3901_p10)
}
  0x1b   :  { %s3905_s24 = scalar_lea.vmem %s22_s16, 256  ;;  %p3910_p12 = scmp.lt.s32.totalorder %s22_s16, %s22_s16 }
  0x1c   :  { %p3906_p11 = scmp.ne.s32.totalorder %s22_s16, %s3905_s24  ;;  %p3911_p13 = scmp.lt.s32.totalorder %s3905_s24, %s3905_s24 }
  0x1e   :  { %p3912_p0 = por %p3911_p13, %p3910_p12 }
  0x20   :  { %p3913_p1 = pnand %p3912_p0, %p3906_p11 }
  0x22   :  { %3916 = shalt.err (!%p3913_p1)
}
  0x23   :  { %s3995_s1 = smov 128   ;;  %s3996_s25 = smov 8  }
  0x24   :  { %27 = dma.hbm_to_vmem [thread:$0]  %s4198_s0, 256, %s22_s16, [#allocation3], %s3995_s1, %s3995_s1, %s3996_s25  }
  0x25   :  { %s3997_s28 = smov [#allocation7]   ;;  %s3917_s9 = scalar_lea.hbm %s4200_s2, 32768 }
  0x26   :  { %s45_s29 = sshll.u32 %s3997_s28, 4  ;;  %p3918_p2 = scmp.ne.s32.totalorder %s4200_s2, %s3917_s9  ;;  %s46_s29 = int_to_ptr.vmem [resolvable:$true] %s45_s29 }
  0x27   :  { %p3921_p3 = scmp.lt.u32.totalorder %s3917_s9, %s4200_s2 }
  0x29   :  { %p3923_p4 = pnand %p3921_p3, %p3918_p2 }
  0x2b   :  { %3926 = shalt.err (!%p3923_p4)
}
  0x2c   :  { %s3927_s17 = scalar_lea.vmem %s46_s29, 32768  ;;  %p3932_p6 = scmp.lt.s32.totalorder %s46_s29, %s46_s29 }
  0x2d   :  { %p3928_p5 = scmp.ne.s32.totalorder %s46_s29, %s3927_s17  ;;  %p3933_p7 = scmp.lt.s32.totalorder %s3927_s17, %s3927_s17 }
  0x2f   :  { %p3934_p8 = por %p3933_p7, %p3932_p6 }
  0x31   :  { %p3935_p9 = pnand %p3934_p8, %p3928_p5 }
  0x33   :  { %3938 = shalt.err (!%p3935_p9)
}
  0x34   :  { %s3998_s0 = smov 512   ;;  %s3999_s16 = smov 32  }
  0x35   :  { %51 = dma.hbm_to_vmem [thread:$0]  %s4200_s2, 32768, %s46_s29, [#allocation6], %s3998_s0, %s3998_s0, %s3999_s16  }
  0x36   :  { %s4000_s20 = smov [#allocation8]   ;;  %s3939_s24 = scalar_lea.hbm %s4201_s3, 16384 }
  0x37   :  { %s57_s21 = sshll.u32 %s4000_s20, 4  ;;  %p3940_p10 = scmp.ne.s32.totalorder %s4201_s3, %s3939_s24  ;;  %s58_s21 = int_to_ptr.vmem [resolvable:$true] %s57_s21 }
  0x38   :  { %p3943_p11 = scmp.lt.u32.totalorder %s3939_s24, %s4201_s3 }
  0x3a   :  { %p3945_p12 = pnand %p3943_p11, %p3940_p10 }
  0x3c   :  { %3948 = shalt.err (!%p3945_p12)
}
  0x3d   :  { %s3949_s8 = scalar_lea.vmem %s58_s21, 16384  ;;  %p3954_p0 = scmp.lt.s32.totalorder %s58_s21, %s58_s21 }
  0x3e   :  { %p3950_p13 = scmp.ne.s32.totalorder %s58_s21, %s3949_s8  ;;  %p3955_p1 = scmp.lt.s32.totalorder %s3949_s8, %s3949_s8 }
  0x40   :  { %p3956_p2 = por %p3955_p1, %p3954_p0 }
  0x42   :  { %p3957_p3 = pnand %p3956_p2, %p3950_p13 }
  0x44   :  { %3960 = shalt.err (!%p3957_p3)
}
  0x45   :  { %63 = dma.hbm_to_vmem [thread:$0]  %s4201_s3, 16384, %s58_s21, [#allocation9], %s3995_s1, %s3995_s1, %s3996_s25  }
  0x46   :  { %3983 = dma.done.wait [#allocation3], 256  }
  0x47   :  { %3984 = vsyncadd [#allocation3], 4294967040 }
  0x48   :  { %3985 = dma.done.wait [#allocation6], 33792  }
  0x49   :  { %3986 = vsyncadd [#allocation6], 4294933504 }
  0x4a   :  { %3987 = dma.done.wait [#allocation9], 16384  }
  0x4b   :  { %3988 = vsyncadd [#allocation9], 4294950912  ;;  %v4001_v0 = vmov 0   ;;  %v3653_v1 = vld [vmem:[#allocation5 + $0x4] ss:$16 sps:$4 sm:$0xff]   ;;  %v84_v6 = vld [vmem:[#allocation2 + $0x8] sm:$0xff] }
  0x4c   :  { %192 = vmatprep.mubr.bf16.mxu0 %v4001_v0  ;;  %235 = vmatprep.mubr.bf16.mxu1 %v4001_v0  ;;  %v3655_v2 = vld [vmem:[#allocation5] ss:$16 sps:$4 sm:$0xff]   ;;  %v3656_v3 = vld [vmem:[#allocation5 + $0x24] ss:$16 sps:$4 sm:$0xff]   ;;  %v3659_v7 = vld [vmem:[#allocation5 + $0xc] ss:$16 sps:$4 sm:$0xff]  }
  0x4d   :  { %160 = vmatprep.subr.bf16.mxu0 %v3653_v1  ;;  %v3658_v4 = vld [vmem:[#allocation5 + $0x20] ss:$16 sps:$4 sm:$0xff]   ;;  %v3661_v8 = vld [vmem:[#allocation5 + $0x8] ss:$16 sps:$4 sm:$0xff]   ;;  %v3662_v9 = vld [vmem:[#allocation5 + $0x2c] ss:$16 sps:$4 sm:$0xff]   ;;  %203 = vmatprep.subr.bf16.mxu1 %v3659_v7 }
  0x4e   :  { %v83_v5 = vld [vmem:[#allocation2] sm:$0xff]  ;;  %161 = vmatpush1.bf16.msra.mxu0 %v3655_v2  ;;  %v258_v11 = vld [vmem:[#allocation7] sm:$0xff]  ;;  %vm156_vm0 = vcmask 261120   ;;  %204 = vmatpush1.bf16.msra.mxu1 %v3661_v8  ;;  %v3664_v14 = vld [vmem:[#allocation5 + $0x28] ss:$16 sps:$4 sm:$0xff]  }
  0x4f   :  { %162 = vmatprep.subr.bf16.mxu0 %v3656_v3  ;;  %v85_v10 = vpack.c.bf16 %v84_v6, %v83_v5  ;;  %v262_v12 = vld [vmem:[#allocation7 + $0x20] sm:$0xff]  ;;  %v260_v13 = vld [vmem:[#allocation7 + $0x10] sm:$0xff]  ;;  %205 = vmatprep.subr.bf16.mxu1 %v3662_v9 }
  0x50   :  { %v264_v15 = vld [vmem:[#allocation7 + $0x30] sm:$0xff]  ;;  %v3210_v16 = vcombine.high %v258_v11, %v262_v12  ;;  %v266_v19 = vld [vmem:[#allocation7 + $0x40] sm:$0xff]  ;;  %v3209_v26 = vcombine.low %v258_v11, %v262_v12 }
  0x51   :  { %v3213_v17 = vcombine.low %v260_v13, %v264_v15  ;;  %v3214_v18 = vcombine.high %v260_v13, %v264_v15  ;;  %v268_v20 = vld [vmem:[#allocation7 + $0x50] sm:$0xff]  ;;  %v270_v22 = vld [vmem:[#allocation7 + $0x60] sm:$0xff] }
  0x52   :  { %163 = vmatpush1.bf16.msra.mxu0 %v3658_v4  ;;  %v272_v21 = vld [vmem:[#allocation7 + $0x70] sm:$0xff]  ;;  %206 = vmatpush1.bf16.msra.mxu1 %v3664_v14  ;;  %v3218_v28 = vcombine.high %v266_v19, %v270_v22  ;;  %v274_v29 = vld [vmem:[#allocation7 + $0x80] sm:$0xff]  ;;  %v3217_v34 = vcombine.low %v266_v19, %v270_v22 }
  0x53   :  { %v3222_v23 = vcombine.high %v268_v20, %v272_v21  ;;  %v276_v24 = vld [vmem:[#allocation7 + $0x90] sm:$0xff]  ;;  %2008 = vmatprep.subr.bf16.mxu0 %v3214_v18  ;;  %v3221_v27 = vcombine.low %v268_v20, %v272_v21  ;;  %1836 = vmatprep.subr.bf16.mxu1 %v3210_v16  ;;  %v278_v31 = vld [vmem:[#allocation7 + $0xa0] sm:$0xff] }
  0x54   :  { %v280_v25 = vld [vmem:[#allocation7 + $0xb0] sm:$0xff]  ;;  %v3226_v36 = vcombine.high %v274_v29, %v278_v31  ;;  %v282_v37 = vld [vmem:[#allocation7 + $0xc0] sm:$0xff]  ;;  %v3225_v42 = vcombine.low %v274_v29, %v278_v31 }
  0x55   :  { %3207 = vmatmul.mubr.msk.bf16.vlgmr.msra.gmra.mrb[0].mxu0 %vm156_vm0, %v85_v10  ;;  %v3230_v30 = vcombine.high %v276_v24, %v280_v25  ;;  %v284_v32 = vld [vmem:[#allocation7 + $0xd0] sm:$0xff]  ;;  %3208 = vmatmul.mubr.msk.bf16.vlgmr.msra.gmra.mrb[0].mxu1 %vm156_vm0, %v85_v10  ;;  %v3229_v35 = vcombine.low %v276_v24, %v280_v25  ;;  %v286_v39 = vld [vmem:[#allocation7 + $0xe0] sm:$0xff] }
  0x56   :  { %2009 = vmatpush1.bf16.msra.mxu0 %v3213_v17  ;;  %v288_v33 = vld [vmem:[#allocation7 + $0xf0] sm:$0xff]  ;;  %1837 = vmatpush1.bf16.msra.mxu1 %v3209_v26  ;;  %v3234_v44 = vcombine.high %v282_v37, %v286_v39  ;;  %v290_v45 = vld [vmem:[#allocation7 + $0x100] sm:$0xff]  ;;  %v3233_v50 = vcombine.low %v282_v37, %v286_v39 }
  0x57   :  { %2010 = vmatprep.subr.bf16.mxu0 %v3222_v23  ;;  %1838 = vmatprep.subr.bf16.mxu1 %v3218_v28  ;;  %v3238_v38 = vcombine.high %v284_v32, %v288_v33  ;;  %v292_v40 = vld [vmem:[#allocation7 + $0x110] sm:$0xff]  ;;  %v3237_v43 = vcombine.low %v284_v32, %v288_v33  ;;  %v294_v47 = vld [vmem:[#allocation7 + $0x120] sm:$0xff] }
  0x58   :  { %v296_v41 = vld [vmem:[#allocation7 + $0x130] sm:$0xff]  ;;  %v298_v52 = vld [vmem:[#allocation7 + $0x140] sm:$0xff]  ;;  %v3242_v53 = vcombine.high %v290_v45, %v294_v47  ;;  %v3241_v58 = vcombine.low %v290_v45, %v294_v47 }
  0x59   :  { %v3246_v46 = vcombine.high %v292_v40, %v296_v41  ;;  %v300_v48 = vld [vmem:[#allocation7 + $0x150] sm:$0xff]  ;;  %v3245_v51 = vcombine.low %v292_v40, %v296_v41  ;;  %v302_v54 = vld [vmem:[#allocation7 + $0x160] sm:$0xff] }
  0x5a   :  { %2011 = vmatpush1.bf16.msra.mxu0 %v3221_v27  ;;  %1839 = vmatpush1.bf16.msra.mxu1 %v3217_v34  ;;  %v304_v49 = vld [vmem:[#allocation7 + $0x170] sm:$0xff]  ;;  %v306_v60 = vld [vmem:[#allocation7 + $0x180] sm:$0xff]  ;;  %v3250_v0 = vcombine.high %v298_v52, %v302_v54  ;;  %v3249_v2 = vcombine.low %v298_v52, %v302_v54 }
  0x5b   :  { %2012 = vmatprep.subr.bf16.mxu0 %v3230_v30  ;;  %1840 = vmatprep.subr.bf16.mxu1 %v3226_v36  ;;  %v3254_v55 = vcombine.high %v300_v48, %v304_v49  ;;  %v308_v56 = vld [vmem:[#allocation7 + $0x190] sm:$0xff]  ;;  %v3253_v59 = vcombine.low %v300_v48, %v304_v49  ;;  %v310_v61 = vld [vmem:[#allocation7 + $0x1a0] sm:$0xff] }
  0x5c   :  { %v312_v57 = vld [vmem:[#allocation7 + $0x1b0] sm:$0xff]  ;;  %v314_v4 = vld [vmem:[#allocation7 + $0x1c0] sm:$0xff]  ;;  %v3258_v8 = vcombine.high %v306_v60, %v310_v61  ;;  %v3257_v10 = vcombine.low %v306_v60, %v310_v61 }
  0x5d   :  { %v316_v62 = vld [vmem:[#allocation7 + $0x1d0] sm:$0xff]  ;;  %v3262_v1 = vcombine.high %v308_v56, %v312_v57  ;;  %v3261_v3 = vcombine.low %v308_v56, %v312_v57  ;;  %v318_v5 = vld [vmem:[#allocation7 + $0x1e0] sm:$0xff] }
  0x5e   :  { %2013 = vmatpush1.bf16.msra.mxu0 %v3229_v35  ;;  %1841 = vmatpush1.bf16.msra.mxu1 %v3225_v42  ;;  %v320_v63 = vld [vmem:[#allocation7 + $0x1f0] sm:$0xff]  ;;  %v322_v12 = vld [vmem:[#allocation7 + $0x200] sm:$0xff]  ;;  %v3266_v16 = vcombine.high %v314_v4, %v318_v5  ;;  %v3265_v18 = vcombine.low %v314_v4, %v318_v5 }
  0x5f   :  { %2014 = vmatprep.subr.bf16.mxu0 %v3238_v38  ;;  %1842 = vmatprep.subr.bf16.mxu1 %v3234_v44  ;;  %v324_v6 = vld [vmem:[#allocation7 + $0x210] sm:$0xff]  ;;  %v3270_v9 = vcombine.high %v316_v62, %v320_v63  ;;  %v3269_v11 = vcombine.low %v316_v62, %v320_v63  ;;  %v326_v13 = vld [vmem:[#allocation7 + $0x220] sm:$0xff] }
  0x60   :  { %v328_v7 = vld [vmem:[#allocation7 + $0x230] sm:$0xff]  ;;  %v330_v20 = vld [vmem:[#allocation7 + $0x240] sm:$0xff]  ;;  %v3274_v24 = vcombine.high %v322_v12, %v326_v13  ;;  %v3273_v26 = vcombine.low %v322_v12, %v326_v13 }
  0x61   :  { %v332_v14 = vld [vmem:[#allocation7 + $0x250] sm:$0xff]  ;;  %v3278_v17 = vcombine.high %v324_v6, %v328_v7  ;;  %v3277_v19 = vcombine.low %v324_v6, %v328_v7  ;;  %v334_v21 = vld [vmem:[#allocation7 + $0x260] sm:$0xff] }
  0x62   :  { %2015 = vmatpush1.bf16.msra.mxu0 %v3237_v43  ;;  %1843 = vmatpush1.bf16.msra.mxu1 %v3233_v50  ;;  %v336_v15 = vld [vmem:[#allocation7 + $0x270] sm:$0xff]  ;;  %v338_v28 = vld [vmem:[#allocation7 + $0x280] sm:$0xff]  ;;  %v3282_v32 = vcombine.high %v330_v20, %v334_v21  ;;  %v3281_v34 = vcombine.low %v330_v20, %v334_v21  ;;  %v96_v20 = vlaneseq }
  0x63   :  { %2016 = vmatprep.subr.bf16.mxu0 %v3246_v46  ;;  %1844 = vmatprep.subr.bf16.mxu1 %v3242_v53  ;;  %v340_v22 = vld [vmem:[#allocation7 + $0x290] sm:$0xff]  ;;  %v3286_v25 = vcombine.high %v332_v14, %v336_v15  ;;  %v3285_v27 = vcombine.low %v332_v14, %v336_v15  ;;  %v342_v29 = vld [vmem:[#allocation7 + $0x2a0] sm:$0xff] }
  0x64   :  { %v344_v23 = vld [vmem:[#allocation7 + $0x2b0] sm:$0xff]  ;;  %v346_v36 = vld [vmem:[#allocation7 + $0x2c0] sm:$0xff]  ;;  %v3290_v40 = vcombine.high %v338_v28, %v342_v29  ;;  %v3289_v42 = vcombine.low %v338_v28, %v342_v29  ;;  %v4106_v21 = vshrl.u32 %v96_v20, 7 }
  0x65   :  { %v348_v30 = vld [vmem:[#allocation7 + $0x2d0] sm:$0xff]  ;;  %v3294_v33 = vcombine.high %v340_v22, %v344_v23  ;;  %v3293_v35 = vcombine.low %v340_v22, %v344_v23  ;;  %v350_v37 = vld [vmem:[#allocation7 + $0x2e0] sm:$0xff] }
  0x66   :  { %2017 = vmatpush1.bf16.msra.mxu0 %v3245_v51  ;;  %1845 = vmatpush1.bf16.msra.mxu1 %v3241_v58  ;;  %v352_v31 = vld [vmem:[#allocation7 + $0x2f0] sm:$0xff]  ;;  %v354_v44 = vld [vmem:[#allocation7 + $0x300] sm:$0xff]  ;;  %v3298_v48 = vcombine.high %v346_v36, %v350_v37  ;;  %v3297_v50 = vcombine.low %v346_v36, %v350_v37  ;;  %v4109_v22 = vsub.s32 0, %v4106_v21  ;;  %v110_v28 = vsub.s32 3, %v4106_v21 }
  0x67   :  { %2018 = vmatprep.subr.bf16.mxu0 %v3254_v55  ;;  %1846 = vmatprep.subr.bf16.mxu1 %v3250_v0  ;;  %v356_v38 = vld [vmem:[#allocation7 + $0x310] sm:$0xff]  ;;  %v3302_v41 = vcombine.high %v348_v30, %v352_v31  ;;  %v3301_v43 = vcombine.low %v348_v30, %v352_v31  ;;  %v358_v45 = vld [vmem:[#allocation7 + $0x320] sm:$0xff] }
  0x68   :  { %v360_v39 = vld [vmem:[#allocation7 + $0x330] sm:$0xff]  ;;  %v362_v52 = vld [vmem:[#allocation7 + $0x340] sm:$0xff]  ;;  %v3306_v54 = vcombine.high %v354_v44, %v358_v45  ;;  %v3305_v56 = vcombine.low %v354_v44, %v358_v45 }
  0x69   :  { %v364_v46 = vld [vmem:[#allocation7 + $0x350] sm:$0xff]  ;;  %v3310_v49 = vcombine.high %v356_v38, %v360_v39  ;;  %v3309_v51 = vcombine.low %v356_v38, %v360_v39  ;;  %v366_v53 = vld [vmem:[#allocation7 + $0x360] sm:$0xff] }
  0x6a   :  { %2019 = vmatpush1.bf16.msra.mxu0 %v3253_v59  ;;  %1847 = vmatpush1.bf16.msra.mxu1 %v3249_v2  ;;  %v368_v47 = vld [vmem:[#allocation7 + $0x370] sm:$0xff]  ;;  %v3314_v58 = vcombine.high %v362_v52, %v366_v53  ;;  %v3313_v59 = vcombine.low %v362_v52, %v366_v53  ;;  %v370_v60 = vld [vmem:[#allocation7 + $0x380] sm:$0xff] }
  0x6b   :  { %2020 = vmatprep.subr.bf16.mxu0 %v3262_v1  ;;  %1848 = vmatprep.subr.bf16.mxu1 %v3258_v8  ;;  %v3318_v55 = vcombine.high %v364_v46, %v368_v47  ;;  %v3317_v57 = vcombine.low %v364_v46, %v368_v47  ;;  %v374_v61 = vld [vmem:[#allocation7 + $0x3a0] sm:$0xff]  ;;  %v372_v62 = vld [vmem:[#allocation7 + $0x390] sm:$0xff] }
  0x6c   :  { %v3322_v63 = vcombine.high %v370_v60, %v374_v61  ;;  %v376_v0 = vld [vmem:[#allocation7 + $0x3b0] sm:$0xff]  ;;  %v3321_v1 = vcombine.low %v370_v60, %v374_v61  ;;  %v378_v4 = vld [vmem:[#allocation7 + $0x3c0] sm:$0xff] }
  0x6d   :  { %v3325_v2 = vcombine.low %v372_v62, %v376_v0  ;;  %v382_v5 = vld [vmem:[#allocation7 + $0x3e0] sm:$0xff]  ;;  %v380_v6 = vld [vmem:[#allocation7 + $0x3d0] sm:$0xff] }
  0x6e   :  { %2021 = vmatpush1.bf16.msra.mxu0 %v3261_v3  ;;  %1849 = vmatpush1.bf16.msra.mxu1 %v3257_v10  ;;  %v3326_v3 = vcombine.high %v372_v62, %v376_v0  ;;  %v3330_v7 = vcombine.high %v378_v4, %v382_v5  ;;  %v384_v8 = vld [vmem:[#allocation7 + $0x3f0] sm:$0xff]  ;;  %v4102_v12 = vld [vmem:[#allocation7 + $0x400] sm:$0xff] }
  0x6f   :  { %2022 = vmatprep.subr.bf16.mxu0 %v3270_v9  ;;  %1850 = vmatprep.subr.bf16.mxu1 %v3266_v16  ;;  %v3329_v9 = vcombine.low %v378_v4, %v382_v5  ;;  %v3333_v10 = vcombine.low %v380_v6, %v384_v8  ;;  %v390_v13 = vld [vmem:[#allocation7 + $0x420] sm:$0xff]  ;;  %v388_v14 = vld [vmem:[#allocation7 + $0x410] sm:$0xff] }
  0x70   :  { %v3338_v15 = vcombine.high %v4102_v12, %v390_v13  ;;  %v392_v16 = vld [vmem:[#allocation7 + $0x430] sm:$0xff]  ;;  %v398_v47 = vld [vmem:[#allocation7 + $0x460] sm:$0xff] }
  0x71   :  { %v94_v23 = vld [vmem:[%s4202_s4] sm:$0xf]  ;;  %v402_v61 = vld [vmem:[#allocation7 + $0x480] sm:$0xff] }
  0x72   :  { %2023 = vmatpush1.bf16.msra.mxu0 %v3269_v11  ;;  %1851 = vmatpush1.bf16.msra.mxu1 %v3265_v18  ;;  %v3334_v11 = vcombine.high %v380_v6, %v384_v8  ;;  %v3341_v18 = vcombine.low %v388_v14, %v392_v16  ;;  %v404_v0 = vld [vmem:[#allocation7 + $0x490] sm:$0xff] }
  0x73   :  { %2024 = vmatprep.subr.bf16.mxu0 %v3278_v17  ;;  %1852 = vmatprep.subr.bf16.mxu1 %v3274_v24  ;;  %v3337_v17 = vcombine.low %v4102_v12, %v390_v13  ;;  %v4115_v24 = vsub.s32 1, %v4106_v21  ;;  %v416_v12 = vld [vmem:[#allocation7 + $0x4f0] sm:$0xff] }
  0x74   :  { %v424_v20 = vld [vmem:[#allocation7 + $0x530] sm:$0xff] }
  0x76   :  { %2025 = vmatpush1.bf16.msra.mxu0 %v3277_v19  ;;  %1853 = vmatpush1.bf16.msra.mxu1 %v3273_v26  ;;  %v3342_v19 = vcombine.high %v388_v14, %v392_v16  ;;  %v106_v26 = vsub.s32 2, %v4106_v21 }
  0x77   :  { %2026 = vmatprep.subr.bf16.mxu0 %v3286_v25  ;;  %1854 = vmatprep.subr.bf16.mxu1 %v3282_v32  ;;  %v99_v25 = vrot.slane %v94_v23, %v4109_v22 }
  0x78   :  { %v107_v32 = vrot.slane %v94_v23, %v106_v26 }
  0x7a   :  { %2027 = vmatpush1.bf16.msra.mxu0 %v3285_v27  ;;  %1855 = vmatpush1.bf16.msra.mxu1 %v3281_v34  ;;  %v103_v27 = vrot.slane %v94_v23, %v4115_v24 }
  0x7b   :  { %2028 = vmatprep.subr.bf16.mxu0 %v3294_v33  ;;  %1856 = vmatprep.subr.bf16.mxu1 %v3290_v40 }
  0x7e   :  { %2029 = vmatpush1.bf16.msra.mxu0 %v3293_v35  ;;  %1857 = vmatpush1.bf16.msra.mxu1 %v3289_v42  ;;  %v111_v35 = vrot.slane %v94_v23, %v110_v28  ;;  %v394_v42 = vld [vmem:[#allocation7 + $0x440] sm:$0xff] }
  0x7f   :  { %2030 = vmatprep.subr.bf16.mxu0 %v3302_v41  ;;  %1858 = vmatprep.subr.bf16.mxu1 %v3298_v48  ;;  %v396_v48 = vld [vmem:[#allocation7 + $0x450] sm:$0xff]  ;;  %v3345_v4 = vcombine.low %v394_v42, %v398_v47 }
  0x82   :  { %2031 = vmatpush1.bf16.msra.mxu0 %v3301_v43  ;;  %1859 = vmatpush1.bf16.msra.mxu1 %v3297_v50 }
  0x83   :  { %2032 = vmatprep.subr.bf16.mxu0 %v3310_v49  ;;  %1860 = vmatprep.subr.bf16.mxu1 %v3306_v54  ;;  %v400_v49 = vld [vmem:[#allocation7 + $0x470] sm:$0xff] }
  0x84   :  { %v3350_v60 = vcombine.high %v396_v48, %v400_v49  ;;  %v3349_v5 = vcombine.low %v396_v48, %v400_v49  ;;  %v444_v48 = vld [vmem:[#allocation7 + $0x5d0] sm:$0xff] }
  0x85   :  { %v448_v49 = vld [vmem:[#allocation7 + $0x5f0] sm:$0xff] }
  0x86   :  { %2033 = vmatpush1.bf16.msra.mxu0 %v3309_v51  ;;  %1861 = vmatpush1.bf16.msra.mxu1 %v3305_v56 }
  0x87   :  { %2034 = vmatprep.subr.bf16.mxu0 %v3318_v55  ;;  %1862 = vmatprep.subr.bf16.mxu1 %v3314_v58 }
  0x8a   :  { %2035 = vmatpush1.bf16.msra.mxu0 %v3317_v57  ;;  %1863 = vmatpush1.bf16.msra.mxu1 %v3313_v59  ;;  %v3346_v59 = vcombine.high %v394_v42, %v398_v47  ;;  %v446_v47 = vld [vmem:[#allocation7 + $0x5e0] sm:$0xff] }
  0x8b   :  { %1864 = vmatprep.subr.bf16.mxu1 %v3322_v63  ;;  %2036 = vmatprep.subr.bf16.mxu0 %v3326_v3  ;;  %v406_v63 = vld [vmem:[#allocation7 + $0x4a0] sm:$0xff] }
  0x8c   :  { %v3353_v13 = vcombine.low %v402_v61, %v406_v63 }
  0x8e   :  { %1865 = vmatpush1.bf16.msra.mxu1 %v3321_v1  ;;  %2037 = vmatpush1.bf16.msra.mxu0 %v3325_v2  ;;  %v408_v1 = vld [vmem:[#allocation7 + $0x4b0] sm:$0xff] }
  0x8f   :  { %1866 = vmatprep.subr.bf16.mxu1 %v3330_v7  ;;  %2038 = vmatprep.subr.bf16.mxu0 %v3334_v11  ;;  %v3354_v7 = vcombine.high %v402_v61, %v406_v63  ;;  %v3358_v8 = vcombine.high %v404_v0, %v408_v1  ;;  %v412_v11 = vld [vmem:[#allocation7 + $0x4d0] sm:$0xff]  ;;  %v3357_v14 = vcombine.low %v404_v0, %v408_v1  ;;  %v458_v0 = vld [vmem:[#allocation7 + $0x640] sm:$0xff] }
  0x90   :  { %v3366_v16 = vcombine.high %v412_v11, %v416_v12  ;;  %v3397_v61 = vcombine.low %v444_v48, %v448_v49  ;;  %v462_v1 = vld [vmem:[#allocation7 + $0x660] sm:$0xff] }
  0x92   :  { %1867 = vmatpush1.bf16.msra.mxu1 %v3329_v9  ;;  %2039 = vmatpush1.bf16.msra.mxu0 %v3333_v10  ;;  %v410_v9 = vld [vmem:[#allocation7 + $0x4c0] sm:$0xff] }
  0x93   :  { %1879 = vmatprep.subr.bf16.mxu1 %v3338_v15  ;;  %2051 = vmatprep.subr.bf16.mxu0 %v3342_v19  ;;  %v414_v10 = vld [vmem:[#allocation7 + $0x4e0] sm:$0xff]  ;;  %v420_v19 = vld [vmem:[#allocation7 + $0x510] sm:$0xff] }
  0x94   :  { %v3362_v15 = vcombine.high %v410_v9, %v414_v10  ;;  %v3361_v23 = vcombine.low %v410_v9, %v414_v10  ;;  %v466_v10 = vld [vmem:[#allocation7 + $0x680] sm:$0xff] }
 0x128   :  { %v194_v29 = vpop.f32.mrb[0].mxu0  ;;  %v237_v39 = vpop.f32.mrb[0].mxu1 }
 0x129   :  { %v195_v30 = vadd.f32 %v194_v29, %v99_v25  ;;  %v196_v31 = vpop.f32.mrb[1].mxu0  ;;  %v238_v43 = vadd.f32 %v237_v39, %v107_v32  ;;  %v239_v44 = vpop.f32.mrb[1].mxu1  ;;  %v3374_v29 = vcombine.high %v420_v19, %v424_v20  ;;  %v438_v39 = vld [vmem:[#allocation7 + $0x5a0] sm:$0xff] }
 0x12a   :  { %v197_v33 = vadd.f32 %v196_v31, %v103_v27  ;;  %v198_v34 = vpop.f32.mrb[2].mxu0  ;;  %v240_v50 = vadd.f32 %v239_v44, %v111_v35  ;;  %v241_v51 = vpop.f32.mrb[2].mxu1  ;;  %v430_v31 = vld [vmem:[#allocation7 + $0x560] sm:$0xff] }
 0x12b   :  { %v199_v36 = vadd.f32 %v198_v34, %v99_v25  ;;  %v200_v37 = vpop.f32.mrb[3].mxu0  ;;  %v246_v40 = vmax.f32 %v195_v30, 0.0  ;;  %v248_v53 = vmax.f32 %v238_v43, 0.0  ;;  %v242_v54 = vadd.f32 %v241_v51, %v107_v32  ;;  %v243_v55 = vpop.f32.mrb[3].mxu1  ;;  %v426_v30 = vld [vmem:[#allocation7 + $0x540] sm:$0xff]  ;;  %v428_v32 = vld [vmem:[#allocation7 + $0x550] sm:$0xff] }
 0x12c   :  { %v201_v38 = vadd.f32 %v200_v37, %v103_v27  ;;  %v247_v45 = vmax.f32 %v197_v33, 0.0  ;;  %v249_v57 = vmax.f32 %v240_v50, 0.0  ;;  %v244_v58 = vadd.f32 %v243_v55, %v111_v35  ;;  %v432_v33 = vld [vmem:[#allocation7 + $0x570] sm:$0xff]  ;;  %v450_v55 = vld [vmem:[#allocation7 + $0x600] sm:$0xff] }
 0x12d   :  { %v250_v41 = vmax.f32 %v199_v36, 0.0  ;;  %v252_v62 = vmax.f32 %v242_v54, 0.0  ;;  %v3365_v25 = vcombine.low %v412_v11, %v416_v12  ;;  %v3373_v35 = vcombine.low %v420_v19, %v424_v20  ;;  %v470_v11 = vld [vmem:[#allocation7 + $0x6a0] sm:$0xff]  ;;  %v468_v12 = vld [vmem:[#allocation7 + $0x690] sm:$0xff] }
 0x12e   :  { %v251_v46 = vmax.f32 %v201_v38, 0.0  ;;  %v253_v2 = vmax.f32 %v244_v58, 0.0  ;;  %v3378_v36 = vcombine.high %v426_v30, %v430_v31  ;;  %v3382_v37 = vcombine.high %v428_v32, %v432_v33  ;;  %v434_v38 = vld [vmem:[#allocation7 + $0x580] sm:$0xff]  ;;  %v452_v58 = vld [vmem:[#allocation7 + $0x610] sm:$0xff] }
 0x12f   :  { %v4125_v52 = vpack.c.bf16 %v250_v41, %v246_v40  ;;  %v4133_v3 = vpack.c.bf16 %v252_v62, %v248_v53  ;;  %v436_v40 = vld [vmem:[#allocation7 + $0x590] sm:$0xff]  ;;  %v3377_v42 = vcombine.low %v426_v30, %v430_v31  ;;  %v3381_v43 = vcombine.low %v428_v32, %v432_v33  ;;  %v478_v19 = vld [vmem:[#allocation7 + $0x6e0] sm:$0xff] }
 0x130   :  { %v4127_v56 = vpack.c.bf16 %v251_v46, %v247_v45  ;;  %v4135_v6 = vpack.c.bf16 %v253_v2, %v249_v57  ;;  %v440_v41 = vld [vmem:[#allocation7 + $0x5b0] sm:$0xff]  ;;  %v3386_v44 = vcombine.high %v434_v38, %v438_v39  ;;  %v442_v46 = vld [vmem:[#allocation7 + $0x5c0] sm:$0xff]  ;;  %v3385_v50 = vcombine.low %v434_v38, %v438_v39 }
 0x131   :  { %v3390_v45 = vcombine.high %v436_v40, %v440_v41  ;;  %v3389_v51 = vcombine.low %v436_v40, %v440_v41  ;;  %v3394_v53 = vcombine.high %v442_v46, %v446_v47  ;;  %v3398_v54 = vcombine.high %v444_v48, %v448_v49  ;;  %v454_v57 = vld [vmem:[#allocation7 + $0x620] sm:$0xff]  ;;  %v460_v2 = vld [vmem:[#allocation7 + $0x650] sm:$0xff] }
 0x132   :  { %1868 = vmatprep.mubr.bf16.mxu1 %v4127_v56  ;;  %2040 = vmatprep.mubr.bf16.mxu0 %v4127_v56  ;;  %v3402_v62 = vcombine.high %v450_v55, %v454_v57  ;;  %v476_v20 = vld [vmem:[#allocation7 + $0x6d0] sm:$0xff]  ;;  %v482_v31 = vld [vmem:[#allocation7 + $0x700] sm:$0xff] }
 0x133   :  { %1869 = vmatmul.mubr.bf16.vlgmr.msra.gmra.mrb[4].mxu1 %v4125_v52  ;;  %2041 = vmatmul.mubr.bf16.vlgmr.msra.gmra.mrb[4].mxu0 %v4125_v52  ;;  %v486_v32 = vld [vmem:[#allocation7 + $0x720] sm:$0xff]  ;;  %v484_v33 = vld [vmem:[#allocation7 + $0x710] sm:$0xff] }
 0x134   :  { %1880 = vmatpush1.bf16.msra.mxu1 %v3337_v17  ;;  %2052 = vmatpush1.bf16.msra.mxu0 %v3341_v18  ;;  %v418_v17 = vld [vmem:[#allocation7 + $0x500] sm:$0xff]  ;;  %v492_v41 = vld [vmem:[#allocation7 + $0x750] sm:$0xff] }
 0x135   :  { %1881 = vmatprep.subr.bf16.mxu1 %v3346_v59  ;;  %2053 = vmatprep.subr.bf16.mxu0 %v3350_v60  ;;  %v422_v18 = vld [vmem:[#allocation7 + $0x520] sm:$0xff]  ;;  %v456_v59 = vld [vmem:[#allocation7 + $0x630] sm:$0xff]  ;;  %v3393_v60 = vcombine.low %v442_v46, %v446_v47 }
 0x136   :  { %1911 = vmatprep.mubr.bf16.mxu1 %v4135_v6  ;;  %2083 = vmatprep.mubr.bf16.mxu0 %v4135_v6  ;;  %v3370_v27 = vcombine.high %v418_v17, %v422_v18  ;;  %v3369_v34 = vcombine.low %v418_v17, %v422_v18  ;;  %v3406_v63 = vcombine.high %v452_v58, %v456_v59  ;;  %v474_v18 = vld [vmem:[#allocation7 + $0x6c0] sm:$0xff]  ;;  %v500_v49 = vld [vmem:[#allocation7 + $0x790] sm:$0xff] }
 0x137   :  { %v490_v39 = vld [vmem:[#allocation7 + $0x740] sm:$0xff] }
 0x138   :  { %1882 = vmatpush1.bf16.msra.mxu1 %v3345_v4  ;;  %2054 = vmatpush1.bf16.msra.mxu0 %v3349_v5  ;;  %v464_v4 = vld [vmem:[#allocation7 + $0x670] sm:$0xff]  ;;  %v3401_v5 = vcombine.low %v450_v55, %v454_v57  ;;  %v494_v40 = vld [vmem:[#allocation7 + $0x760] sm:$0xff] }
 0x139   :  { %1883 = vmatprep.subr.bf16.mxu1 %v3354_v7  ;;  %2055 = vmatprep.subr.bf16.mxu0 %v3358_v8  ;;  %v3405_v7 = vcombine.low %v452_v58, %v456_v59  ;;  %v3410_v8 = vcombine.high %v458_v0, %v462_v1  ;;  %v3414_v9 = vcombine.high %v460_v2, %v464_v4  ;;  %v498_v47 = vld [vmem:[#allocation7 + $0x780] sm:$0xff]  ;;  %v508_v59 = vld [vmem:[#allocation7 + $0x7d0] sm:$0xff] }
 0x13a   :  { %v502_v48 = vld [vmem:[#allocation7 + $0x7a0] sm:$0xff] }
 0x13b   :  { %v506_v57 = vld [vmem:[#allocation7 + $0x7c0] sm:$0xff] }
 0x13c   :  { %1884 = vmatpush1.bf16.msra.mxu1 %v3353_v13  ;;  %2056 = vmatpush1.bf16.msra.mxu0 %v3357_v14  ;;  %v472_v13 = vld [vmem:[#allocation7 + $0x6b0] sm:$0xff]  ;;  %v3409_v14 = vcombine.low %v458_v0, %v462_v1  ;;  %v510_v58 = vld [vmem:[#allocation7 + $0x7e0] sm:$0xff]  ;;  %v259_v1 = vld [vmem:[#allocation7 + $0x8] sm:$0xff] }
 0x13d   :  { %1885 = vmatprep.subr.bf16.mxu1 %v3362_v15  ;;  %2057 = vmatprep.subr.bf16.mxu0 %v3366_v16  ;;  %v3413_v15 = vcombine.low %v460_v2, %v464_v4  ;;  %v3418_v16 = vcombine.high %v466_v10, %v470_v11  ;;  %v3422_v17 = vcombine.high %v468_v12, %v472_v13  ;;  %v263_v2 = vld [vmem:[#allocation7 + $0x28] sm:$0xff] }
 0x13e   :  { %v3457_v4 = vcombine.low %v506_v57, %v510_v58 }
 0x140   :  { %1886 = vmatpush1.bf16.msra.mxu1 %v3361_v23  ;;  %2058 = vmatpush1.bf16.msra.mxu0 %v3365_v25  ;;  %v480_v23 = vld [vmem:[#allocation7 + $0x6f0] sm:$0xff]  ;;  %v3417_v25 = vcombine.low %v466_v10, %v470_v11  ;;  %v3211_v10 = vcombine.low %v259_v1, %v263_v2 }
 0x141   :  { %1887 = vmatprep.subr.bf16.mxu1 %v3370_v27  ;;  %2059 = vmatprep.subr.bf16.mxu0 %v3374_v29  ;;  %v3421_v27 = vcombine.low %v468_v12, %v472_v13  ;;  %v3426_v29 = vcombine.high %v474_v18, %v478_v19  ;;  %v3430_v30 = vcombine.high %v476_v20, %v480_v23  ;;  %v275_v12 = vld [vmem:[#allocation7 + $0x88] sm:$0xff] }
 0x142   :  { %v279_v13 = vld [vmem:[#allocation7 + $0xa8] sm:$0xff] }
 0x144   :  { %1888 = vmatpush1.bf16.msra.mxu1 %v3369_v34  ;;  %2060 = vmatpush1.bf16.msra.mxu0 %v3373_v35  ;;  %v488_v34 = vld [vmem:[#allocation7 + $0x730] sm:$0xff]  ;;  %v3425_v35 = vcombine.low %v474_v18, %v478_v19  ;;  %v3227_v18 = vcombine.low %v275_v12, %v279_v13 }
 0x145   :  { %1889 = vmatprep.subr.bf16.mxu1 %v3378_v36  ;;  %2061 = vmatprep.subr.bf16.mxu0 %v3382_v37  ;;  %v3429_v36 = vcombine.low %v476_v20, %v480_v23  ;;  %v3434_v37 = vcombine.high %v482_v31, %v486_v32  ;;  %v3438_v38 = vcombine.high %v484_v33, %v488_v34  ;;  %v291_v20 = vld [vmem:[#allocation7 + $0x108] sm:$0xff] }
 0x146   :  { %v295_v23 = vld [vmem:[#allocation7 + $0x128] sm:$0xff] }
 0x148   :  { %1890 = vmatpush1.bf16.msra.mxu1 %v3377_v42  ;;  %2062 = vmatpush1.bf16.msra.mxu0 %v3381_v43  ;;  %v496_v42 = vld [vmem:[#allocation7 + $0x770] sm:$0xff]  ;;  %v3433_v43 = vcombine.low %v482_v31, %v486_v32  ;;  %v3243_v31 = vcombine.low %v291_v20, %v295_v23 }
 0x149   :  { %1891 = vmatprep.subr.bf16.mxu1 %v3386_v44  ;;  %2063 = vmatprep.subr.bf16.mxu0 %v3390_v45  ;;  %v3437_v44 = vcombine.low %v484_v33, %v488_v34  ;;  %v3442_v45 = vcombine.high %v490_v39, %v494_v40  ;;  %v3446_v46 = vcombine.high %v492_v41, %v496_v42  ;;  %v307_v33 = vld [vmem:[#allocation7 + $0x188] sm:$0xff] }
 0x14a   :  { %v311_v34 = vld [vmem:[#allocation7 + $0x1a8] sm:$0xff] }
 0x14c   :  { %1892 = vmatpush1.bf16.msra.mxu1 %v3385_v50  ;;  %2064 = vmatpush1.bf16.msra.mxu0 %v3389_v51  ;;  %v504_v50 = vld [vmem:[#allocation7 + $0x7b0] sm:$0xff]  ;;  %v3441_v51 = vcombine.low %v490_v39, %v494_v40  ;;  %v3259_v39 = vcombine.low %v307_v33, %v311_v34 }
 0x14d   :  { %1893 = vmatprep.subr.bf16.mxu1 %v3394_v53  ;;  %2065 = vmatprep.subr.bf16.mxu0 %v3398_v54  ;;  %v3445_v53 = vcombine.low %v492_v41, %v496_v42  ;;  %v3450_v54 = vcombine.high %v498_v47, %v502_v48  ;;  %v3454_v55 = vcombine.high %v500_v49, %v504_v50  ;;  %v323_v41 = vld [vmem:[#allocation7 + $0x208] sm:$0xff] }
 0x14e   :  { %v327_v42 = vld [vmem:[#allocation7 + $0x228] sm:$0xff] }
 0x150   :  { %1894 = vmatpush1.bf16.msra.mxu1 %v3393_v60  ;;  %2066 = vmatpush1.bf16.msra.mxu0 %v3397_v61  ;;  %v512_v60 = vld [vmem:[#allocation7 + $0x7f0] sm:$0xff]  ;;  %v3449_v61 = vcombine.low %v498_v47, %v502_v48  ;;  %v3667_v47 = vld [vmem:[#allocation8 + $0x4] ss:$8 sps:$4 sm:$0xff]   ;;  %v3275_v48 = vcombine.low %v323_v41, %v327_v42 }
 0x151   :  { %1895 = vmatprep.subr.bf16.mxu1 %v3402_v62  ;;  %2067 = vmatprep.subr.bf16.mxu0 %v3406_v63  ;;  %v3453_v62 = vcombine.low %v500_v49, %v504_v50  ;;  %v3458_v63 = vcombine.high %v506_v57, %v510_v58  ;;  %v3462_v0 = vcombine.high %v508_v59, %v512_v60  ;;  %v3665_v49 = vld [vmem:[#allocation8] ss:$8 sps:$4 sm:$0xff]   ;;  %v3668_v57 = vld [vmem:[#allocation8 + $0x10] ss:$8 sps:$4 sm:$0xff]  }
 0x154   :  { %1896 = vmatpush1.bf16.msra.mxu1 %v3401_v5  ;;  %2068 = vmatpush1.bf16.msra.mxu0 %v3405_v7  ;;  %v3461_v5 = vcombine.low %v508_v59, %v512_v60  ;;  %v3212_v7 = vcombine.high %v259_v1, %v263_v2  ;;  %v347_v59 = vld [vmem:[#allocation7 + $0x2c8] sm:$0xff] }
 0x155   :  { %1897 = vmatprep.subr.bf16.mxu1 %v3410_v8  ;;  %2069 = vmatprep.subr.bf16.mxu0 %v3414_v9  ;;  %v267_v8 = vld [vmem:[#allocation7 + $0x48] sm:$0xff] }
 0x156   :  { %v271_v9 = vld [vmem:[#allocation7 + $0x68] sm:$0xff] }
 0x157   :  { %v3220_v11 = vcombine.high %v267_v8, %v271_v9  ;;  %v351_v60 = vld [vmem:[#allocation7 + $0x2e8] sm:$0xff] }
 0x158   :  { %1898 = vmatpush1.bf16.msra.mxu1 %v3409_v14  ;;  %2070 = vmatpush1.bf16.msra.mxu0 %v3413_v15  ;;  %v3219_v14 = vcombine.low %v267_v8, %v271_v9  ;;  %v3228_v15 = vcombine.high %v275_v12, %v279_v13  ;;  %v355_v1 = vld [vmem:[#allocation7 + $0x308] sm:$0xff] }
 0x159   :  { %1899 = vmatprep.subr.bf16.mxu1 %v3418_v16  ;;  %2071 = vmatprep.subr.bf16.mxu0 %v3422_v17  ;;  %v283_v16 = vld [vmem:[#allocation7 + $0xc8] sm:$0xff] }
 0x15a   :  { %v287_v17 = vld [vmem:[#allocation7 + $0xe8] sm:$0xff] }
 0x15b   :  { %v3236_v19 = vcombine.high %v283_v16, %v287_v17  ;;  %v359_v2 = vld [vmem:[#allocation7 + $0x328] sm:$0xff] }
 0x15c   :  { %1900 = vmatpush1.bf16.msra.mxu1 %v3417_v25  ;;  %2072 = vmatpush1.bf16.msra.mxu0 %v3421_v27  ;;  %v3235_v25 = vcombine.low %v283_v16, %v287_v17  ;;  %v3244_v27 = vcombine.high %v291_v20, %v295_v23  ;;  %v3308_v8 = vcombine.high %v355_v1, %v359_v2  ;;  %v363_v9 = vld [vmem:[#allocation7 + $0x348] sm:$0xff]  ;;  %v3682_v17 = vld [vmem:[#allocation8 + $0x54] ss:$8 sps:$4 sm:$0xff]  }
 0x15d   :  { %1901 = vmatprep.subr.bf16.mxu1 %v3426_v29  ;;  %2073 = vmatprep.subr.bf16.mxu0 %v3430_v30  ;;  %v299_v29 = vld [vmem:[#allocation7 + $0x148] sm:$0xff]  ;;  %v3307_v12 = vcombine.low %v355_v1, %v359_v2 }
 0x15e   :  { %v303_v30 = vld [vmem:[#allocation7 + $0x168] sm:$0xff] }
 0x15f   :  { %v3252_v32 = vcombine.high %v299_v29, %v303_v30  ;;  %v3677_v13 = vld [vmem:[#allocation8 + $0x40] ss:$8 sps:$4 sm:$0xff]   ;;  %v3703_v2 = vld [vmem:[#allocation8 + $0xc4] ss:$8 sps:$4 sm:$0xff]  }
 0x160   :  { %1902 = vmatpush1.bf16.msra.mxu1 %v3425_v35  ;;  %2074 = vmatpush1.bf16.msra.mxu0 %v3429_v36  ;;  %v3251_v35 = vcombine.low %v299_v29, %v303_v30  ;;  %v3260_v36 = vcombine.high %v307_v33, %v311_v34  ;;  %v375_v16 = vld [vmem:[#allocation7 + $0x3a8] sm:$0xff]  ;;  %v3688_v34 = vld [vmem:[#allocation8 + $0x74] ss:$8 sps:$4 sm:$0xff]  }
 0x161   :  { %1903 = vmatprep.subr.bf16.mxu1 %v3434_v37  ;;  %2075 = vmatprep.subr.bf16.mxu0 %v3438_v38  ;;  %v315_v37 = vld [vmem:[#allocation7 + $0x1c8] sm:$0xff] }
 0x162   :  { %v319_v38 = vld [vmem:[#allocation7 + $0x1e8] sm:$0xff] }
 0x163   :  { %v3268_v40 = vcombine.high %v315_v37, %v319_v38  ;;  %v379_v23 = vld [vmem:[#allocation7 + $0x3c8] sm:$0xff] }
 0x164   :  { %1904 = vmatpush1.bf16.msra.mxu1 %v3433_v43  ;;  %2076 = vmatpush1.bf16.msra.mxu0 %v3437_v44  ;;  %v3267_v43 = vcombine.low %v315_v37, %v319_v38  ;;  %v3276_v44 = vcombine.high %v323_v41, %v327_v42  ;;  %v3683_v30 = vld [vmem:[#allocation8 + $0x60] ss:$8 sps:$4 sm:$0xff]  }
 0x165   :  { %1905 = vmatprep.subr.bf16.mxu1 %v3442_v45  ;;  %2077 = vmatprep.subr.bf16.mxu0 %v3446_v46  ;;  %v331_v45 = vld [vmem:[#allocation7 + $0x248] sm:$0xff] }
 0x166   :  { %v335_v46 = vld [vmem:[#allocation7 + $0x268] sm:$0xff] }
 0x167   :  { %v3284_v50 = vcombine.high %v331_v45, %v335_v46  ;;  %v391_v33 = vld [vmem:[#allocation7 + $0x428] sm:$0xff] }
 0x168   :  { %1906 = vmatpush1.bf16.msra.mxu1 %v3441_v51  ;;  %2078 = vmatpush1.bf16.msra.mxu0 %v3445_v53  ;;  %v339_v51 = vld [vmem:[#allocation7 + $0x288] sm:$0xff] }
 0x169   :  { %1907 = vmatprep.subr.bf16.mxu1 %v3450_v54  ;;  %2079 = vmatprep.subr.bf16.mxu0 %v3454_v55  ;;  %v343_v53 = vld [vmem:[#allocation7 + $0x2a8] sm:$0xff]  ;;  %v3670_v54 = vld [vmem:[#allocation8 + $0x14] ss:$8 sps:$4 sm:$0xff]   ;;  %v3283_v55 = vcombine.low %v331_v45, %v335_v46 }
 0x16a   :  { %v3292_v58 = vcombine.high %v339_v51, %v343_v53  ;;  %v395_v38 = vld [vmem:[#allocation7 + $0x448] sm:$0xff]  ;;  %v3694_v46 = vld [vmem:[#allocation8 + $0x94] ss:$8 sps:$4 sm:$0xff]  }
 0x16b   :  { %v3689_v42 = vld [vmem:[#allocation8 + $0x80] ss:$8 sps:$4 sm:$0xff]  }
 0x16c   :  { %1908 = vmatpush1.bf16.msra.mxu1 %v3449_v61  ;;  %2080 = vmatpush1.bf16.msra.mxu0 %v3453_v62  ;;  %v3673_v61 = vld [vmem:[#allocation8 + $0x24] ss:$8 sps:$4 sm:$0xff]   ;;  %v3291_v62 = vcombine.low %v339_v51, %v343_v53 }
 0x16d   :  { %1909 = vmatprep.subr.bf16.mxu1 %v3458_v63  ;;  %2081 = vmatprep.subr.bf16.mxu0 %v3462_v0  ;;  %v3671_v63 = vld [vmem:[#allocation8 + $0x20] ss:$8 sps:$4 sm:$0xff]   ;;  %v3300_v0 = vcombine.high %v347_v59, %v351_v60  ;;  %v3697_v53 = vld [vmem:[#allocation8 + $0xa4] ss:$8 sps:$4 sm:$0xff]  }
 0x16e   :  { %v407_v45 = vld [vmem:[#allocation7 + $0x4a8] sm:$0xff] }
 0x16f   :  { %v415_v51 = vld [vmem:[#allocation7 + $0x4e8] sm:$0xff] }
 0x170   :  { %1910 = vmatpush1.bf16.msra.mxu1 %v3457_v4  ;;  %2082 = vmatpush1.bf16.msra.mxu0 %v3461_v5  ;;  %v3676_v4 = vld [vmem:[#allocation8 + $0x34] ss:$8 sps:$4 sm:$0xff]   ;;  %v3299_v5 = vcombine.low %v347_v59, %v351_v60  ;;  %v423_v59 = vld [vmem:[#allocation7 + $0x528] sm:$0xff] }
 0x171   :  { %1922 = vmatprep.subr.bf16.mxu1 %v3212_v7  ;;  %2984 = vmatprep.subr.bf16.mxu0 %v3667_v47  ;;  %v3674_v7 = vld [vmem:[#allocation8 + $0x30] ss:$8 sps:$4 sm:$0xff]   ;;  %v3700_v60 = vld [vmem:[#allocation8 + $0xb4] ss:$8 sps:$4 sm:$0xff]   ;;  %v431_v1 = vld [vmem:[#allocation7 + $0x568] sm:$0xff] }
 0x173   :  { %1912 = vmatmul.mubr.bf16.vlgmr.msra.gmra.mrb[4].mxu1 %v4133_v3  ;;  %2084 = vmatmul.mubr.bf16.vlgmr.msra.gmra.mrb[4].mxu0 %v4133_v3 }
 0x174   :  { %1923 = vmatpush1.bf16.msra.mxu1 %v3211_v10  ;;  %1954 = vmatprep.mubr.bf16.mxu1 %v4127_v56  ;;  %v367_v10 = vld [vmem:[#allocation7 + $0x368] sm:$0xff] }
 0x175   :  { %1924 = vmatprep.subr.bf16.mxu1 %v3220_v11  ;;  %2985 = vmatpush1.bf16.msra.mxu0 %v3665_v49  ;;  %v3679_v11 = vld [vmem:[#allocation8 + $0x44] ss:$8 sps:$4 sm:$0xff]  }
 0x176   :  { %2986 = vmatprep.subr.bf16.mxu0 %v3670_v54 }
 0x178   :  { %1925 = vmatpush1.bf16.msra.mxu1 %v3219_v14  ;;  %v3316_v14 = vcombine.high %v363_v9, %v367_v10 }
 0x179   :  { %1926 = vmatprep.subr.bf16.mxu1 %v3228_v15  ;;  %2987 = vmatpush1.bf16.msra.mxu0 %v3668_v57  ;;  %v371_v15 = vld [vmem:[#allocation7 + $0x388] sm:$0xff] }
 0x17a   :  { %2988 = vmatprep.subr.bf16.mxu0 %v3673_v61  ;;  %v3324_v20 = vcombine.high %v371_v15, %v375_v16  ;;  %v3323_v29 = vcombine.low %v371_v15, %v375_v16  ;;  %v447_v15 = vld [vmem:[#allocation7 + $0x5e8] sm:$0xff] }
 0x17b   :  { %v3709_v16 = vld [vmem:[#allocation8 + $0xe4] ss:$8 sps:$4 sm:$0xff]  }
 0x17c   :  { %1927 = vmatpush1.bf16.msra.mxu1 %v3227_v18  ;;  %v3315_v18 = vcombine.low %v363_v9, %v367_v10  ;;  %v439_v9 = vld [vmem:[#allocation7 + $0x5a8] sm:$0xff]  ;;  %v3706_v10 = vld [vmem:[#allocation8 + $0xd4] ss:$8 sps:$4 sm:$0xff]  }
 0x17d   :  { %1928 = vmatprep.subr.bf16.mxu1 %v3236_v19  ;;  %2989 = vmatpush1.bf16.msra.mxu0 %v3671_v63  ;;  %v3680_v19 = vld [vmem:[#allocation8 + $0x50] ss:$8 sps:$4 sm:$0xff]  }
 0x17e   :  { %2990 = vmatprep.subr.bf16.mxu0 %v3676_v4 }
 0x180   :  { %1929 = vmatpush1.bf16.msra.mxu1 %v3235_v25  ;;  %v383_v25 = vld [vmem:[#allocation7 + $0x3e8] sm:$0xff] }
 0x181   :  { %1930 = vmatprep.subr.bf16.mxu1 %v3244_v27  ;;  %2991 = vmatpush1.bf16.msra.mxu0 %v3674_v7  ;;  %v3685_v27 = vld [vmem:[#allocation8 + $0x64] ss:$8 sps:$4 sm:$0xff]  }
 0x182   :  { %2992 = vmatprep.subr.bf16.mxu0 %v3679_v11 }
 0x184   :  { %1931 = vmatpush1.bf16.msra.mxu1 %v3243_v31  ;;  %v3332_v31 = vcombine.high %v379_v23, %v383_v25 }
 0x185   :  { %1932 = vmatprep.subr.bf16.mxu1 %v3252_v32  ;;  %2993 = vmatpush1.bf16.msra.mxu0 %v3677_v13  ;;  %v387_v32 = vld [vmem:[#allocation7 + $0x408] sm:$0xff] }
 0x186   :  { %2994 = vmatprep.subr.bf16.mxu0 %v3682_v17  ;;  %v3340_v37 = vcombine.high %v387_v32, %v391_v33  ;;  %v3339_v41 = vcombine.low %v387_v32, %v391_v33  ;;  %v463_v32 = vld [vmem:[#allocation7 + $0x668] sm:$0xff] }
 0x188   :  { %1933 = vmatpush1.bf16.msra.mxu1 %v3251_v35  ;;  %v3331_v35 = vcombine.low %v379_v23, %v383_v25  ;;  %v455_v23 = vld [vmem:[#allocation7 + $0x628] sm:$0xff]  ;;  %v3712_v25 = vld [vmem:[#allocation8 + $0xf4] ss:$8 sps:$4 sm:$0xff]  }
 0x189   :  { %1934 = vmatprep.subr.bf16.mxu1 %v3260_v36  ;;  %2995 = vmatpush1.bf16.msra.mxu0 %v3680_v19  ;;  %v3686_v36 = vld [vmem:[#allocation8 + $0x70] ss:$8 sps:$4 sm:$0xff]  }
 0x18a   :  { %2996 = vmatprep.subr.bf16.mxu0 %v3685_v27 }
 0x18c   :  { %1935 = vmatpush1.bf16.msra.mxu1 %v3259_v39  ;;  %v399_v39 = vld [vmem:[#allocation7 + $0x468] sm:$0xff] }
 0x18d   :  { %1936 = vmatprep.subr.bf16.mxu1 %v3268_v40  ;;  %2997 = vmatpush1.bf16.msra.mxu0 %v3683_v30  ;;  %v3691_v40 = vld [vmem:[#allocation8 + $0x84] ss:$8 sps:$4 sm:$0xff]   ;;  %v3347_v47 = vcombine.low %v395_v38, %v399_v39 }
 0x18e   :  { %2998 = vmatprep.subr.bf16.mxu0 %v3688_v34 }
 0x190   :  { %1937 = vmatpush1.bf16.msra.mxu1 %v3267_v43  ;;  %v3348_v43 = vcombine.high %v395_v38, %v399_v39  ;;  %v475_v39 = vld [vmem:[#allocation7 + $0x6c8] sm:$0xff] }
 0x191   :  { %1938 = vmatprep.subr.bf16.mxu1 %v3276_v44  ;;  %2999 = vmatpush1.bf16.msra.mxu0 %v3686_v36  ;;  %v403_v44 = vld [vmem:[#allocation7 + $0x488] sm:$0xff] }
 0x192   :  { %3000 = vmatprep.subr.bf16.mxu0 %v3691_v40  ;;  %v3356_v49 = vcombine.high %v403_v44, %v407_v45  ;;  %v3355_v54 = vcombine.low %v403_v44, %v407_v45  ;;  %v471_v36 = vld [vmem:[#allocation7 + $0x6a8] sm:$0xff] }
 0x193   :  { %v479_v40 = vld [vmem:[#allocation7 + $0x6e8] sm:$0xff] }
 0x194   :  { %1939 = vmatpush1.bf16.msra.mxu1 %v3275_v48  ;;  %v3692_v48 = vld [vmem:[#allocation8 + $0x90] ss:$8 sps:$4 sm:$0xff]   ;;  %v487_v44 = vld [vmem:[#allocation7 + $0x728] sm:$0xff]  ;;  %v3427_v45 = vcombine.low %v475_v39, %v479_v40 }
 0x195   :  { %1940 = vmatprep.subr.bf16.mxu1 %v3284_v50  ;;  %3001 = vmatpush1.bf16.msra.mxu0 %v3689_v42  ;;  %v411_v50 = vld [vmem:[#allocation7 + $0x4c8] sm:$0xff]  ;;  %v3428_v42 = vcombine.high %v475_v39, %v479_v40  ;;  %v333_v40 = vld [vmem:[#allocation7 + $0x258] sm:$0xff] }
 0x196   :  { %3002 = vmatprep.subr.bf16.mxu0 %v3694_v46  ;;  %v3364_v57 = vcombine.high %v411_v50, %v415_v51  ;;  %v3363_v61 = vcombine.low %v411_v50, %v415_v51  ;;  %v499_v51 = vld [vmem:[#allocation7 + $0x788] sm:$0xff] }
 0x198   :  { %1941 = vmatpush1.bf16.msra.mxu1 %v3283_v55  ;;  %v3695_v55 = vld [vmem:[#allocation8 + $0xa0] ss:$8 sps:$4 sm:$0xff]  }
 0x199   :  { %1942 = vmatprep.subr.bf16.mxu1 %v3292_v58  ;;  %3003 = vmatpush1.bf16.msra.mxu0 %v3692_v48  ;;  %v419_v58 = vld [vmem:[#allocation7 + $0x508] sm:$0xff] }
 0x19a   :  { %3004 = vmatprep.subr.bf16.mxu0 %v3697_v53  ;;  %v3372_v63 = vcombine.high %v419_v58, %v423_v59  ;;  %v3371_v4 = vcombine.low %v419_v58, %v423_v59  ;;  %v495_v48 = vld [vmem:[#allocation7 + $0x768] sm:$0xff] }
 0x19b   :  { %v503_v53 = vld [vmem:[#allocation7 + $0x7a8] sm:$0xff] }
 0x19c   :  { %1943 = vmatpush1.bf16.msra.mxu1 %v3291_v62  ;;  %v3698_v62 = vld [vmem:[#allocation8 + $0xb0] ss:$8 sps:$4 sm:$0xff]   ;;  %v511_v58 = vld [vmem:[#allocation7 + $0x7e8] sm:$0xff]  ;;  %v3451_v59 = vcombine.low %v499_v51, %v503_v53 }
 0x19d   :  { %1944 = vmatprep.subr.bf16.mxu1 %v3300_v0  ;;  %3005 = vmatpush1.bf16.msra.mxu0 %v3695_v55  ;;  %v427_v0 = vld [vmem:[#allocation7 + $0x548] sm:$0xff]  ;;  %v3452_v55 = vcombine.high %v499_v51, %v503_v53  ;;  %v357_v53 = vld [vmem:[#allocation7 + $0x318] sm:$0xff] }
 0x19e   :  { %3006 = vmatprep.subr.bf16.mxu0 %v3700_v60  ;;  %v3380_v7 = vcombine.high %v427_v0, %v431_v1  ;;  %v3379_v11 = vcombine.low %v427_v0, %v431_v1  ;;  %v269_v1 = vld [vmem:[#allocation7 + $0x58] sm:$0xff] }
 0x1a0   :  { %1945 = vmatpush1.bf16.msra.mxu1 %v3299_v5  ;;  %v3701_v5 = vld [vmem:[#allocation8 + $0xc0] ss:$8 sps:$4 sm:$0xff]  }
 0x1a1   :  { %1946 = vmatprep.subr.bf16.mxu1 %v3308_v8  ;;  %3007 = vmatpush1.bf16.msra.mxu0 %v3698_v62  ;;  %v435_v8 = vld [vmem:[#allocation7 + $0x588] sm:$0xff]  ;;  %v265_v62 = vld [vmem:[#allocation7 + $0x38] sm:$0xff] }
 0x1a2   :  { %3008 = vmatprep.subr.bf16.mxu0 %v3703_v2  ;;  %v3388_v13 = vcombine.high %v435_v8, %v439_v9  ;;  %v3387_v17 = vcombine.low %v435_v8, %v439_v9  ;;  %v273_v2 = vld [vmem:[#allocation7 + $0x78] sm:$0xff]  ;;  %v3715_v9 = vld [vmem:[#allocation8 + $0x104] ss:$8 sps:$4 sm:$0xff]  }
 0x1a3   :  { %v281_v8 = vld [vmem:[#allocation7 + $0xb8] sm:$0xff] }
 0x1a4   :  { %1947 = vmatpush1.bf16.msra.mxu1 %v3307_v12  ;;  %v3704_v12 = vld [vmem:[#allocation8 + $0xd0] ss:$8 sps:$4 sm:$0xff]  }
 0x1a5   :  { %1948 = vmatprep.subr.bf16.mxu1 %v3316_v14  ;;  %3009 = vmatpush1.bf16.msra.mxu0 %v3701_v5  ;;  %v443_v14 = vld [vmem:[#allocation7 + $0x5c8] sm:$0xff]  ;;  %v3224_v5 = vcombine.high %v269_v1, %v273_v2 }
 0x1a6   :  { %3010 = vmatprep.subr.bf16.mxu0 %v3706_v10  ;;  %v3396_v19 = vcombine.high %v443_v14, %v447_v15  ;;  %v3395_v27 = vcombine.low %v443_v14, %v447_v15  ;;  %v3223_v10 = vcombine.low %v269_v1, %v273_v2  ;;  %v381_v2 = vld [vmem:[#allocation7 + $0x3d8] sm:$0xff] }
 0x1a8   :  { %1949 = vmatpush1.bf16.msra.mxu1 %v3315_v18  ;;  %v3707_v18 = vld [vmem:[#allocation8 + $0xe0] ss:$8 sps:$4 sm:$0xff]  }
 0x1a9   :  { %1950 = vmatprep.subr.bf16.mxu1 %v3324_v20  ;;  %3011 = vmatpush1.bf16.msra.mxu0 %v3704_v12  ;;  %v451_v20 = vld [vmem:[#allocation7 + $0x608] sm:$0xff]  ;;  %v285_v12 = vld [vmem:[#allocation7 + $0xd8] sm:$0xff] }
 0x1aa   :  { %3012 = vmatprep.subr.bf16.mxu0 %v3709_v16  ;;  %v3404_v30 = vcombine.high %v451_v20, %v455_v23  ;;  %v3403_v33 = vcombine.low %v451_v20, %v455_v23  ;;  %v293_v16 = vld [vmem:[#allocation7 + $0x118] sm:$0xff] }
 0x1ab   :  { %v301_v20 = vld [vmem:[#allocation7 + $0x158] sm:$0xff] }
 0x1ac   :  { %1951 = vmatpush1.bf16.msra.mxu1 %v3323_v29  ;;  %v3710_v29 = vld [vmem:[#allocation8 + $0xf0] ss:$8 sps:$4 sm:$0xff]  }
 0x1ad   :  { %1952 = vmatprep.subr.bf16.mxu1 %v3332_v31  ;;  %3013 = vmatpush1.bf16.msra.mxu0 %v3707_v18  ;;  %v459_v31 = vld [vmem:[#allocation7 + $0x648] sm:$0xff]  ;;  %v305_v23 = vld [vmem:[#allocation7 + $0x178] sm:$0xff] }
 0x1ae   :  { %3014 = vmatprep.subr.bf16.mxu0 %v3712_v25  ;;  %v3412_v34 = vcombine.high %v459_v31, %v463_v32  ;;  %v3256_v25 = vcombine.high %v301_v20, %v305_v23 }
 0x1b0   :  { %1953 = vmatpush1.bf16.msra.mxu1 %v3331_v35  ;;  %v467_v35 = vld [vmem:[#allocation7 + $0x688] sm:$0xff] }
 0x1b1   :  { %1965 = vmatprep.subr.bf16.mxu1 %v3340_v37  ;;  %3015 = vmatpush1.bf16.msra.mxu0 %v3710_v29  ;;  %v3411_v37 = vcombine.low %v459_v31, %v463_v32  ;;  %v3420_v38 = vcombine.high %v467_v35, %v471_v36  ;;  %v313_v29 = vld [vmem:[#allocation7 + $0x1b8] sm:$0xff] }
 0x1b2   :  { %3027 = vmatprep.subr.bf16.mxu0 %v3715_v9  ;;  %v317_v32 = vld [vmem:[#allocation7 + $0x1d8] sm:$0xff] }
 0x1b3   :  { %1955 = vmatmul.mubr.bf16.vlgmr.msra.gmra.mrb[8].mxu1 %v4125_v52  ;;  %v393_v9 = vld [vmem:[#allocation7 + $0x438] sm:$0xff] }
 0x1b4   :  { %1966 = vmatpush1.bf16.msra.mxu1 %v3339_v41  ;;  %1997 = vmatprep.mubr.bf16.mxu1 %v4135_v6  ;;  %v3419_v41 = vcombine.low %v467_v35, %v471_v36  ;;  %v325_v36 = vld [vmem:[#allocation7 + $0x218] sm:$0xff] }
 0x1b5   :  { %1967 = vmatprep.subr.bf16.mxu1 %v3348_v43  ;;  %v483_v43 = vld [vmem:[#allocation7 + $0x708] sm:$0xff] }
 0x1b6   :  { %v3436_v46 = vcombine.high %v483_v43, %v487_v44 }
 0x1b8   :  { %1968 = vmatpush1.bf16.msra.mxu1 %v3347_v47  ;;  %v491_v47 = vld [vmem:[#allocation7 + $0x748] sm:$0xff] }
 0x1b9   :  { %1969 = vmatprep.subr.bf16.mxu1 %v3356_v49  ;;  %v3435_v49 = vcombine.low %v483_v43, %v487_v44  ;;  %v3444_v50 = vcombine.high %v491_v47, %v495_v48  ;;  %v341_v44 = vld [vmem:[#allocation7 + $0x298] sm:$0xff] }
 0x1bc   :  { %1970 = vmatpush1.bf16.msra.mxu1 %v3355_v54  ;;  %v3443_v54 = vcombine.low %v491_v47, %v495_v48  ;;  %v349_v48 = vld [vmem:[#allocation7 + $0x2d8] sm:$0xff] }
 0x1bd   :  { %1971 = vmatprep.subr.bf16.mxu1 %v3364_v57  ;;  %v507_v57 = vld [vmem:[#allocation7 + $0x7c8] sm:$0xff] }
 0x1be   :  { %v3460_v60 = vcombine.high %v507_v57, %v511_v58 }
 0x1c0   :  { %1972 = vmatpush1.bf16.msra.mxu1 %v3363_v61  ;;  %v261_v61 = vld [vmem:[#allocation7 + $0x18] sm:$0xff] }
 0x1c1   :  { %1973 = vmatprep.subr.bf16.mxu1 %v3372_v63  ;;  %v3459_v63 = vcombine.low %v507_v57, %v511_v58  ;;  %v3216_v0 = vcombine.high %v261_v61, %v265_v62  ;;  %v365_v58 = vld [vmem:[#allocation7 + $0x358] sm:$0xff] }
 0x1c4   :  { %1974 = vmatpush1.bf16.msra.mxu1 %v3371_v4  ;;  %v3215_v4 = vcombine.low %v261_v61, %v265_v62  ;;  %v373_v62 = vld [vmem:[#allocation7 + $0x398] sm:$0xff] }
 0x1c5   :  { %1975 = vmatprep.subr.bf16.mxu1 %v3380_v7  ;;  %v277_v7 = vld [vmem:[#allocation7 + $0x98] sm:$0xff] }
 0x1c6   :  { %v3231_v14 = vcombine.low %v277_v7, %v281_v8 }
 0x1c8   :  { %1976 = vmatpush1.bf16.msra.mxu1 %v3379_v11  ;;  %v3232_v11 = vcombine.high %v277_v7, %v281_v8  ;;  %v389_v8 = vld [vmem:[#allocation7 + $0x418] sm:$0xff] }
 0x1c9   :  { %1977 = vmatprep.subr.bf16.mxu1 %v3388_v13  ;;  %v289_v13 = vld [vmem:[#allocation7 + $0xf8] sm:$0xff] }
 0x1ca   :  { %v3240_v15 = vcombine.high %v285_v12, %v289_v13  ;;  %v3239_v18 = vcombine.low %v285_v12, %v289_v13  ;;  %v397_v12 = vld [vmem:[#allocation7 + $0x458] sm:$0xff] }
 0x1cb   :  { %v401_v13 = vld [vmem:[#allocation7 + $0x478] sm:$0xff] }
 0x1cc   :  { %1978 = vmatpush1.bf16.msra.mxu1 %v3387_v17  ;;  %v297_v17 = vld [vmem:[#allocation7 + $0x138] sm:$0xff] }
 0x1cd   :  { %1979 = vmatprep.subr.bf16.mxu1 %v3396_v19  ;;  %v3248_v19 = vcombine.high %v293_v16, %v297_v17 }
 0x1d0   :  { %1980 = vmatpush1.bf16.msra.mxu1 %v3395_v27  ;;  %v309_v27 = vld [vmem:[#allocation7 + $0x198] sm:$0xff] }
 0x1d1   :  { %1981 = vmatprep.subr.bf16.mxu1 %v3404_v30  ;;  %v3255_v30 = vcombine.low %v301_v20, %v305_v23  ;;  %v3264_v31 = vcombine.high %v309_v27, %v313_v29  ;;  %v413_v20 = vld [vmem:[#allocation7 + $0x4d8] sm:$0xff] }
 0x1d2   :  { %v417_v23 = vld [vmem:[#allocation7 + $0x4f8] sm:$0xff] }
 0x1d4   :  { %1982 = vmatpush1.bf16.msra.mxu1 %v3403_v33  ;;  %v321_v33 = vld [vmem:[#allocation7 + $0x1f8] sm:$0xff] }
 0x1d5   :  { %1983 = vmatprep.subr.bf16.mxu1 %v3412_v34  ;;  %v3263_v34 = vcombine.low %v309_v27, %v313_v29  ;;  %v3272_v35 = vcombine.high %v317_v32, %v321_v33  ;;  %v421_v27 = vld [vmem:[#allocation7 + $0x518] sm:$0xff] }
 0x1d6   :  { %v425_v29 = vld [vmem:[#allocation7 + $0x538] sm:$0xff] }
 0x1d8   :  { %1984 = vmatpush1.bf16.msra.mxu1 %v3411_v37  ;;  %v329_v37 = vld [vmem:[#allocation7 + $0x238] sm:$0xff] }
 0x1d9   :  { %1985 = vmatprep.subr.bf16.mxu1 %v3420_v38  ;;  %v3271_v38 = vcombine.low %v317_v32, %v321_v33  ;;  %v3280_v39 = vcombine.high %v325_v36, %v329_v37  ;;  %v429_v32 = vld [vmem:[#allocation7 + $0x558] sm:$0xff]  ;;  %v534_v33 = vsub.s32 4, %v4106_v21 }
 0x1dc   :  { %1986 = vmatpush1.bf16.msra.mxu1 %v3419_v41  ;;  %v337_v41 = vld [vmem:[#allocation7 + $0x278] sm:$0xff] }
 0x1dd   :  { %1987 = vmatprep.subr.bf16.mxu1 %v3428_v42  ;;  %v3279_v42 = vcombine.low %v325_v36, %v329_v37  ;;  %v3288_v43 = vcombine.high %v333_v40, %v337_v41  ;;  %v437_v37 = vld [vmem:[#allocation7 + $0x598] sm:$0xff] }
 0x1e0   :  { %1988 = vmatpush1.bf16.msra.mxu1 %v3427_v45  ;;  %v345_v45 = vld [vmem:[#allocation7 + $0x2b8] sm:$0xff] }
 0x1e1   :  { %1989 = vmatprep.subr.bf16.mxu1 %v3436_v46  ;;  %v3287_v46 = vcombine.low %v333_v40, %v337_v41  ;;  %v3296_v47 = vcombine.high %v341_v44, %v345_v45 }
 0x1e4   :  { %1990 = vmatpush1.bf16.msra.mxu1 %v3435_v49  ;;  %v353_v49 = vld [vmem:[#allocation7 + $0x2f8] sm:$0xff] }
 0x1e5   :  { %1991 = vmatprep.subr.bf16.mxu1 %v3444_v50  ;;  %v3295_v50 = vcombine.low %v341_v44, %v345_v45  ;;  %v3304_v51 = vcombine.high %v349_v48, %v353_v49 }
 0x1e8   :  { %1992 = vmatpush1.bf16.msra.mxu1 %v3443_v54  ;;  %v361_v54 = vld [vmem:[#allocation7 + $0x338] sm:$0xff] }
 0x1e9   :  { %1993 = vmatprep.subr.bf16.mxu1 %v3452_v55  ;;  %v3303_v55 = vcombine.low %v349_v48, %v353_v49  ;;  %v3312_v57 = vcombine.high %v357_v53, %v361_v54  ;;  %v449_v48 = vld [vmem:[#allocation7 + $0x5f8] sm:$0xff] }
 0x1ec   :  { %1994 = vmatpush1.bf16.msra.mxu1 %v3451_v59  ;;  %v369_v59 = vld [vmem:[#allocation7 + $0x378] sm:$0xff] }
 0x1ed   :  { %1995 = vmatprep.subr.bf16.mxu1 %v3460_v60  ;;  %v3311_v60 = vcombine.low %v357_v53, %v361_v54  ;;  %v3320_v61 = vcombine.high %v365_v58, %v369_v59 }
 0x1f0   :  { %1996 = vmatpush1.bf16.msra.mxu1 %v3459_v63  ;;  %v377_v63 = vld [vmem:[#allocation7 + $0x3b8] sm:$0xff] }
 0x1f1   :  { %2094 = vmatprep.subr.bf16.mxu1 %v3216_v0  ;;  %v3319_v0 = vcombine.low %v365_v58, %v369_v59  ;;  %v3328_v1 = vcombine.high %v373_v62, %v377_v63 }
 0x1f3   :  { %1998 = vmatmul.mubr.bf16.vlgmr.msra.gmra.mrb[8].mxu1 %v4133_v3 }
 0x1f4   :  { %2095 = vmatpush1.bf16.msra.mxu1 %v3215_v4  ;;  %2126 = vmatprep.mubr.bf16.mxu1 %v4127_v56  ;;  %v3247_v56 = vcombine.low %v293_v16, %v297_v17  ;;  %v385_v4 = vld [vmem:[#allocation7 + $0x3f8] sm:$0xff] }
 0x1f5   :  { %2096 = vmatprep.subr.bf16.mxu1 %v3224_v5  ;;  %v3327_v5 = vcombine.low %v373_v62, %v377_v63  ;;  %v3336_v7 = vcombine.high %v381_v2, %v385_v4  ;;  %v405_v16 = vld [vmem:[#allocation7 + $0x498] sm:$0xff] }
 0x1f6   :  { %v409_v17 = vld [vmem:[#allocation7 + $0x4b8] sm:$0xff] }
 0x1f8   :  { %2097 = vmatpush1.bf16.msra.mxu1 %v3223_v10  ;;  %v3335_v10 = vcombine.low %v381_v2, %v385_v4 }
 0x1f9   :  { %2098 = vmatprep.subr.bf16.mxu1 %v3232_v11  ;;  %v3344_v11 = vcombine.high %v389_v8, %v393_v9 }
 0x1fc   :  { %2099 = vmatpush1.bf16.msra.mxu1 %v3231_v14  ;;  %v3343_v14 = vcombine.low %v389_v8, %v393_v9 }
 0x1fd   :  { %2100 = vmatprep.subr.bf16.mxu1 %v3240_v15  ;;  %v3352_v15 = vcombine.high %v397_v12, %v401_v13 }
 0x200   :  { %2101 = vmatpush1.bf16.msra.mxu1 %v3239_v18  ;;  %v3351_v18 = vcombine.low %v397_v12, %v401_v13 }
 0x201   :  { %2102 = vmatprep.subr.bf16.mxu1 %v3248_v19  ;;  %v3360_v19 = vcombine.high %v405_v16, %v409_v17 }
 0x204   :  { %2103 = vmatpush1.bf16.msra.mxu1 %v3247_v56  ;;  %v3359_v56 = vcombine.low %v405_v16, %v409_v17 }
 0x205   :  { %2104 = vmatprep.subr.bf16.mxu1 %v3256_v25  ;;  %v3368_v25 = vcombine.high %v413_v20, %v417_v23 }
 0x208   :  { %2105 = vmatpush1.bf16.msra.mxu1 %v3255_v30  ;;  %v3367_v30 = vcombine.low %v413_v20, %v417_v23  ;;  %v461_v23 = vld [vmem:[#allocation7 + $0x658] sm:$0xff] }
 0x209   :  { %2106 = vmatprep.subr.bf16.mxu1 %v3264_v31  ;;  %v3376_v31 = vcombine.high %v421_v27, %v425_v29 }
 0x20c   :  { %2107 = vmatpush1.bf16.msra.mxu1 %v3263_v34  ;;  %v4152_v34 = vld [vmem:[%s4203_s5] sm:$0xff] }
 0x20d   :  { %2108 = vmatprep.subr.bf16.mxu1 %v3272_v35  ;;  %v538_v35 = vsub.s32 5, %v4106_v21  ;;  %v535_v40 = vrot.slane %v4152_v34, %v534_v33  ;;  %v523_v41 = vrot.slane %v4152_v34, %v4115_v24  ;;  %v3721_v33 = vld [vmem:[#allocation8 + $0x124] ss:$8 sps:$4 sm:$0xff]  }
 0x210   :  { %2109 = vmatpush1.bf16.msra.mxu1 %v3271_v38  ;;  %v441_v38 = vld [vmem:[#allocation7 + $0x5b8] sm:$0xff] }
 0x211   :  { %2110 = vmatprep.subr.bf16.mxu1 %v3280_v39  ;;  %v519_v39 = vrot.slane %v4152_v34, %v4109_v22  ;;  %v3392_v44 = vcombine.high %v437_v37, %v441_v38  ;;  %v3391_v59 = vcombine.low %v437_v37, %v441_v38  ;;  %v481_v37 = vld [vmem:[#allocation7 + $0x6f8] sm:$0xff]  ;;  %v3719_v38 = vld [vmem:[#allocation8 + $0x120] ss:$8 sps:$4 sm:$0xff]  }
 0x214   :  { %2111 = vmatpush1.bf16.msra.mxu1 %v3279_v42  ;;  %v539_v42 = vrot.slane %v4152_v34, %v538_v35 }
 0x215   :  { %2112 = vmatprep.subr.bf16.mxu1 %v3288_v43 }
 0x218   :  { %2113 = vmatpush1.bf16.msra.mxu1 %v3287_v46 }
 0x219   :  { %2114 = vmatprep.subr.bf16.mxu1 %v3296_v47  ;;  %v445_v47 = vld [vmem:[#allocation7 + $0x5d8] sm:$0xff] }
 0x21a   :  { %v3399_v4 = vcombine.low %v445_v47, %v449_v48 }
 0x21c   :  { %2115 = vmatpush1.bf16.msra.mxu1 %v3295_v50 }
 0x21d   :  { %2116 = vmatprep.subr.bf16.mxu1 %v3304_v51 }
 0x220   :  { %2117 = vmatpush1.bf16.msra.mxu1 %v3303_v55 }
 0x221   :  { %2118 = vmatprep.subr.bf16.mxu1 %v3312_v57 }
 0x224   :  { %2119 = vmatpush1.bf16.msra.mxu1 %v3311_v60 }
 0x225   :  { %2120 = vmatprep.subr.bf16.mxu1 %v3320_v61 }
 0x228   :  { %2121 = vmatpush1.bf16.msra.mxu1 %v3319_v0  ;;  %v3400_v0 = vcombine.high %v445_v47, %v449_v48  ;;  %v493_v48 = vld [vmem:[#allocation7 + $0x758] sm:$0xff] }
 0x229   :  { %2122 = vmatprep.subr.bf16.mxu1 %v3328_v1 }
 0x22c   :  { %2123 = vmatpush1.bf16.msra.mxu1 %v3327_v5  ;;  %v453_v5 = vld [vmem:[#allocation7 + $0x618] sm:$0xff] }
 0x22d   :  { %2124 = vmatprep.subr.bf16.mxu1 %v3336_v7  ;;  %v457_v7 = vld [vmem:[#allocation7 + $0x638] sm:$0xff] }
 0x230   :  { %2125 = vmatpush1.bf16.msra.mxu1 %v3335_v10 }
 0x231   :  { %2137 = vmatprep.subr.bf16.mxu1 %v3344_v11 }
 0x233   :  { %2127 = vmatmul.mubr.bf16.vlgmr.msra.gmra.mrb[12].mxu1 %v4125_v52  ;;  %v433_v52 = vld [vmem:[#allocation7 + $0x578] sm:$0xff] }
 0x234   :  { %2138 = vmatpush1.bf16.msra.mxu1 %v3343_v14  ;;  %2169 = vmatprep.mubr.bf16.mxu1 %v4135_v6  ;;  %v3375_v6 = vcombine.low %v421_v27, %v425_v29  ;;  %v3384_v36 = vcombine.high %v429_v32, %v433_v52  ;;  %v3383_v43 = vcombine.low %v429_v32, %v433_v52  ;;  %v3718_v27 = vld [vmem:[#allocation8 + $0x114] ss:$8 sps:$4 sm:$0xff]   ;;  %v3716_v52 = vld [vmem:[#allocation8 + $0x110] ss:$8 sps:$4 sm:$0xff]  }
 0x235   :  { %2139 = vmatprep.subr.bf16.mxu1 %v3352_v15  ;;  %v3407_v29 = vcombine.low %v453_v5, %v457_v7  ;;  %v473_v32 = vld [vmem:[#allocation7 + $0x6b8] sm:$0xff] }
 0x238   :  { %2140 = vmatpush1.bf16.msra.mxu1 %v3351_v18  ;;  %v3408_v18 = vcombine.high %v453_v5, %v457_v7  ;;  %v3734_v5 = vld [vmem:[#allocation8 + $0x170] ss:$8 sps:$4 sm:$0xff]   ;;  %v3739_v7 = vld [vmem:[#allocation8 + $0x184] ss:$8 sps:$4 sm:$0xff]  }
 0x239   :  { %2141 = vmatprep.subr.bf16.mxu1 %v3360_v19 }
 0x23c   :  { %2142 = vmatpush1.bf16.msra.mxu1 %v3359_v56  ;;  %v465_v56 = vld [vmem:[#allocation7 + $0x678] sm:$0xff] }
 0x23d   :  { %2143 = vmatprep.subr.bf16.mxu1 %v3368_v25  ;;  %v3713_v25 = vld [vmem:[#allocation8 + $0x100] ss:$8 sps:$4 sm:$0xff]  }
 0x240   :  { %2144 = vmatpush1.bf16.msra.mxu1 %v3367_v30  ;;  %v3416_v30 = vcombine.high %v461_v23, %v465_v56 }
 0x241   :  { %2145 = vmatprep.subr.bf16.mxu1 %v3376_v31  ;;  %v469_v31 = vld [vmem:[#allocation7 + $0x698] sm:$0xff] }
 0x242   :  { %v3424_v35 = vcombine.high %v469_v31, %v473_v32 }
 0x244   :  { %2146 = vmatpush1.bf16.msra.mxu1 %v3375_v6  ;;  %v3415_v6 = vcombine.low %v461_v23, %v465_v56  ;;  %v3752_v23 = vld [vmem:[#allocation8 + $0x1d0] ss:$8 sps:$4 sm:$0xff]   ;;  %v3757_v56 = vld [vmem:[#allocation8 + $0x1e4] ss:$8 sps:$4 sm:$0xff]  }
 0x245   :  { %2147 = vmatprep.subr.bf16.mxu1 %v3384_v36  ;;  %v477_v36 = vld [vmem:[#allocation7 + $0x6d8] sm:$0xff] }
 0x246   :  { %v1913_v45 = vpop.f32.mrb[4].mxu1  ;;  %v2085_v46 = vpop.f32.mrb[4].mxu0 }
 0x247   :  { %v3593_v49 = vadd.f32 %v1913_v45, %v519_v39  ;;  %v3601_v50 = vadd.f32 %v2085_v46, %v535_v40  ;;  %v1915_v51 = vpop.f32.mrb[5].mxu1  ;;  %v2087_v53 = vpop.f32.mrb[5].mxu0  ;;  %v3727_v45 = vld [vmem:[#allocation8 + $0x144] ss:$8 sps:$4 sm:$0xff]   ;;  %v3431_v46 = vcombine.low %v477_v36, %v481_v37 }
 0x248   :  { %v3594_v54 = vadd.f32 %v1915_v51, %v523_v41  ;;  %v3602_v55 = vadd.f32 %v2087_v53, %v539_v42  ;;  %v1917_v57 = vpop.f32.mrb[6].mxu1  ;;  %v2089_v58 = vpop.f32.mrb[6].mxu0  ;;  %2148 = vmatpush1.bf16.msra.mxu1 %v3383_v43  ;;  %v489_v43 = vld [vmem:[#allocation7 + $0x738] sm:$0xff] }
 0x249   :  { %v3595_v60 = vadd.f32 %v1917_v57, %v519_v39  ;;  %v3603_v61 = vadd.f32 %v2089_v58, %v535_v40  ;;  %v1919_v62 = vpop.f32.mrb[7].mxu1  ;;  %v2091_v63 = vpop.f32.mrb[7].mxu0  ;;  %2149 = vmatprep.subr.bf16.mxu1 %v3392_v44  ;;  %v2180_v8 = vmax.f32 %v3593_v49, 0.0  ;;  %v2184_v9 = vmax.f32 %v3601_v50, 0.0  ;;  %v3724_v39 = vld [vmem:[#allocation8 + $0x134] ss:$8 sps:$4 sm:$0xff]  }
 0x24a   :  { %v3596_v1 = vadd.f32 %v1919_v62, %v523_v41  ;;  %v3604_v2 = vadd.f32 %v2091_v63, %v539_v42  ;;  %v2181_v12 = vmax.f32 %v3594_v54, 0.0  ;;  %v2185_v13 = vmax.f32 %v3602_v55, 0.0  ;;  %v485_v42 = vld [vmem:[#allocation7 + $0x718] sm:$0xff]  ;;  %v3725_v50 = vld [vmem:[#allocation8 + $0x140] ss:$8 sps:$4 sm:$0xff]  }
 0x24b   :  { %v2188_v10 = vmax.f32 %v3595_v60, 0.0  ;;  %v2192_v11 = vmax.f32 %v3603_v61, 0.0  ;;  %v3423_v40 = vcombine.low %v469_v31, %v473_v32  ;;  %v3432_v41 = vcombine.high %v477_v36, %v481_v37  ;;  %v3722_v44 = vld [vmem:[#allocation8 + $0x130] ss:$8 sps:$4 sm:$0xff]   ;;  %v3730_v51 = vld [vmem:[#allocation8 + $0x154] ss:$8 sps:$4 sm:$0xff]  }
 0x24c   :  { %v2189_v14 = vmax.f32 %v3596_v1, 0.0  ;;  %v2193_v15 = vmax.f32 %v3604_v2, 0.0  ;;  %2150 = vmatpush1.bf16.msra.mxu1 %v3391_v59  ;;  %v3440_v47 = vcombine.high %v485_v42, %v489_v43  ;;  %v497_v49 = vld [vmem:[#allocation7 + $0x778] sm:$0xff]  ;;  %v3439_v53 = vcombine.low %v485_v42, %v489_v43  ;;  %v3733_v59 = vld [vmem:[#allocation8 + $0x164] ss:$8 sps:$4 sm:$0xff]  }
 0x24d   :  { %v2196_v16 = vpack.c.bf16 %v2188_v10, %v2180_v8  ;;  %v4161_v17 = vpack.c.bf16 %v2192_v11, %v2184_v9  ;;  %2151 = vmatprep.subr.bf16.mxu1 %v3400_v0  ;;  %v3448_v54 = vcombine.high %v493_v48, %v497_v49  ;;  %v501_v55 = vld [vmem:[#allocation7 + $0x798] sm:$0xff]  ;;  %v3447_v60 = vcombine.low %v493_v48, %v497_v49  ;;  %v3731_v0 = vld [vmem:[#allocation8 + $0x160] ss:$8 sps:$4 sm:$0xff]  }
 0x24e   :  { %v2197_v19 = vpack.c.bf16 %v2189_v14, %v2181_v12  ;;  %v4163_v20 = vpack.c.bf16 %v2193_v15, %v2185_v13  ;;  %v505_v57 = vld [vmem:[#allocation7 + $0x7b8] sm:$0xff]  ;;  %v3737_v9 = vld [vmem:[#allocation8 + $0x180] ss:$8 sps:$4 sm:$0xff]   ;;  %v3745_v12 = vld [vmem:[#allocation8 + $0x1a4] ss:$8 sps:$4 sm:$0xff]   ;;  %v531_v31 = vrot.slane %v4152_v34, %v110_v28 }
 0x24f   :  { %v3728_v58 = vld [vmem:[#allocation8 + $0x150] ss:$8 sps:$4 sm:$0xff]   ;;  %v3456_v61 = vcombine.high %v501_v55, %v505_v57  ;;  %v3736_v1 = vld [vmem:[#allocation8 + $0x174] ss:$8 sps:$4 sm:$0xff]   ;;  %v3455_v2 = vcombine.low %v501_v55, %v505_v57  ;;  %v3743_v13 = vld [vmem:[#allocation8 + $0x1a0] ss:$8 sps:$4 sm:$0xff]  }
 0x250   :  { %2152 = vmatpush1.bf16.msra.mxu1 %v3399_v4  ;;  %3016 = vmatprep.mubr.bf16.mxu0 %v2197_v19  ;;  %v509_v62 = vld [vmem:[#allocation7 + $0x7d8] sm:$0xff]  ;;  %v3781_v55 = vld [vmem:[#allocation8 + $0x264] ss:$8 sps:$4 sm:$0xff]  }
 0x251   :  { %3017 = vmatmul.mubr.bf16.vlgmr.msra.gmra.mrb[8].mxu0 %v2196_v16  ;;  %2153 = vmatprep.subr.bf16.mxu1 %v3408_v18  ;;  %v513_v63 = vld [vmem:[#allocation7 + $0x7f8] sm:$0xff]  ;;  %v3751_v16 = vld [vmem:[#allocation8 + $0x1c4] ss:$8 sps:$4 sm:$0xff]   ;;  %v3749_v18 = vld [vmem:[#allocation8 + $0x1c0] ss:$8 sps:$4 sm:$0xff]  }
 0x252   :  { %3028 = vmatpush1.bf16.msra.mxu0 %v3713_v25  ;;  %v3464_v4 = vcombine.high %v509_v62, %v513_v63  ;;  %v3463_v8 = vcombine.low %v509_v62, %v513_v63  ;;  %v3742_v10 = vld [vmem:[#allocation8 + $0x194] ss:$8 sps:$4 sm:$0xff]   ;;  %v3740_v11 = vld [vmem:[#allocation8 + $0x190] ss:$8 sps:$4 sm:$0xff]   ;;  %v3793_v63 = vld [vmem:[#allocation8 + $0x2a4] ss:$8 sps:$4 sm:$0xff]  }
 0x253   :  { %3029 = vmatprep.subr.bf16.mxu0 %v3718_v27  ;;  %v3748_v14 = vld [vmem:[#allocation8 + $0x1b4] ss:$8 sps:$4 sm:$0xff]   ;;  %v3746_v15 = vld [vmem:[#allocation8 + $0x1b0] ss:$8 sps:$4 sm:$0xff]  }
 0x254   :  { %2154 = vmatpush1.bf16.msra.mxu1 %v3407_v29  ;;  %v3754_v19 = vld [vmem:[#allocation8 + $0x1d4] ss:$8 sps:$4 sm:$0xff]   ;;  %v3758_v27 = vld [vmem:[#allocation8 + $0x1f0] ss:$8 sps:$4 sm:$0xff]   ;;  %v3763_v29 = vld [vmem:[#allocation8 + $0x204] ss:$8 sps:$4 sm:$0xff]  }
 0x255   :  { %2155 = vmatprep.subr.bf16.mxu1 %v3416_v30  ;;  %v3760_v25 = vld [vmem:[#allocation8 + $0x1f4] ss:$8 sps:$4 sm:$0xff]   ;;  %v527_v30 = vrot.slane %v4152_v34, %v106_v26  ;;  %v3764_v28 = vld [vmem:[#allocation8 + $0x210] ss:$8 sps:$4 sm:$0xff]  }
 0x256   :  { %3030 = vmatpush1.bf16.msra.mxu0 %v3716_v52  ;;  %v3766_v26 = vld [vmem:[#allocation8 + $0x214] ss:$8 sps:$4 sm:$0xff]   ;;  %v3770_v49 = vld [vmem:[#allocation8 + $0x230] ss:$8 sps:$4 sm:$0xff]  }
 0x257   :  { %3031 = vmatprep.subr.bf16.mxu0 %v3721_v33  ;;  %v3772_v48 = vld [vmem:[#allocation8 + $0x234] ss:$8 sps:$4 sm:$0xff]   ;;  %v3788_v62 = vld [vmem:[#allocation8 + $0x290] ss:$8 sps:$4 sm:$0xff]  }
 0x258   :  { %2156 = vmatpush1.bf16.msra.mxu1 %v3415_v6  ;;  %v3784_v57 = vld [vmem:[#allocation8 + $0x274] ss:$8 sps:$4 sm:$0xff]  }
 0x259   :  { %2157 = vmatprep.subr.bf16.mxu1 %v3424_v35 }
 0x25a   :  { %3032 = vmatpush1.bf16.msra.mxu0 %v3719_v38 }
 0x25b   :  { %3033 = vmatprep.subr.bf16.mxu0 %v3724_v39 }
 0x25c   :  { %2158 = vmatpush1.bf16.msra.mxu1 %v3423_v40 }
 0x25d   :  { %2159 = vmatprep.subr.bf16.mxu1 %v3432_v41 }
 0x25e   :  { %3034 = vmatpush1.bf16.msra.mxu0 %v3722_v44 }
 0x25f   :  { %3035 = vmatprep.subr.bf16.mxu0 %v3727_v45  ;;  %v3761_v45 = vld [vmem:[#allocation8 + $0x200] ss:$8 sps:$4 sm:$0xff]  }
 0x260   :  { %2160 = vmatpush1.bf16.msra.mxu1 %v3431_v46  ;;  %v3769_v46 = vld [vmem:[#allocation8 + $0x224] ss:$8 sps:$4 sm:$0xff]  }
 0x261   :  { %2161 = vmatprep.subr.bf16.mxu1 %v3440_v47  ;;  %v3767_v47 = vld [vmem:[#allocation8 + $0x220] ss:$8 sps:$4 sm:$0xff]  }
 0x262   :  { %3036 = vmatpush1.bf16.msra.mxu0 %v3725_v50  ;;  %v3775_v50 = vld [vmem:[#allocation8 + $0x244] ss:$8 sps:$4 sm:$0xff]  }
 0x263   :  { %3037 = vmatprep.subr.bf16.mxu0 %v3730_v51  ;;  %v3773_v51 = vld [vmem:[#allocation8 + $0x240] ss:$8 sps:$4 sm:$0xff]  }
 0x264   :  { %2162 = vmatpush1.bf16.msra.mxu1 %v3439_v53  ;;  %v3778_v53 = vld [vmem:[#allocation8 + $0x254] ss:$8 sps:$4 sm:$0xff]  }
 0x265   :  { %2163 = vmatprep.subr.bf16.mxu1 %v3448_v54  ;;  %v3776_v54 = vld [vmem:[#allocation8 + $0x250] ss:$8 sps:$4 sm:$0xff]  }
 0x266   :  { %3038 = vmatpush1.bf16.msra.mxu0 %v3728_v58  ;;  %v3782_v58 = vld [vmem:[#allocation8 + $0x270] ss:$8 sps:$4 sm:$0xff]  }
 0x267   :  { %3039 = vmatprep.subr.bf16.mxu0 %v3733_v59  ;;  %v3787_v59 = vld [vmem:[#allocation8 + $0x284] ss:$8 sps:$4 sm:$0xff]  }
 0x268   :  { %2164 = vmatpush1.bf16.msra.mxu1 %v3447_v60  ;;  %v3785_v60 = vld [vmem:[#allocation8 + $0x280] ss:$8 sps:$4 sm:$0xff]  }
 0x269   :  { %2165 = vmatprep.subr.bf16.mxu1 %v3456_v61  ;;  %v3790_v61 = vld [vmem:[#allocation8 + $0x294] ss:$8 sps:$4 sm:$0xff]  }
 0x26a   :  { %3040 = vmatpush1.bf16.msra.mxu0 %v3731_v0  ;;  %v3791_v0 = vld [vmem:[#allocation8 + $0x2a0] ss:$8 sps:$4 sm:$0xff]  }
 0x26b   :  { %3041 = vmatprep.subr.bf16.mxu0 %v3736_v1  ;;  %v3796_v1 = vld [vmem:[#allocation8 + $0x2b4] ss:$8 sps:$4 sm:$0xff]  }
 0x26c   :  { %2166 = vmatpush1.bf16.msra.mxu1 %v3455_v2  ;;  %v3794_v2 = vld [vmem:[#allocation8 + $0x2b0] ss:$8 sps:$4 sm:$0xff]  }
 0x26d   :  { %2167 = vmatprep.subr.bf16.mxu1 %v3464_v4  ;;  %v3799_v4 = vld [vmem:[#allocation8 + $0x2c4] ss:$8 sps:$4 sm:$0xff]  }
 0x26e   :  { %3042 = vmatpush1.bf16.msra.mxu0 %v3734_v5  ;;  %v3797_v5 = vld [vmem:[#allocation8 + $0x2c0] ss:$8 sps:$4 sm:$0xff]  }
 0x26f   :  { %3043 = vmatprep.subr.bf16.mxu0 %v3739_v7  ;;  %v3802_v7 = vld [vmem:[#allocation8 + $0x2d4] ss:$8 sps:$4 sm:$0xff]  }
 0x270   :  { %2168 = vmatpush1.bf16.msra.mxu1 %v3463_v8  ;;  %v3800_v8 = vld [vmem:[#allocation8 + $0x2d0] ss:$8 sps:$4 sm:$0xff]  }
 0x272   :  { %3044 = vmatpush1.bf16.msra.mxu0 %v3737_v9  ;;  %v3805_v9 = vld [vmem:[#allocation8 + $0x2e4] ss:$8 sps:$4 sm:$0xff]  }
 0x273   :  { %2170 = vmatmul.mubr.bf16.vlgmr.msra.gmra.mrb[12].mxu1 %v4133_v3  ;;  %3045 = vmatprep.subr.bf16.mxu0 %v3742_v10  ;;  %v3755_v3 = vld [vmem:[#allocation8 + $0x1e0] ss:$8 sps:$4 sm:$0xff]  }
 0x274   :  { %v3803_v10 = vld [vmem:[#allocation8 + $0x2e0] ss:$8 sps:$4 sm:$0xff]  }
 0x276   :  { %3046 = vmatpush1.bf16.msra.mxu0 %v3740_v11  ;;  %v3808_v11 = vld [vmem:[#allocation8 + $0x2f4] ss:$8 sps:$4 sm:$0xff]  }
 0x277   :  { %3047 = vmatprep.subr.bf16.mxu0 %v3745_v12  ;;  %v3806_v12 = vld [vmem:[#allocation8 + $0x2f0] ss:$8 sps:$4 sm:$0xff]  }
 0x27a   :  { %3048 = vmatpush1.bf16.msra.mxu0 %v3743_v13  ;;  %v3811_v13 = vld [vmem:[#allocation8 + $0x304] ss:$8 sps:$4 sm:$0xff]  }
 0x27b   :  { %3049 = vmatprep.subr.bf16.mxu0 %v3748_v14  ;;  %v3809_v14 = vld [vmem:[#allocation8 + $0x300] ss:$8 sps:$4 sm:$0xff]  }
 0x27e   :  { %3050 = vmatpush1.bf16.msra.mxu0 %v3746_v15  ;;  %v3814_v15 = vld [vmem:[#allocation8 + $0x314] ss:$8 sps:$4 sm:$0xff]  }
 0x27f   :  { %3051 = vmatprep.subr.bf16.mxu0 %v3751_v16  ;;  %v3812_v16 = vld [vmem:[#allocation8 + $0x310] ss:$8 sps:$4 sm:$0xff]  }
 0x282   :  { %3052 = vmatpush1.bf16.msra.mxu0 %v3749_v18  ;;  %v3817_v18 = vld [vmem:[#allocation8 + $0x324] ss:$8 sps:$4 sm:$0xff]  }
 0x283   :  { %3053 = vmatprep.subr.bf16.mxu0 %v3754_v19  ;;  %v3815_v19 = vld [vmem:[#allocation8 + $0x320] ss:$8 sps:$4 sm:$0xff]  }
 0x286   :  { %3054 = vmatpush1.bf16.msra.mxu0 %v3752_v23  ;;  %v3820_v23 = vld [vmem:[#allocation8 + $0x334] ss:$8 sps:$4 sm:$0xff]  }
 0x287   :  { %3055 = vmatprep.subr.bf16.mxu0 %v3757_v56  ;;  %v3818_v56 = vld [vmem:[#allocation8 + $0x330] ss:$8 sps:$4 sm:$0xff]  }
 0x28a   :  { %3056 = vmatpush1.bf16.msra.mxu0 %v3755_v3  ;;  %v3823_v3 = vld [vmem:[#allocation8 + $0x344] ss:$8 sps:$4 sm:$0xff]  }
 0x28b   :  { %3057 = vmatprep.subr.bf16.mxu0 %v3760_v25  ;;  %v3821_v25 = vld [vmem:[#allocation8 + $0x340] ss:$8 sps:$4 sm:$0xff]  }
 0x28e   :  { %3058 = vmatpush1.bf16.msra.mxu0 %v3758_v27  ;;  %v3826_v27 = vld [vmem:[#allocation8 + $0x354] ss:$8 sps:$4 sm:$0xff]  }
 0x28f   :  { %3070 = vmatprep.subr.bf16.mxu0 %v3763_v29  ;;  %v3824_v29 = vld [vmem:[#allocation8 + $0x350] ss:$8 sps:$4 sm:$0xff]  }
 0x2c6   :  { %v1999_v32 = vpop.f32.mrb[8].mxu1 }
 0x2c7   :  { %v3597_v52 = vadd.f32 %v1999_v32, %v527_v30  ;;  %v2001_v33 = vpop.f32.mrb[9].mxu1  ;;  %v3830_v32 = vld [vmem:[#allocation8 + $0x370] ss:$8 sps:$4 sm:$0xff]  }
 0x2c8   :  { %v3598_v6 = vadd.f32 %v2001_v33, %v531_v31  ;;  %v2003_v35 = vpop.f32.mrb[10].mxu1  ;;  %v3833_v33 = vld [vmem:[#allocation8 + $0x380] ss:$8 sps:$4 sm:$0xff]  }
 0x2c9   :  { %v3599_v36 = vadd.f32 %v2003_v35, %v527_v30  ;;  %v2005_v37 = vpop.f32.mrb[11].mxu1  ;;  %v2182_v39 = vmax.f32 %v3597_v52, 0.0  ;;  %v3827_v30 = vld [vmem:[#allocation8 + $0x360] ss:$8 sps:$4 sm:$0xff]   ;;  %v3835_v52 = vld [vmem:[#allocation8 + $0x384] ss:$8 sps:$4 sm:$0xff]  }
 0x2ca   :  { %v3600_v38 = vadd.f32 %v2005_v37, %v531_v31  ;;  %v2183_v41 = vmax.f32 %v3598_v6, 0.0  ;;  %v3832_v31 = vld [vmem:[#allocation8 + $0x374] ss:$8 sps:$4 sm:$0xff]   ;;  %v3836_v35 = vld [vmem:[#allocation8 + $0x390] ss:$8 sps:$4 sm:$0xff]  }
 0x2cb   :  { %v2190_v40 = vmax.f32 %v3599_v36, 0.0  ;;  %v3838_v6 = vld [vmem:[#allocation8 + $0x394] ss:$8 sps:$4 sm:$0xff]   ;;  %v3841_v36 = vld [vmem:[#allocation8 + $0x3a4] ss:$8 sps:$4 sm:$0xff]  }
 0x2cc   :  { %v2191_v42 = vmax.f32 %v3600_v38, 0.0  ;;  %v3839_v37 = vld [vmem:[#allocation8 + $0x3a0] ss:$8 sps:$4 sm:$0xff]   ;;  %v3844_v38 = vld [vmem:[#allocation8 + $0x3b4] ss:$8 sps:$4 sm:$0xff]  }
 0x2cd   :  { %v2198_v43 = vpack.c.bf16 %v2190_v40, %v2182_v39  ;;  %v3842_v39 = vld [vmem:[#allocation8 + $0x3b0] ss:$8 sps:$4 sm:$0xff]   ;;  %v3847_v40 = vld [vmem:[#allocation8 + $0x3c4] ss:$8 sps:$4 sm:$0xff]  }
 0x2ce   :  { %v2199_v44 = vpack.c.bf16 %v2191_v42, %v2183_v41  ;;  %v3845_v41 = vld [vmem:[#allocation8 + $0x3c0] ss:$8 sps:$4 sm:$0xff]   ;;  %v3850_v42 = vld [vmem:[#allocation8 + $0x3d4] ss:$8 sps:$4 sm:$0xff]  }
 0x2d0   :  { %3059 = vmatprep.mubr.bf16.mxu0 %v2199_v44  ;;  %v546_v44 = vsub.s32 7, %v4106_v21 }
 0x2d1   :  { %3060 = vmatmul.mubr.bf16.vlgmr.msra.gmra.mrb[8].mxu0 %v2198_v43  ;;  %v542_v43 = vsub.s32 6, %v4106_v21 }
 0x2d2   :  { %3071 = vmatpush1.bf16.msra.mxu0 %v3761_v45  ;;  %3102 = vmatprep.mubr.bf16.mxu0 %v4163_v20  ;;  %v3779_v20 = vld [vmem:[#allocation8 + $0x260] ss:$8 sps:$4 sm:$0xff]   ;;  %v3848_v45 = vld [vmem:[#allocation8 + $0x3d0] ss:$8 sps:$4 sm:$0xff]  }
 0x2d3   :  { %3072 = vmatprep.subr.bf16.mxu0 %v3766_v26  ;;  %v543_v26 = vrot.slane %v4152_v34, %v542_v43 }
 0x2d6   :  { %3073 = vmatpush1.bf16.msra.mxu0 %v3764_v28  ;;  %v3853_v28 = vld [vmem:[#allocation8 + $0x3e4] ss:$8 sps:$4 sm:$0xff]  }
 0x2d7   :  { %3074 = vmatprep.subr.bf16.mxu0 %v3769_v46  ;;  %v547_v46 = vrot.slane %v4152_v34, %v546_v44 }
 0x2da   :  { %3075 = vmatpush1.bf16.msra.mxu0 %v3767_v47 }
 0x2db   :  { %3076 = vmatprep.subr.bf16.mxu0 %v3772_v48  ;;  %v3851_v48 = vld [vmem:[#allocation8 + $0x3e0] ss:$8 sps:$4 sm:$0xff]  }
 0x2de   :  { %3077 = vmatpush1.bf16.msra.mxu0 %v3770_v49 }
 0x2df   :  { %3078 = vmatprep.subr.bf16.mxu0 %v3775_v50 }
 0x2e2   :  { %3079 = vmatpush1.bf16.msra.mxu0 %v3773_v51  ;;  %v3856_v51 = vld [vmem:[#allocation8 + $0x3f4] ss:$8 sps:$4 sm:$0xff]  }
 0x2e3   :  { %3080 = vmatprep.subr.bf16.mxu0 %v3778_v53 }
 0x2e6   :  { %3081 = vmatpush1.bf16.msra.mxu0 %v3776_v54 }
 0x2e7   :  { %3082 = vmatprep.subr.bf16.mxu0 %v3781_v55 }
 0x2ea   :  { %3083 = vmatpush1.bf16.msra.mxu0 %v3779_v20 }
 0x2eb   :  { %3084 = vmatprep.subr.bf16.mxu0 %v3784_v57  ;;  %v3854_v57 = vld [vmem:[#allocation8 + $0x3f0] ss:$8 sps:$4 sm:$0xff]  }
 0x2ee   :  { %3085 = vmatpush1.bf16.msra.mxu0 %v3782_v58 }
 0x2ef   :  { %3086 = vmatprep.subr.bf16.mxu0 %v3787_v59 }
 0x2f2   :  { %3087 = vmatpush1.bf16.msra.mxu0 %v3785_v60 }
 0x2f3   :  { %3088 = vmatprep.subr.bf16.mxu0 %v3790_v61 }
 0x2f6   :  { %3089 = vmatpush1.bf16.msra.mxu0 %v3788_v62 }
 0x2f7   :  { %3090 = vmatprep.subr.bf16.mxu0 %v3793_v63  ;;  %v2332_v63 = vld [vmem:[%s4204_s6] sm:$0x3]  ;;  %s4002_s6 = smov [#allocation10]  }
 0x2f8   :  { %s3185_s10 = sshll.u32 %s4002_s6, 4  ;;  %s3186_s10 = int_to_ptr.vmem [resolvable:$true] %s3185_s10 }
 0x2f9   :  { %s3961_s13 = scalar_lea.vmem %s3186_s10, 512  ;;  %p3966_p5 = scmp.lt.s32.totalorder %s3186_s10, %s3186_s10 }
 0x2fa   :  { %3091 = vmatpush1.bf16.msra.mxu0 %v3791_v0  ;;  %v2337_v0 = vrot.slane %v2332_v63, %v4109_v22  ;;  %p3962_p4 = scmp.ne.s32.totalorder %s3186_s10, %s3961_s13  ;;  %p3967_p6 = scmp.lt.s32.totalorder %s3961_s13, %s3961_s13 }
 0x2fb   :  { %3092 = vmatprep.subr.bf16.mxu0 %v3796_v1  ;;  %v2341_v1 = vrot.slane %v2332_v63, %v4115_v24 }
 0x2fc   :  { %p3968_p7 = por %p3967_p6, %p3966_p5 }
 0x2fe   :  { %3093 = vmatpush1.bf16.msra.mxu0 %v3794_v2  ;;  %p3969_p8 = pnand %p3968_p7, %p3962_p4 }
 0x2ff   :  { %3094 = vmatprep.subr.bf16.mxu0 %v3799_v4 }
 0x302   :  { %3095 = vmatpush1.bf16.msra.mxu0 %v3797_v5 }
 0x303   :  { %3096 = vmatprep.subr.bf16.mxu0 %v3802_v7 }
 0x306   :  { %3097 = vmatpush1.bf16.msra.mxu0 %v3800_v8 }
 0x307   :  { %3098 = vmatprep.subr.bf16.mxu0 %v3805_v9 }
 0x30a   :  { %3099 = vmatpush1.bf16.msra.mxu0 %v3803_v10 }
 0x30b   :  { %3100 = vmatprep.subr.bf16.mxu0 %v3808_v11 }
 0x30e   :  { %3101 = vmatpush1.bf16.msra.mxu0 %v3806_v12 }
 0x30f   :  { %3113 = vmatprep.subr.bf16.mxu0 %v3811_v13 }
 0x311   :  { %3103 = vmatmul.mubr.bf16.vlgmr.msra.gmra.mrb[8].mxu0 %v4161_v17  ;;  %v3829_v17 = vld [vmem:[#allocation8 + $0x364] ss:$8 sps:$4 sm:$0xff]  }
 0x312   :  { %3114 = vmatpush1.bf16.msra.mxu0 %v3809_v14 }
 0x313   :  { %3115 = vmatprep.subr.bf16.mxu0 %v3814_v15 }
 0x316   :  { %3116 = vmatpush1.bf16.msra.mxu0 %v3812_v16 }
 0x317   :  { %3117 = vmatprep.subr.bf16.mxu0 %v3817_v18 }
 0x31a   :  { %3118 = vmatpush1.bf16.msra.mxu0 %v3815_v19 }
 0x31b   :  { %3119 = vmatprep.subr.bf16.mxu0 %v3820_v23 }
 0x31e   :  { %3120 = vmatpush1.bf16.msra.mxu0 %v3818_v56 }
 0x31f   :  { %3121 = vmatprep.subr.bf16.mxu0 %v3823_v3 }
 0x322   :  { %3122 = vmatpush1.bf16.msra.mxu0 %v3821_v25 }
 0x323   :  { %3123 = vmatprep.subr.bf16.mxu0 %v3826_v27 }
 0x326   :  { %3124 = vmatpush1.bf16.msra.mxu0 %v3824_v29 }
 0x327   :  { %3125 = vmatprep.subr.bf16.mxu0 %v3829_v17 }
 0x32a   :  { %3126 = vmatpush1.bf16.msra.mxu0 %v3827_v30 }
 0x32b   :  { %3127 = vmatprep.subr.bf16.mxu0 %v3832_v31 }
 0x32e   :  { %3128 = vmatpush1.bf16.msra.mxu0 %v3830_v32 }
 0x32f   :  { %3129 = vmatprep.subr.bf16.mxu0 %v3835_v52 }
 0x332   :  { %3130 = vmatpush1.bf16.msra.mxu0 %v3833_v33 }
 0x333   :  { %3131 = vmatprep.subr.bf16.mxu0 %v3838_v6 }
 0x336   :  { %3132 = vmatpush1.bf16.msra.mxu0 %v3836_v35 }
 0x337   :  { %3133 = vmatprep.subr.bf16.mxu0 %v3841_v36 }
 0x33a   :  { %3134 = vmatpush1.bf16.msra.mxu0 %v3839_v37 }
 0x33b   :  { %3135 = vmatprep.subr.bf16.mxu0 %v3844_v38 }
 0x33e   :  { %3136 = vmatpush1.bf16.msra.mxu0 %v3842_v39 }
 0x33f   :  { %3137 = vmatprep.subr.bf16.mxu0 %v3847_v40 }
 0x342   :  { %3138 = vmatpush1.bf16.msra.mxu0 %v3845_v41 }
 0x343   :  { %3139 = vmatprep.subr.bf16.mxu0 %v3850_v42 }
 0x346   :  { %v2171_v47 = vpop.f32.mrb[12].mxu1  ;;  %3140 = vmatpush1.bf16.msra.mxu0 %v3848_v45 }
 0x347   :  { %v3605_v49 = vadd.f32 %v2171_v47, %v543_v26  ;;  %v2173_v50 = vpop.f32.mrb[13].mxu1  ;;  %3141 = vmatprep.subr.bf16.mxu0 %v3853_v28 }
 0x348   :  { %v3606_v53 = vadd.f32 %v2173_v50, %v547_v46  ;;  %v2175_v54 = vpop.f32.mrb[14].mxu1 }
 0x349   :  { %v3607_v55 = vadd.f32 %v2175_v54, %v543_v26  ;;  %v2177_v20 = vpop.f32.mrb[15].mxu1  ;;  %v2186_v58 = vmax.f32 %v3605_v49, 0.0 }
 0x34a   :  { %v3608_v21 = vadd.f32 %v2177_v20, %v547_v46  ;;  %3142 = vmatpush1.bf16.msra.mxu0 %v3851_v48  ;;  %v2187_v60 = vmax.f32 %v3606_v53, 0.0 }
 0x34b   :  { %v2194_v59 = vmax.f32 %v3607_v55, 0.0  ;;  %3143 = vmatprep.subr.bf16.mxu0 %v3856_v51 }
 0x34c   :  { %v2195_v61 = vmax.f32 %v3608_v21, 0.0 }
 0x34d   :  { %v2202_v34 = vpack.c.bf16 %v2194_v59, %v2186_v58 }
 0x34e   :  { %v2203_v62 = vpack.c.bf16 %v2195_v61, %v2187_v60  ;;  %3144 = vmatpush1.bf16.msra.mxu0 %v3854_v57 }
 0x350   :  { %3145 = vmatprep.mubr.bf16.mxu0 %v2203_v62 }
 0x351   :  { %3146 = vmatmul.mubr.bf16.vlgmr.msra.gmra.mrb[8].mxu0 %v2202_v34 }
 0x424   :  { %v3147_v2 = vpop.f32.mrb[8].mxu0 }
 0x425   :  { %v3609_v4 = vadd.f32 %v3147_v2, %v2337_v0  ;;  %v3149_v5 = vpop.f32.mrb[9].mxu0 }
 0x426   :  { %v3610_v7 = vadd.f32 %v3149_v5, %v2341_v1  ;;  %v3151_v8 = vpop.f32.mrb[10].mxu0 }
 0x427   :  { %v3156_v9 = vsub.f32 0.0, %v3609_v4  ;;  %v3611_v10 = vadd.f32 %v3151_v8, %v2337_v0  ;;  %v3153_v11 = vpop.f32.mrb[11].mxu0 }
 0x428   :  { %v3157_v12 = vsub.f32 0.0, %v3610_v7  ;;  %v3612_v13 = vadd.f32 %v3153_v11, %v2341_v1 }
 0x429   :  { %v3160_v14 = vmul.f32 1.442695, %v3156_v9  ;;  %v3158_v15 = vsub.f32 0.0, %v3611_v10 }
 0x42a   :  { %v3162_v16 = vmul.f32 1.442695, %v3157_v12  ;;  %v3159_v18 = vsub.f32 0.0, %v3612_v13 }
 0x42b   :  { %3857 = vpow2.f32 %v3160_v14  ;;  %v3164_v19 = vmul.f32 1.442695, %v3158_v15 }
 0x42c   :  { %3859 = vpow2.f32 %v3162_v16  ;;  %v3166_v22 = vmul.f32 1.442695, %v3159_v18 }
 0x42d   :  { %3861 = vpow2.f32 %v3164_v19 }
 0x42e   :  { %3863 = vpow2.f32 %v3166_v22 }
 0x435   :  { %v3858_v24 = vpop.eup %3857 }
 0x436   :  { %v3860_v23 = vpop.eup %3859  ;;  %v3168_v56 = vadd.f32 1.0, %v3858_v24 }
 0x437   :  { %v3862_v3 = vpop.eup %3861  ;;  %v3169_v25 = vadd.f32 1.0, %v3860_v23 }
 0x438   :  { %v3864_v27 = vpop.eup %3863  ;;  %3865 = vrcp.f32 %v3168_v56  ;;  %v3170_v29 = vadd.f32 1.0, %v3862_v3 }
 0x439   :  { %3867 = vrcp.f32 %v3169_v25  ;;  %v3171_v17 = vadd.f32 1.0, %v3864_v27 }
 0x43a   :  { %3869 = vrcp.f32 %v3170_v29 }
 0x43b   :  { %3871 = vrcp.f32 %v3171_v17 }
 0x442   :  { %v3866_v30 = vpop.eup %3865 }
 0x443   :  { %v3868_v31 = vpop.eup %3867  ;;  %3176 = vst [vmem:[#allocation10] sm:$0xff] %v3866_v30 }
 0x444   :  { %v3870_v32 = vpop.eup %3869  ;;  %3177 = vst [vmem:[#allocation10 + $0x8] sm:$0xff] %v3868_v31 }
 0x445   :  { %v3872_v52 = vpop.eup %3871  ;;  %3178 = vst [vmem:[#allocation10 + $0x10] sm:$0xff] %v3870_v32 }
 0x446   :  { %3179 = vst [vmem:[#allocation10 + $0x18] sm:$0xff] %v3872_v52 }
 0x447   :  { %3972 = shalt.err (!%p3969_p8)
}
 0x448   :  { %s3973_s17 = scalar_lea.hbm %s4205_s7, 512 }
 0x449   :  { %p3974_p9 = scmp.ne.s32.totalorder %s4205_s7, %s3973_s17  ;;  %p3977_p10 = scmp.lt.u32.totalorder %s3973_s17, %s4205_s7 }
 0x44b   :  { %p3979_p11 = pnand %p3977_p10, %p3974_p9 }
 0x44d   :  { %3982 = shalt.err (!%p3979_p11)
}
 0x44e   :  { %3191 = dma.vmem_to_hbm [thread:$0]  %s3186_s10, 512, %s4205_s7, [#allocation4], %s3992_s11, %s3992_s11, %s3993_s12  }
 0x44f   :  { %3989 = dma.done.wait [#allocation4], 512  }
 0x450   :  { %3990 = vsyncadd [#allocation4], 4294966784 }
 0x451   :  { %3195 = vsyncpa [#allocation3], 1 }
 0x452   :  { %3196 = vsyncpa [#allocation6], 1 }
 0x453   :  { %3197 = vsyncpa [#allocation9], 1 }
 0x454   :  { %3198 = vsyncpa [#allocation4], 1 }

</bundles_post_ra>
